<compile_context>
chip_gen: v5e
topology: v5e:2x2
jax: 0.10.0
libtpu: 0.0.40
codegen_flags: <defaults>
</compile_context>

<pallas_src>
import functools

import jax
import jax.numpy as jnp
from jax.experimental import pallas as pl
from jax.experimental.pallas import tpu as pltpu


WEIGHT_NAMES = (
    "w_in", "b_in",
    "w_ff1a", "b_ff1a", "w_ff1b", "b_ff1b",
    "w_qkv", "b_qkv", "w_attn_o", "b_attn_o",
    "w_pw1", "b_pw1", "w_dw", "b_dw", "w_pw2", "b_pw2",
    "w_ff2a", "b_ff2a", "w_ff2b", "b_ff2b",
    "w_head", "b_head",
)

# weight matrices that feed the MXU -> stored/passed as bf16
MATMUL_WEIGHTS = frozenset({
    "w_in", "w_ff1a", "w_ff1b", "w_qkv", "w_attn_o",
    "w_pw1", "w_pw2", "w_ff2a", "w_ff2b", "w_head",
})


def _layer_norm(x, eps=1e-5):
    mu = jnp.mean(x, axis=-1, keepdims=True)
    var = jnp.mean(jnp.square(x - mu), axis=-1, keepdims=True)
    return (x - mu) * jax.lax.rsqrt(var + eps)


def _swish(x):
    return x * jax.nn.sigmoid(x)


def _encode_one(feats, w, *, num_heads, dw_kernel, recip):
    """Encode one utterance and classify it.

    feats: (T, Fpad) bf16 time-major mel features (zero-padded to 128 lanes).
    Returns logits (1, C) f32.  Only jnp/lax ops -> shared by the Pallas
    kernel and the pure-JAX reference used for verification.
    """
    bf = jnp.bfloat16
    T = feats.shape[0]
    D = w["w_in"].shape[1]
    H = num_heads
    dh = D // H

    # ---- input projection: (T, Fpad) @ (Fpad, D) -> (T, D) ----
    x = jnp.dot(feats, w["w_in"], preferred_element_type=jnp.float32) + w["b_in"]

    # ---- 1) half-step feed-forward ----
    y = _layer_norm(x).astype(bf)
    y = _swish(jnp.dot(y, w["w_ff1a"], preferred_element_type=jnp.float32)
               + w["b_ff1a"]).astype(bf)
    y = jnp.dot(y, w["w_ff1b"], preferred_element_type=jnp.float32) + w["b_ff1b"]
    x = x + 0.5 * y

    # ---- 2) multi-head self-attention (batched heads) ----
    # TODO(synk): relative positional encoding of GigaAM's conformer omitted.
    y = _layer_norm(x).astype(bf)
    qkv = (jnp.dot(y, w["w_qkv"], preferred_element_type=jnp.float32)
           + w["b_qkv"]).astype(bf)                        # (T, 3D)
    q = jnp.stack([qkv[:, h * dh:(h + 1) * dh] for h in range(H)], axis=0)
    k = jnp.stack([qkv[:, D + h * dh:D + (h + 1) * dh] for h in range(H)], axis=0)
    v = jnp.stack([qkv[:, 2 * D + h * dh:2 * D + (h + 1) * dh]
                   for h in range(H)], axis=0)             # each (H, T, dh)
    s = jnp.einsum("hqd,hkd->hqk", q, k,
                   preferred_element_type=jnp.float32) * (1.0 / (dh ** 0.5))
    s_max = jnp.max(s, axis=-1, keepdims=True)
    e = jnp.exp(s - s_max)
    p = (e * recip(jnp.sum(e, axis=-1, keepdims=True))).astype(bf)
    ctx = jnp.einsum("hqk,hkd->hqd", p, v,
                     preferred_element_type=jnp.float32)   # (H, T, dh)
    ctx = jnp.concatenate([ctx[h] for h in range(H)], axis=-1).astype(bf)
    y = (jnp.dot(ctx, w["w_attn_o"], preferred_element_type=jnp.float32)
         + w["b_attn_o"])
    x = x + y

    # ---- 3) convolution module: pointwise -> GLU -> depthwise -> swish -> pw
    y = _layer_norm(x).astype(bf)
    y = jnp.dot(y, w["w_pw1"], preferred_element_type=jnp.float32) + w["b_pw1"]
    y = y[:, :D] * jax.nn.sigmoid(y[:, D:])                # GLU, f32, (T, D)
    pad = dw_kernel // 2
    acc = jnp.zeros((T, D), jnp.float32)
    for kk in range(dw_kernel):                            # depthwise conv: VPU MAC
        shift = kk - pad                                   # out[t] += w[k]*y[t+shift]
        if shift > 0:
            shifted = jnp.concatenate(
                [y[shift:, :], jnp.zeros((shift, D), y.dtype)], axis=0)
        elif shift < 0:
            shifted = jnp.concatenate(
                [jnp.zeros((-shift, D), y.dtype), y[:T + shift, :]], axis=0)
        else:
            shifted = y
        acc = acc + w["w_dw"][kk:kk + 1, :] * shifted
    y = acc + w["b_dw"]
    # TODO(synk): conv-module BatchNorm is the identity here (no trained
    # running statistics exist for a synthetically-initialized model).
    y = _swish(y).astype(bf)
    y = jnp.dot(y, w["w_pw2"], preferred_element_type=jnp.float32) + w["b_pw2"]
    x = x + y

    # ---- 4) half-step feed-forward + final norm ----
    y = _layer_norm(x).astype(bf)
    y = _swish(jnp.dot(y, w["w_ff2a"], preferred_element_type=jnp.float32)
               + w["b_ff2a"]).astype(bf)
    y = jnp.dot(y, w["w_ff2b"], preferred_element_type=jnp.float32) + w["b_ff2b"]
    x = x + 0.5 * y
    x = _layer_norm(x)                                     # "encoded", (T, D)

    # ---- avg_pool1d(kernel_size=T).squeeze(-1) == mean over time ----
    # TODO(synk): pools over all T frames; no valid-length masking for padding.
    pooled = jnp.mean(x, axis=0, keepdims=True).astype(bf)  # (1, D)

    # ---- classification head ----
    return (jnp.dot(pooled, w["w_head"], preferred_element_type=jnp.float32)
            + w["b_head"])                                 # (1, C)


def gigaam_emo_kernel(feats_ref, *rest, num_heads, dw_kernel, weight_names):
    *w_refs, o_ref = rest
    w = {name: ref[...] for name, ref in zip(weight_names, w_refs)}
    logits = _encode_one(feats_ref[0], w, num_heads=num_heads,
                         dw_kernel=dw_kernel,
                         recip=lambda d: pl.reciprocal(d, approx=True))
    o_ref[...] = logits.reshape(1, 1, -1)


def _prepare(features, params):
    """Wrapper-side layout plumbing: (B,F,T)->(B,T,Fpad) bf16; bf16 weights."""
    B, F, T = features.shape
    f_pad = ((F + 127) // 128) * 128
    feats = jnp.transpose(features, (0, 2, 1))
    feats = jnp.pad(feats, ((0, 0), (0, 0), (0, f_pad - F))).astype(jnp.bfloat16)
    w = {}
    for name, val in params.items():
        if name == "w_in":
            val = jnp.pad(val, ((0, f_pad - F), (0, 0)))
        w[name] = val.astype(jnp.bfloat16) if name in MATMUL_WEIGHTS else val
    return feats, w


@functools.partial(jax.jit, static_argnames=("num_heads", "dw_kernel"))
def gigaam_emo_forward(features, params, *, num_heads, dw_kernel):
    """features: (B, F, T) float32 -> logits (B, C) float32."""
    B, F, T = features.shape
    C = params["w_head"].shape[1]
    feats, w = _prepare(features, params)
    weights = [w[n] for n in WEIGHT_NAMES]
    f_pad = feats.shape[-1]

    kernel = functools.partial(
        gigaam_emo_kernel, num_heads=num_heads, dw_kernel=dw_kernel,
        weight_names=WEIGHT_NAMES)

    feats_spec = pl.BlockSpec((1, T, f_pad), lambda b: (b, 0, 0))
    weight_specs = [pl.BlockSpec(x.shape, lambda b, n=x.ndim: (0,) * n)
                    for x in weights]
    out_spec = pl.BlockSpec((1, 1, C), lambda b: (b, 0, 0))

    out = pl.pallas_call(
        kernel,
        out_shape=jax.ShapeDtypeStruct((B, 1, C), jnp.float32),
        grid_spec=pltpu.PrefetchScalarGridSpec(
            num_scalar_prefetch=0,
            grid=(B,),
            in_specs=[feats_spec] + weight_specs,
            out_specs=out_spec),
        compiler_params=pltpu.CompilerParams(
            dimension_semantics=("parallel",),
            vmem_limit_bytes=32 * 1024 * 1024),
    )(feats, *weights)
    return out.reshape(B, C)


def reference_forward(features, params, *, num_heads, dw_kernel):
    feats, w = _prepare(features, params)
    B = feats.shape[0]
    rows = [_encode_one(feats[b], w, num_heads=num_heads, dw_kernel=dw_kernel,
                        recip=lambda d: 1.0 / d)
            for b in range(B)]
    return jnp.concatenate(rows, axis=0)


def init_params(key, *, n_mels, d_model, ff_dim, dw_kernel, num_classes):
    shapes = {
        "w_in": (n_mels, d_model), "b_in": (1, d_model),
        "w_ff1a": (d_model, ff_dim), "b_ff1a": (1, ff_dim),
        "w_ff1b": (ff_dim, d_model), "b_ff1b": (1, d_model),
        "w_qkv": (d_model, 3 * d_model), "b_qkv": (1, 3 * d_model),
        "w_attn_o": (d_model, d_model), "b_attn_o": (1, d_model),
        "w_pw1": (d_model, 2 * d_model), "b_pw1": (1, 2 * d_model),
        "w_dw": (dw_kernel, d_model), "b_dw": (1, d_model),
        "w_pw2": (d_model, d_model), "b_pw2": (1, d_model),
        "w_ff2a": (d_model, ff_dim), "b_ff2a": (1, ff_dim),
        "w_ff2b": (ff_dim, d_model), "b_ff2b": (1, d_model),
        "w_head": (d_model, num_classes), "b_head": (1, num_classes),
    }
    keys = jax.random.split(key, len(WEIGHT_NAMES))
    params = {}
    for k, name in zip(keys, WEIGHT_NAMES):
        shp = shapes[name]
        if name.startswith("b_"):
            params[name] = jnp.zeros(shp, jnp.float32)
        else:
            fan_in = shp[0]
            params[name] = (jax.random.normal(k, shp, jnp.float32)
                            / jnp.sqrt(jnp.float32(fan_in)))
    return params


if __name__ == "__main__":
    # Small, conformer-consistent shapes.
    B, N_MELS, T = 2, 64, 32              # batch, mel bins, time frames
    D, FF, H, K, C = 128, 256, 4, 5, 4    # d_model, ffn dim, heads, dw kernel, emotions

    key = jax.random.PRNGKey(0)
    k_params, k_feat = jax.random.split(key)
    params = init_params(k_params, n_mels=N_MELS, d_model=D, ff_dim=FF,
                         dw_kernel=K, num_classes=C)
    features = jax.random.normal(k_feat, (B, N_MELS, T), jnp.float32)

    logits = gigaam_emo_forward(features, params, num_heads=H, dw_kernel=K)
    logits = jax.block_until_ready(logits)

    ref = jax.block_until_ready(
        reference_forward(features, params, num_heads=H, dw_kernel=K))

    assert logits.shape == (B, C), logits.shape
    assert bool(jnp.all(jnp.isfinite(logits)))
    assert bool(jnp.allclose(logits, ref, atol=2e-2, rtol=2e-2)), (logits, ref)
    print("KERNEL_OK")
</pallas_src>

<mosaic_0001>
module attributes {stable_mosaic.version = 11 : i64} {
  func.func @gigaam_emo_kernel(%arg0: i32, %arg1: memref<1x32x128xbf16, #tpu.memory_space<vmem>>, %arg2: memref<128x128xbf16, #tpu.memory_space<vmem>>, %arg3: memref<1x128xf32, #tpu.memory_space<vmem>>, %arg4: memref<128x256xbf16, #tpu.memory_space<vmem>>, %arg5: memref<1x256xf32, #tpu.memory_space<vmem>>, %arg6: memref<256x128xbf16, #tpu.memory_space<vmem>>, %arg7: memref<1x128xf32, #tpu.memory_space<vmem>>, %arg8: memref<128x384xbf16, #tpu.memory_space<vmem>>, %arg9: memref<1x384xf32, #tpu.memory_space<vmem>>, %arg10: memref<128x128xbf16, #tpu.memory_space<vmem>>, %arg11: memref<1x128xf32, #tpu.memory_space<vmem>>, %arg12: memref<128x256xbf16, #tpu.memory_space<vmem>>, %arg13: memref<1x256xf32, #tpu.memory_space<vmem>>, %arg14: memref<5x128xf32, #tpu.memory_space<vmem>>, %arg15: memref<1x128xf32, #tpu.memory_space<vmem>>, %arg16: memref<128x128xbf16, #tpu.memory_space<vmem>>, %arg17: memref<1x128xf32, #tpu.memory_space<vmem>>, %arg18: memref<128x256xbf16, #tpu.memory_space<vmem>>, %arg19: memref<1x256xf32, #tpu.memory_space<vmem>>, %arg20: memref<256x128xbf16, #tpu.memory_space<vmem>>, %arg21: memref<1x128xf32, #tpu.memory_space<vmem>>, %arg22: memref<128x4xbf16, #tpu.memory_space<vmem>>, %arg23: memref<1x4xf32, #tpu.memory_space<vmem>>, %arg24: memref<1x1x4xf32, #tpu.memory_space<vmem>>) attributes {dimension_semantics = [#tpu.dimension_semantics<parallel>], iteration_bounds = array<i64: 2>, scalar_prefetch = 0 : i64, scratch_operands = 0 : i64, tpu.core_type = #tpu.core_type<tc>, window_params = [{transform_indices = @transform_0, window_bounds = array<i64: 1, 32, 128>}, {pipeline_mode = #tpu.pipeline_mode<synchronous>, transform_indices = @transform_1, window_bounds = array<i64: 128, 128>}, {pipeline_mode = #tpu.pipeline_mode<synchronous>, transform_indices = @transform_2, window_bounds = array<i64: 1, 128>}, {pipeline_mode = #tpu.pipeline_mode<synchronous>, transform_indices = @transform_3, window_bounds = array<i64: 128, 256>}, {pipeline_mode = #tpu.pipeline_mode<synchronous>, transform_indices = @transform_4, window_bounds = array<i64: 1, 256>}, {pipeline_mode = #tpu.pipeline_mode<synchronous>, transform_indices = @transform_5, window_bounds = array<i64: 256, 128>}, {pipeline_mode = #tpu.pipeline_mode<synchronous>, transform_indices = @transform_6, window_bounds = array<i64: 1, 128>}, {pipeline_mode = #tpu.pipeline_mode<synchronous>, transform_indices = @transform_7, window_bounds = array<i64: 128, 384>}, {pipeline_mode = #tpu.pipeline_mode<synchronous>, transform_indices = @transform_8, window_bounds = array<i64: 1, 384>}, {pipeline_mode = #tpu.pipeline_mode<synchronous>, transform_indices = @transform_9, window_bounds = array<i64: 128, 128>}, {pipeline_mode = #tpu.pipeline_mode<synchronous>, transform_indices = @transform_10, window_bounds = array<i64: 1, 128>}, {pipeline_mode = #tpu.pipeline_mode<synchronous>, transform_indices = @transform_11, window_bounds = array<i64: 128, 256>}, {pipeline_mode = #tpu.pipeline_mode<synchronous>, transform_indices = @transform_12, window_bounds = array<i64: 1, 256>}, {pipeline_mode = #tpu.pipeline_mode<synchronous>, transform_indices = @transform_13, window_bounds = array<i64: 5, 128>}, {pipeline_mode = #tpu.pipeline_mode<synchronous>, transform_indices = @transform_14, window_bounds = array<i64: 1, 128>}, {pipeline_mode = #tpu.pipeline_mode<synchronous>, transform_indices = @transform_15, window_bounds = array<i64: 128, 128>}, {pipeline_mode = #tpu.pipeline_mode<synchronous>, transform_indices = @transform_16, window_bounds = array<i64: 1, 128>}, {pipeline_mode = #tpu.pipeline_mode<synchronous>, transform_indices = @transform_17, window_bounds = array<i64: 128, 256>}, {pipeline_mode = #tpu.pipeline_mode<synchronous>, transform_indices = @transform_18, window_bounds = array<i64: 1, 256>}, {pipeline_mode = #tpu.pipeline_mode<synchronous>, transform_indices = @transform_19, window_bounds = array<i64: 256, 128>}, {pipeline_mode = #tpu.pipeline_mode<synchronous>, transform_indices = @transform_20, window_bounds = array<i64: 1, 128>}, {pipeline_mode = #tpu.pipeline_mode<synchronous>, transform_indices = @transform_21, window_bounds = array<i64: 128, 4>}, {pipeline_mode = #tpu.pipeline_mode<synchronous>, transform_indices = @transform_22, window_bounds = array<i64: 1, 4>}, {transform_indices = @transform_23, window_bounds = array<i64: 1, 1, 4>}]} {
    %c0 = arith.constant 0 : index
    %c0_0 = arith.constant 0 : index
    %0 = vector.load %arg2[%c0, %c0_0] : memref<128x128xbf16, #tpu.memory_space<vmem>>, vector<128x128xbf16>
    %c0_1 = arith.constant 0 : index
    %c0_2 = arith.constant 0 : index
    %1 = vector.load %arg3[%c0_1, %c0_2] : memref<1x128xf32, #tpu.memory_space<vmem>>, vector<1x128xf32>
    %c0_3 = arith.constant 0 : index
    %c0_4 = arith.constant 0 : index
    %2 = vector.load %arg4[%c0_3, %c0_4] : memref<128x256xbf16, #tpu.memory_space<vmem>>, vector<128x256xbf16>
    %c0_5 = arith.constant 0 : index
    %c0_6 = arith.constant 0 : index
    %3 = vector.load %arg5[%c0_5, %c0_6] : memref<1x256xf32, #tpu.memory_space<vmem>>, vector<1x256xf32>
    %c0_7 = arith.constant 0 : index
    %c0_8 = arith.constant 0 : index
    %4 = vector.load %arg6[%c0_7, %c0_8] : memref<256x128xbf16, #tpu.memory_space<vmem>>, vector<256x128xbf16>
    %c0_9 = arith.constant 0 : index
    %c0_10 = arith.constant 0 : index
    %5 = vector.load %arg7[%c0_9, %c0_10] : memref<1x128xf32, #tpu.memory_space<vmem>>, vector<1x128xf32>
    %c0_11 = arith.constant 0 : index
    %c0_12 = arith.constant 0 : index
    %6 = vector.load %arg8[%c0_11, %c0_12] : memref<128x384xbf16, #tpu.memory_space<vmem>>, vector<128x384xbf16>
    %c0_13 = arith.constant 0 : index
    %c0_14 = arith.constant 0 : index
    %7 = vector.load %arg9[%c0_13, %c0_14] : memref<1x384xf32, #tpu.memory_space<vmem>>, vector<1x384xf32>
    %c0_15 = arith.constant 0 : index
    %c0_16 = arith.constant 0 : index
    %8 = vector.load %arg10[%c0_15, %c0_16] : memref<128x128xbf16, #tpu.memory_space<vmem>>, vector<128x128xbf16>
    %c0_17 = arith.constant 0 : index
    %c0_18 = arith.constant 0 : index
    %9 = vector.load %arg11[%c0_17, %c0_18] : memref<1x128xf32, #tpu.memory_space<vmem>>, vector<1x128xf32>
    %c0_19 = arith.constant 0 : index
    %c0_20 = arith.constant 0 : index
    %10 = vector.load %arg12[%c0_19, %c0_20] : memref<128x256xbf16, #tpu.memory_space<vmem>>, vector<128x256xbf16>
    %c0_21 = arith.constant 0 : index
    %c0_22 = arith.constant 0 : index
    %11 = vector.load %arg13[%c0_21, %c0_22] : memref<1x256xf32, #tpu.memory_space<vmem>>, vector<1x256xf32>
    %c0_23 = arith.constant 0 : index
    %c0_24 = arith.constant 0 : index
    %12 = vector.load %arg14[%c0_23, %c0_24] : memref<5x128xf32, #tpu.memory_space<vmem>>, vector<5x128xf32>
    %c0_25 = arith.constant 0 : index
    %c0_26 = arith.constant 0 : index
    %13 = vector.load %arg15[%c0_25, %c0_26] : memref<1x128xf32, #tpu.memory_space<vmem>>, vector<1x128xf32>
    %c0_27 = arith.constant 0 : index
    %c0_28 = arith.constant 0 : index
    %14 = vector.load %arg16[%c0_27, %c0_28] : memref<128x128xbf16, #tpu.memory_space<vmem>>, vector<128x128xbf16>
    %c0_29 = arith.constant 0 : index
    %c0_30 = arith.constant 0 : index
    %15 = vector.load %arg17[%c0_29, %c0_30] : memref<1x128xf32, #tpu.memory_space<vmem>>, vector<1x128xf32>
    %c0_31 = arith.constant 0 : index
    %c0_32 = arith.constant 0 : index
    %16 = vector.load %arg18[%c0_31, %c0_32] : memref<128x256xbf16, #tpu.memory_space<vmem>>, vector<128x256xbf16>
    %c0_33 = arith.constant 0 : index
    %c0_34 = arith.constant 0 : index
    %17 = vector.load %arg19[%c0_33, %c0_34] : memref<1x256xf32, #tpu.memory_space<vmem>>, vector<1x256xf32>
    %c0_35 = arith.constant 0 : index
    %c0_36 = arith.constant 0 : index
    %18 = vector.load %arg20[%c0_35, %c0_36] : memref<256x128xbf16, #tpu.memory_space<vmem>>, vector<256x128xbf16>
    %c0_37 = arith.constant 0 : index
    %c0_38 = arith.constant 0 : index
    %19 = vector.load %arg21[%c0_37, %c0_38] : memref<1x128xf32, #tpu.memory_space<vmem>>, vector<1x128xf32>
    %c0_39 = arith.constant 0 : index
    %c0_40 = arith.constant 0 : index
    %20 = vector.load %arg22[%c0_39, %c0_40] : memref<128x4xbf16, #tpu.memory_space<vmem>>, vector<128x4xbf16>
    %c0_41 = arith.constant 0 : index
    %c0_42 = arith.constant 0 : index
    %21 = vector.load %arg23[%c0_41, %c0_42] : memref<1x4xf32, #tpu.memory_space<vmem>>, vector<1x4xf32>
    %c0_43 = arith.constant 0 : index
    %c0_44 = arith.constant 0 : index
    %c0_45 = arith.constant 0 : index
    %22 = vector.load %arg1[%c0_43, %c0_44, %c0_45] : memref<1x32x128xbf16, #tpu.memory_space<vmem>>, vector<1x32x128xbf16>
    %23 = vector.shape_cast %22 : vector<1x32x128xbf16> to vector<32x128xbf16>
    %cst = arith.constant dense<0.000000e+00> : vector<32x128xf32>
    %24 = tpu.matmul %23, %0, %cst {dimension_numbers = #tpu.dot_dimension_numbers<[1], [0], [0], [1], [0, 0, 1, 1], [], []>} : vector<32x128xbf16>, vector<128x128xbf16>, vector<32x128xf32> -> vector<32x128xf32>
    %25 = vector.broadcast %1 : vector<1x128xf32> to vector<32x128xf32>
    %26 = arith.addf %24, %25 : vector<32x128xf32>
    %cst_46 = arith.constant dense<0.000000e+00> : vector<32xf32>
    %27 = vector.multi_reduction <add>, %26, %cst_46 [1] : vector<32x128xf32> to vector<32xf32>
    %28 = vector.shape_cast %27 : vector<32xf32> to vector<32x1xf32>
    %cst_47 = arith.constant 1.280000e+02 : f32
    %29 = vector.broadcast %cst_47 : f32 to vector<32x1xf32>
    %30 = arith.divf %28, %29 : vector<32x1xf32>
    %31 = vector.broadcast %30 : vector<32x1xf32> to vector<32x128xf32>
    %32 = arith.subf %26, %31 : vector<32x128xf32>
    %33 = arith.mulf %32, %32 : vector<32x128xf32>
    %cst_48 = arith.constant dense<0.000000e+00> : vector<32xf32>
    %34 = vector.multi_reduction <add>, %33, %cst_48 [1] : vector<32x128xf32> to vector<32xf32>
    %35 = vector.shape_cast %34 : vector<32xf32> to vector<32x1xf32>
    %cst_49 = arith.constant 1.280000e+02 : f32
    %36 = vector.broadcast %cst_49 : f32 to vector<32x1xf32>
    %37 = arith.divf %35, %36 : vector<32x1xf32>
    %38 = vector.broadcast %30 : vector<32x1xf32> to vector<32x128xf32>
    %39 = arith.subf %26, %38 : vector<32x128xf32>
    %cst_50 = arith.constant 9.99999974E-6 : f32
    %40 = vector.broadcast %cst_50 : f32 to vector<32x1xf32>
    %41 = arith.addf %37, %40 : vector<32x1xf32>
    %42 = math.rsqrt %41 : vector<32x1xf32>
    %43 = vector.broadcast %42 : vector<32x1xf32> to vector<32x128xf32>
    %44 = arith.mulf %39, %43 : vector<32x128xf32>
    %45 = arith.truncf %44 : vector<32x128xf32> to vector<32x128xbf16>
    %cst_51 = arith.constant dense<0.000000e+00> : vector<32x256xf32>
    %46 = tpu.matmul %45, %2, %cst_51 {dimension_numbers = #tpu.dot_dimension_numbers<[1], [0], [0], [1], [0, 0, 1, 1], [], []>} : vector<32x128xbf16>, vector<128x256xbf16>, vector<32x256xf32> -> vector<32x256xf32>
    %47 = vector.broadcast %3 : vector<1x256xf32> to vector<32x256xf32>
    %48 = arith.addf %46, %47 : vector<32x256xf32>
    %49 = arith.negf %48 : vector<32x256xf32>
    %50 = math.exp %49 : vector<32x256xf32>
    %cst_52 = arith.constant 1.000000e+00 : f32
    %51 = vector.broadcast %cst_52 : f32 to vector<32x256xf32>
    %52 = arith.addf %51, %50 : vector<32x256xf32>
    %53 = arith.divf %51, %52 : vector<32x256xf32>
    %54 = arith.mulf %48, %53 : vector<32x256xf32>
    %55 = arith.truncf %54 : vector<32x256xf32> to vector<32x256xbf16>
    %cst_53 = arith.constant dense<0.000000e+00> : vector<32x128xf32>
    %56 = tpu.matmul %55, %4, %cst_53 {dimension_numbers = #tpu.dot_dimension_numbers<[1], [0], [0], [1], [0, 0, 1, 1], [], []>} : vector<32x256xbf16>, vector<256x128xbf16>, vector<32x128xf32> -> vector<32x128xf32>
    %57 = vector.broadcast %5 : vector<1x128xf32> to vector<32x128xf32>
    %58 = arith.addf %56, %57 : vector<32x128xf32>
    %cst_54 = arith.constant 5.000000e-01 : f32
    %59 = vector.broadcast %cst_54 : f32 to vector<32x128xf32>
    %60 = arith.mulf %59, %58 : vector<32x128xf32>
    %61 = arith.addf %26, %60 : vector<32x128xf32>
    %cst_55 = arith.constant dense<0.000000e+00> : vector<32xf32>
    %62 = vector.multi_reduction <add>, %61, %cst_55 [1] : vector<32x128xf32> to vector<32xf32>
    %63 = vector.shape_cast %62 : vector<32xf32> to vector<32x1xf32>
    %cst_56 = arith.constant 1.280000e+02 : f32
    %64 = vector.broadcast %cst_56 : f32 to vector<32x1xf32>
    %65 = arith.divf %63, %64 : vector<32x1xf32>
    %66 = vector.broadcast %65 : vector<32x1xf32> to vector<32x128xf32>
    %67 = arith.subf %61, %66 : vector<32x128xf32>
    %68 = arith.mulf %67, %67 : vector<32x128xf32>
    %cst_57 = arith.constant dense<0.000000e+00> : vector<32xf32>
    %69 = vector.multi_reduction <add>, %68, %cst_57 [1] : vector<32x128xf32> to vector<32xf32>
    %70 = vector.shape_cast %69 : vector<32xf32> to vector<32x1xf32>
    %cst_58 = arith.constant 1.280000e+02 : f32
    %71 = vector.broadcast %cst_58 : f32 to vector<32x1xf32>
    %72 = arith.divf %70, %71 : vector<32x1xf32>
    %73 = vector.broadcast %65 : vector<32x1xf32> to vector<32x128xf32>
    %74 = arith.subf %61, %73 : vector<32x128xf32>
    %cst_59 = arith.constant 9.99999974E-6 : f32
    %75 = vector.broadcast %cst_59 : f32 to vector<32x1xf32>
    %76 = arith.addf %72, %75 : vector<32x1xf32>
    %77 = math.rsqrt %76 : vector<32x1xf32>
    %78 = vector.broadcast %77 : vector<32x1xf32> to vector<32x128xf32>
    %79 = arith.mulf %74, %78 : vector<32x128xf32>
    %80 = arith.truncf %79 : vector<32x128xf32> to vector<32x128xbf16>
    %cst_60 = arith.constant dense<0.000000e+00> : vector<32x384xf32>
    %81 = tpu.matmul %80, %6, %cst_60 {dimension_numbers = #tpu.dot_dimension_numbers<[1], [0], [0], [1], [0, 0, 1, 1], [], []>} : vector<32x128xbf16>, vector<128x384xbf16>, vector<32x384xf32> -> vector<32x384xf32>
    %82 = vector.broadcast %7 : vector<1x384xf32> to vector<32x384xf32>
    %83 = arith.addf %81, %82 : vector<32x384xf32>
    %84 = arith.truncf %83 : vector<32x384xf32> to vector<32x384xbf16>
    %85 = vector.extract_strided_slice %84 {offsets = [0, 0], sizes = [32, 32], strides = [1, 1]} : vector<32x384xbf16> to vector<32x32xbf16>
    %86 = vector.extract_strided_slice %84 {offsets = [0, 32], sizes = [32, 32], strides = [1, 1]} : vector<32x384xbf16> to vector<32x32xbf16>
    %87 = vector.extract_strided_slice %84 {offsets = [0, 64], sizes = [32, 32], strides = [1, 1]} : vector<32x384xbf16> to vector<32x32xbf16>
    %88 = vector.extract_strided_slice %84 {offsets = [0, 96], sizes = [32, 32], strides = [1, 1]} : vector<32x384xbf16> to vector<32x32xbf16>
    %89 = vector.shape_cast %85 : vector<32x32xbf16> to vector<1x32x32xbf16>
    %90 = vector.shape_cast %86 : vector<32x32xbf16> to vector<1x32x32xbf16>
    %91 = vector.shape_cast %87 : vector<32x32xbf16> to vector<1x32x32xbf16>
    %92 = vector.shape_cast %88 : vector<32x32xbf16> to vector<1x32x32xbf16>
    %93 = tpu.concatenate %89, %90, %91, %92 in 0 : vector<1x32x32xbf16>, vector<1x32x32xbf16>, vector<1x32x32xbf16>, vector<1x32x32xbf16> -> vector<4x32x32xbf16>
    %94 = vector.extract_strided_slice %84 {offsets = [0, 128], sizes = [32, 32], strides = [1, 1]} : vector<32x384xbf16> to vector<32x32xbf16>
    %95 = vector.extract_strided_slice %84 {offsets = [0, 160], sizes = [32, 32], strides = [1, 1]} : vector<32x384xbf16> to vector<32x32xbf16>
    %96 = vector.extract_strided_slice %84 {offsets = [0, 192], sizes = [32, 32], strides = [1, 1]} : vector<32x384xbf16> to vector<32x32xbf16>
    %97 = vector.extract_strided_slice %84 {offsets = [0, 224], sizes = [32, 32], strides = [1, 1]} : vector<32x384xbf16> to vector<32x32xbf16>
    %98 = vector.shape_cast %94 : vector<32x32xbf16> to vector<1x32x32xbf16>
    %99 = vector.shape_cast %95 : vector<32x32xbf16> to vector<1x32x32xbf16>
    %100 = vector.shape_cast %96 : vector<32x32xbf16> to vector<1x32x32xbf16>
    %101 = vector.shape_cast %97 : vector<32x32xbf16> to vector<1x32x32xbf16>
    %102 = tpu.concatenate %98, %99, %100, %101 in 0 : vector<1x32x32xbf16>, vector<1x32x32xbf16>, vector<1x32x32xbf16>, vector<1x32x32xbf16> -> vector<4x32x32xbf16>
    %103 = vector.extract_strided_slice %84 {offsets = [0, 256], sizes = [32, 32], strides = [1, 1]} : vector<32x384xbf16> to vector<32x32xbf16>
    %104 = vector.extract_strided_slice %84 {offsets = [0, 288], sizes = [32, 32], strides = [1, 1]} : vector<32x384xbf16> to vector<32x32xbf16>
    %105 = vector.extract_strided_slice %84 {offsets = [0, 320], sizes = [32, 32], strides = [1, 1]} : vector<32x384xbf16> to vector<32x32xbf16>
    %106 = vector.extract_strided_slice %84 {offsets = [0, 352], sizes = [32, 32], strides = [1, 1]} : vector<32x384xbf16> to vector<32x32xbf16>
    %107 = vector.shape_cast %103 : vector<32x32xbf16> to vector<1x32x32xbf16>
    %108 = vector.shape_cast %104 : vector<32x32xbf16> to vector<1x32x32xbf16>
    %109 = vector.shape_cast %105 : vector<32x32xbf16> to vector<1x32x32xbf16>
    %110 = vector.shape_cast %106 : vector<32x32xbf16> to vector<1x32x32xbf16>
    %111 = tpu.concatenate %107, %108, %109, %110 in 0 : vector<1x32x32xbf16>, vector<1x32x32xbf16>, vector<1x32x32xbf16>, vector<1x32x32xbf16> -> vector<4x32x32xbf16>
    "tpu.trace_start"() <{level = 10 : i32, message = "hqd,hkd->hqk"}> : () -> ()
    %cst_61 = arith.constant dense<0.000000e+00> : vector<4x32x32xf32>
    %112 = tpu.matmul %93, %102, %cst_61 {dimension_numbers = #tpu.dot_dimension_numbers<[2], [2], [1], [1], [0, 0, 0, 1, 1, 1], [0], [0]>} : vector<4x32x32xbf16>, vector<4x32x32xbf16>, vector<4x32x32xf32> -> vector<4x32x32xf32>
    "tpu.trace_stop"() : () -> ()
    %cst_62 = arith.constant 0.176776692 : f32
    %113 = vector.broadcast %cst_62 : f32 to vector<4x32x32xf32>
    %114 = arith.mulf %112, %113 : vector<4x32x32xf32>
    %cst_63 = arith.constant dense<0xFF800000> : vector<4x32xf32>
    %115 = vector.multi_reduction <maximumf>, %114, %cst_63 [2] : vector<4x32x32xf32> to vector<4x32xf32>
    %116 = vector.shape_cast %115 : vector<4x32xf32> to vector<4x32x1xf32>
    %117 = vector.broadcast %116 : vector<4x32x1xf32> to vector<4x32x32xf32>
    %118 = arith.subf %114, %117 : vector<4x32x32xf32>
    %119 = math.exp %118 : vector<4x32x32xf32>
    %cst_64 = arith.constant dense<0.000000e+00> : vector<4x32xf32>
    %120 = vector.multi_reduction <add>, %119, %cst_64 [2] : vector<4x32x32xf32> to vector<4x32xf32>
    %121 = vector.shape_cast %120 : vector<4x32xf32> to vector<4x32x1xf32>
    %122 = tpu.reciprocal %121 {approx = true} : vector<4x32x1xf32> -> vector<4x32x1xf32>
    %123 = vector.broadcast %122 : vector<4x32x1xf32> to vector<4x32x32xf32>
    %124 = arith.mulf %119, %123 : vector<4x32x32xf32>
    %125 = arith.truncf %124 : vector<4x32x32xf32> to vector<4x32x32xbf16>
    "tpu.trace_start"() <{level = 10 : i32, message = "hqk,hkd->hqd"}> : () -> ()
    %cst_65 = arith.constant dense<0.000000e+00> : vector<4x32x32xf32>
    %126 = tpu.matmul %125, %111, %cst_65 {dimension_numbers = #tpu.dot_dimension_numbers<[2], [1], [1], [2], [0, 0, 0, 1, 1, 2], [0], [0]>} : vector<4x32x32xbf16>, vector<4x32x32xbf16>, vector<4x32x32xf32> -> vector<4x32x32xf32>
    "tpu.trace_stop"() : () -> ()
    %127 = vector.extract_strided_slice %126 {offsets = [0, 0, 0], sizes = [1, 32, 32], strides = [1, 1, 1]} : vector<4x32x32xf32> to vector<1x32x32xf32>
    %128 = vector.shape_cast %127 : vector<1x32x32xf32> to vector<32x32xf32>
    %129 = vector.extract_strided_slice %126 {offsets = [1, 0, 0], sizes = [1, 32, 32], strides = [1, 1, 1]} : vector<4x32x32xf32> to vector<1x32x32xf32>
    %130 = vector.shape_cast %129 : vector<1x32x32xf32> to vector<32x32xf32>
    %131 = vector.extract_strided_slice %126 {offsets = [2, 0, 0], sizes = [1, 32, 32], strides = [1, 1, 1]} : vector<4x32x32xf32> to vector<1x32x32xf32>
    %132 = vector.shape_cast %131 : vector<1x32x32xf32> to vector<32x32xf32>
    %133 = vector.extract_strided_slice %126 {offsets = [3, 0, 0], sizes = [1, 32, 32], strides = [1, 1, 1]} : vector<4x32x32xf32> to vector<1x32x32xf32>
    %134 = vector.shape_cast %133 : vector<1x32x32xf32> to vector<32x32xf32>
    %135 = tpu.concatenate %128, %130, %132, %134 in 1 : vector<32x32xf32>, vector<32x32xf32>, vector<32x32xf32>, vector<32x32xf32> -> vector<32x128xf32>
    %136 = arith.truncf %135 : vector<32x128xf32> to vector<32x128xbf16>
    %cst_66 = arith.constant dense<0.000000e+00> : vector<32x128xf32>
    %137 = tpu.matmul %136, %8, %cst_66 {dimension_numbers = #tpu.dot_dimension_numbers<[1], [0], [0], [1], [0, 0, 1, 1], [], []>} : vector<32x128xbf16>, vector<128x128xbf16>, vector<32x128xf32> -> vector<32x128xf32>
    %138 = vector.broadcast %9 : vector<1x128xf32> to vector<32x128xf32>
    %139 = arith.addf %137, %138 : vector<32x128xf32>
    %140 = arith.addf %61, %139 : vector<32x128xf32>
    %cst_67 = arith.constant dense<0.000000e+00> : vector<32xf32>
    %141 = vector.multi_reduction <add>, %140, %cst_67 [1] : vector<32x128xf32> to vector<32xf32>
    %142 = vector.shape_cast %141 : vector<32xf32> to vector<32x1xf32>
    %cst_68 = arith.constant 1.280000e+02 : f32
    %143 = vector.broadcast %cst_68 : f32 to vector<32x1xf32>
    %144 = arith.divf %142, %143 : vector<32x1xf32>
    %145 = vector.broadcast %144 : vector<32x1xf32> to vector<32x128xf32>
    %146 = arith.subf %140, %145 : vector<32x128xf32>
    %147 = arith.mulf %146, %146 : vector<32x128xf32>
    %cst_69 = arith.constant dense<0.000000e+00> : vector<32xf32>
    %148 = vector.multi_reduction <add>, %147, %cst_69 [1] : vector<32x128xf32> to vector<32xf32>
    %149 = vector.shape_cast %148 : vector<32xf32> to vector<32x1xf32>
    %cst_70 = arith.constant 1.280000e+02 : f32
    %150 = vector.broadcast %cst_70 : f32 to vector<32x1xf32>
    %151 = arith.divf %149, %150 : vector<32x1xf32>
    %152 = vector.broadcast %144 : vector<32x1xf32> to vector<32x128xf32>
    %153 = arith.subf %140, %152 : vector<32x128xf32>
    %cst_71 = arith.constant 9.99999974E-6 : f32
    %154 = vector.broadcast %cst_71 : f32 to vector<32x1xf32>
    %155 = arith.addf %151, %154 : vector<32x1xf32>
    %156 = math.rsqrt %155 : vector<32x1xf32>
    %157 = vector.broadcast %156 : vector<32x1xf32> to vector<32x128xf32>
    %158 = arith.mulf %153, %157 : vector<32x128xf32>
    %159 = arith.truncf %158 : vector<32x128xf32> to vector<32x128xbf16>
    %cst_72 = arith.constant dense<0.000000e+00> : vector<32x256xf32>
    %160 = tpu.matmul %159, %10, %cst_72 {dimension_numbers = #tpu.dot_dimension_numbers<[1], [0], [0], [1], [0, 0, 1, 1], [], []>} : vector<32x128xbf16>, vector<128x256xbf16>, vector<32x256xf32> -> vector<32x256xf32>
    %161 = vector.broadcast %11 : vector<1x256xf32> to vector<32x256xf32>
    %162 = arith.addf %160, %161 : vector<32x256xf32>
    %163 = vector.extract_strided_slice %162 {offsets = [0, 0], sizes = [32, 128], strides = [1, 1]} : vector<32x256xf32> to vector<32x128xf32>
    %164 = vector.extract_strided_slice %162 {offsets = [0, 128], sizes = [32, 128], strides = [1, 1]} : vector<32x256xf32> to vector<32x128xf32>
    %165 = arith.negf %164 : vector<32x128xf32>
    %166 = math.exp %165 : vector<32x128xf32>
    %cst_73 = arith.constant 1.000000e+00 : f32
    %167 = vector.broadcast %cst_73 : f32 to vector<32x128xf32>
    %168 = arith.addf %167, %166 : vector<32x128xf32>
    %169 = arith.divf %167, %168 : vector<32x128xf32>
    %170 = arith.mulf %163, %169 : vector<32x128xf32>
    %cst_74 = arith.constant 0.000000e+00 : f32
    %171 = vector.broadcast %cst_74 : f32 to vector<32x128xf32>
    %cst_75 = arith.constant 0.000000e+00 : f32
    %172 = vector.broadcast %cst_75 : f32 to vector<2x128xf32>
    %173 = vector.extract_strided_slice %170 {offsets = [0, 0], sizes = [30, 128], strides = [1, 1]} : vector<32x128xf32> to vector<30x128xf32>
    %174 = tpu.concatenate %172, %173 in 0 : vector<2x128xf32>, vector<30x128xf32> -> vector<32x128xf32>
    %175 = vector.extract_strided_slice %12 {offsets = [0, 0], sizes = [1, 128], strides = [1, 1]} : vector<5x128xf32> to vector<1x128xf32>
    %176 = vector.broadcast %175 : vector<1x128xf32> to vector<32x128xf32>
    %177 = arith.mulf %176, %174 : vector<32x128xf32>
    %178 = arith.addf %171, %177 : vector<32x128xf32>
    %cst_76 = arith.constant 0.000000e+00 : f32
    %179 = vector.broadcast %cst_76 : f32 to vector<1x128xf32>
    %180 = vector.extract_strided_slice %170 {offsets = [0, 0], sizes = [31, 128], strides = [1, 1]} : vector<32x128xf32> to vector<31x128xf32>
    %181 = tpu.concatenate %179, %180 in 0 : vector<1x128xf32>, vector<31x128xf32> -> vector<32x128xf32>
    %182 = vector.extract_strided_slice %12 {offsets = [1, 0], sizes = [1, 128], strides = [1, 1]} : vector<5x128xf32> to vector<1x128xf32>
    %183 = vector.broadcast %182 : vector<1x128xf32> to vector<32x128xf32>
    %184 = arith.mulf %183, %181 : vector<32x128xf32>
    %185 = arith.addf %178, %184 : vector<32x128xf32>
    %186 = vector.extract_strided_slice %12 {offsets = [2, 0], sizes = [1, 128], strides = [1, 1]} : vector<5x128xf32> to vector<1x128xf32>
    %187 = vector.broadcast %186 : vector<1x128xf32> to vector<32x128xf32>
    %188 = arith.mulf %187, %170 : vector<32x128xf32>
    %189 = arith.addf %185, %188 : vector<32x128xf32>
    %190 = vector.extract_strided_slice %170 {offsets = [1, 0], sizes = [31, 128], strides = [1, 1]} : vector<32x128xf32> to vector<31x128xf32>
    %cst_77 = arith.constant 0.000000e+00 : f32
    %191 = vector.broadcast %cst_77 : f32 to vector<1x128xf32>
    %192 = tpu.concatenate %190, %191 in 0 : vector<31x128xf32>, vector<1x128xf32> -> vector<32x128xf32>
    %193 = vector.extract_strided_slice %12 {offsets = [3, 0], sizes = [1, 128], strides = [1, 1]} : vector<5x128xf32> to vector<1x128xf32>
    %194 = vector.broadcast %193 : vector<1x128xf32> to vector<32x128xf32>
    %195 = arith.mulf %194, %192 : vector<32x128xf32>
    %196 = arith.addf %189, %195 : vector<32x128xf32>
    %197 = vector.extract_strided_slice %170 {offsets = [2, 0], sizes = [30, 128], strides = [1, 1]} : vector<32x128xf32> to vector<30x128xf32>
    %cst_78 = arith.constant 0.000000e+00 : f32
    %198 = vector.broadcast %cst_78 : f32 to vector<2x128xf32>
    %199 = tpu.concatenate %197, %198 in 0 : vector<30x128xf32>, vector<2x128xf32> -> vector<32x128xf32>
    %200 = vector.extract_strided_slice %12 {offsets = [4, 0], sizes = [1, 128], strides = [1, 1]} : vector<5x128xf32> to vector<1x128xf32>
    %201 = vector.broadcast %200 : vector<1x128xf32> to vector<32x128xf32>
    %202 = arith.mulf %201, %199 : vector<32x128xf32>
    %203 = arith.addf %196, %202 : vector<32x128xf32>
    %204 = vector.broadcast %13 : vector<1x128xf32> to vector<32x128xf32>
    %205 = arith.addf %203, %204 : vector<32x128xf32>
    %206 = arith.negf %205 : vector<32x128xf32>
    %207 = math.exp %206 : vector<32x128xf32>
    %cst_79 = arith.constant 1.000000e+00 : f32
    %208 = vector.broadcast %cst_79 : f32 to vector<32x128xf32>
    %209 = arith.addf %208, %207 : vector<32x128xf32>
    %210 = arith.divf %208, %209 : vector<32x128xf32>
    %211 = arith.mulf %205, %210 : vector<32x128xf32>
    %212 = arith.truncf %211 : vector<32x128xf32> to vector<32x128xbf16>
    %cst_80 = arith.constant dense<0.000000e+00> : vector<32x128xf32>
    %213 = tpu.matmul %212, %14, %cst_80 {dimension_numbers = #tpu.dot_dimension_numbers<[1], [0], [0], [1], [0, 0, 1, 1], [], []>} : vector<32x128xbf16>, vector<128x128xbf16>, vector<32x128xf32> -> vector<32x128xf32>
    %214 = vector.broadcast %15 : vector<1x128xf32> to vector<32x128xf32>
    %215 = arith.addf %213, %214 : vector<32x128xf32>
    %216 = arith.addf %140, %215 : vector<32x128xf32>
    %cst_81 = arith.constant dense<0.000000e+00> : vector<32xf32>
    %217 = vector.multi_reduction <add>, %216, %cst_81 [1] : vector<32x128xf32> to vector<32xf32>
    %218 = vector.shape_cast %217 : vector<32xf32> to vector<32x1xf32>
    %cst_82 = arith.constant 1.280000e+02 : f32
    %219 = vector.broadcast %cst_82 : f32 to vector<32x1xf32>
    %220 = arith.divf %218, %219 : vector<32x1xf32>
    %221 = vector.broadcast %220 : vector<32x1xf32> to vector<32x128xf32>
    %222 = arith.subf %216, %221 : vector<32x128xf32>
    %223 = arith.mulf %222, %222 : vector<32x128xf32>
    %cst_83 = arith.constant dense<0.000000e+00> : vector<32xf32>
    %224 = vector.multi_reduction <add>, %223, %cst_83 [1] : vector<32x128xf32> to vector<32xf32>
    %225 = vector.shape_cast %224 : vector<32xf32> to vector<32x1xf32>
    %cst_84 = arith.constant 1.280000e+02 : f32
    %226 = vector.broadcast %cst_84 : f32 to vector<32x1xf32>
    %227 = arith.divf %225, %226 : vector<32x1xf32>
    %228 = vector.broadcast %220 : vector<32x1xf32> to vector<32x128xf32>
    %229 = arith.subf %216, %228 : vector<32x128xf32>
    %cst_85 = arith.constant 9.99999974E-6 : f32
    %230 = vector.broadcast %cst_85 : f32 to vector<32x1xf32>
    %231 = arith.addf %227, %230 : vector<32x1xf32>
    %232 = math.rsqrt %231 : vector<32x1xf32>
    %233 = vector.broadcast %232 : vector<32x1xf32> to vector<32x128xf32>
    %234 = arith.mulf %229, %233 : vector<32x128xf32>
    %235 = arith.truncf %234 : vector<32x128xf32> to vector<32x128xbf16>
    %cst_86 = arith.constant dense<0.000000e+00> : vector<32x256xf32>
    %236 = tpu.matmul %235, %16, %cst_86 {dimension_numbers = #tpu.dot_dimension_numbers<[1], [0], [0], [1], [0, 0, 1, 1], [], []>} : vector<32x128xbf16>, vector<128x256xbf16>, vector<32x256xf32> -> vector<32x256xf32>
    %237 = vector.broadcast %17 : vector<1x256xf32> to vector<32x256xf32>
    %238 = arith.addf %236, %237 : vector<32x256xf32>
    %239 = arith.negf %238 : vector<32x256xf32>
    %240 = math.exp %239 : vector<32x256xf32>
    %cst_87 = arith.constant 1.000000e+00 : f32
    %241 = vector.broadcast %cst_87 : f32 to vector<32x256xf32>
    %242 = arith.addf %241, %240 : vector<32x256xf32>
    %243 = arith.divf %241, %242 : vector<32x256xf32>
    %244 = arith.mulf %238, %243 : vector<32x256xf32>
    %245 = arith.truncf %244 : vector<32x256xf32> to vector<32x256xbf16>
    %cst_88 = arith.constant dense<0.000000e+00> : vector<32x128xf32>
    %246 = tpu.matmul %245, %18, %cst_88 {dimension_numbers = #tpu.dot_dimension_numbers<[1], [0], [0], [1], [0, 0, 1, 1], [], []>} : vector<32x256xbf16>, vector<256x128xbf16>, vector<32x128xf32> -> vector<32x128xf32>
    %247 = vector.broadcast %19 : vector<1x128xf32> to vector<32x128xf32>
    %248 = arith.addf %246, %247 : vector<32x128xf32>
    %cst_89 = arith.constant 5.000000e-01 : f32
    %249 = vector.broadcast %cst_89 : f32 to vector<32x128xf32>
    %250 = arith.mulf %249, %248 : vector<32x128xf32>
    %251 = arith.addf %216, %250 : vector<32x128xf32>
    %cst_90 = arith.constant dense<0.000000e+00> : vector<32xf32>
    %252 = vector.multi_reduction <add>, %251, %cst_90 [1] : vector<32x128xf32> to vector<32xf32>
    %253 = vector.shape_cast %252 : vector<32xf32> to vector<32x1xf32>
    %cst_91 = arith.constant 1.280000e+02 : f32
    %254 = vector.broadcast %cst_91 : f32 to vector<32x1xf32>
    %255 = arith.divf %253, %254 : vector<32x1xf32>
    %256 = vector.broadcast %255 : vector<32x1xf32> to vector<32x128xf32>
    %257 = arith.subf %251, %256 : vector<32x128xf32>
    %258 = arith.mulf %257, %257 : vector<32x128xf32>
    %cst_92 = arith.constant dense<0.000000e+00> : vector<32xf32>
    %259 = vector.multi_reduction <add>, %258, %cst_92 [1] : vector<32x128xf32> to vector<32xf32>
    %260 = vector.shape_cast %259 : vector<32xf32> to vector<32x1xf32>
    %cst_93 = arith.constant 1.280000e+02 : f32
    %261 = vector.broadcast %cst_93 : f32 to vector<32x1xf32>
    %262 = arith.divf %260, %261 : vector<32x1xf32>
    %263 = vector.broadcast %255 : vector<32x1xf32> to vector<32x128xf32>
    %264 = arith.subf %251, %263 : vector<32x128xf32>
    %cst_94 = arith.constant 9.99999974E-6 : f32
    %265 = vector.broadcast %cst_94 : f32 to vector<32x1xf32>
    %266 = arith.addf %262, %265 : vector<32x1xf32>
    %267 = math.rsqrt %266 : vector<32x1xf32>
    %268 = vector.broadcast %267 : vector<32x1xf32> to vector<32x128xf32>
    %269 = arith.mulf %264, %268 : vector<32x128xf32>
    %cst_95 = arith.constant dense<0.000000e+00> : vector<128xf32>
    %270 = vector.multi_reduction <add>, %269, %cst_95 [0] : vector<32x128xf32> to vector<128xf32>
    %271 = vector.shape_cast %270 : vector<128xf32> to vector<1x128xf32>
    %cst_96 = arith.constant 3.200000e+01 : f32
    %272 = vector.broadcast %cst_96 : f32 to vector<1x128xf32>
    %273 = arith.divf %271, %272 : vector<1x128xf32>
    %274 = arith.truncf %273 : vector<1x128xf32> to vector<1x128xbf16>
    %cst_97 = arith.constant dense<0.000000e+00> : vector<1x4xf32>
    %275 = tpu.matmul %274, %20, %cst_97 {dimension_numbers = #tpu.dot_dimension_numbers<[1], [0], [0], [1], [0, 0, 1, 1], [], []>} : vector<1x128xbf16>, vector<128x4xbf16>, vector<1x4xf32> -> vector<1x4xf32>
    %276 = arith.addf %275, %21 : vector<1x4xf32>
    %277 = vector.shape_cast %276 : vector<1x4xf32> to vector<1x1x4xf32>
    %c0_98 = arith.constant 0 : index
    %c0_99 = arith.constant 0 : index
    %c0_100 = arith.constant 0 : index
    %278 = vector.load %arg24[%c0_98, %c0_99, %c0_100] : memref<1x1x4xf32, #tpu.memory_space<vmem>>, vector<1x1x4xf32>
    tpu.vector_store %arg24[%c0_98, %c0_99, %c0_100], %277 {strides = array<i32>} : memref<1x1x4xf32, #tpu.memory_space<vmem>>, vector<1x1x4xf32>,
    return
  }
  func.func @transform_0(%arg0: i32) -> (i32, i32, i32) {
    %c0_i32 = arith.constant 0 : i32
    %c0_i32_0 = arith.constant 0 : i32
    %c0_i32_1 = arith.constant 0 : i32
    return %arg0, %c0_i32, %c0_i32_0 : i32, i32, i32
  }
  func.func @transform_1(%arg0: i32) -> (i32, i32) {
    %c0_i32 = arith.constant 0 : i32
    %c0_i32_0 = arith.constant 0 : i32
    %c0_i32_1 = arith.constant 0 : i32
    return %c0_i32, %c0_i32_0 : i32, i32
  }
  func.func @transform_2(%arg0: i32) -> (i32, i32) {
    %c0_i32 = arith.constant 0 : i32
    %c0_i32_0 = arith.constant 0 : i32
    %c0_i32_1 = arith.constant 0 : i32
    return %c0_i32, %c0_i32_0 : i32, i32
  }
  func.func @transform_3(%arg0: i32) -> (i32, i32) {
    %c0_i32 = arith.constant 0 : i32
    %c0_i32_0 = arith.constant 0 : i32
    %c0_i32_1 = arith.constant 0 : i32
    return %c0_i32, %c0_i32_0 : i32, i32
  }
  func.func @transform_4(%arg0: i32) -> (i32, i32) {
    %c0_i32 = arith.constant 0 : i32
    %c0_i32_0 = arith.constant 0 : i32
    %c0_i32_1 = arith.constant 0 : i32
    return %c0_i32, %c0_i32_0 : i32, i32
  }
  func.func @transform_5(%arg0: i32) -> (i32, i32) {
    %c0_i32 = arith.constant 0 : i32
    %c0_i32_0 = arith.constant 0 : i32
    %c0_i32_1 = arith.constant 0 : i32
    return %c0_i32, %c0_i32_0 : i32, i32
  }
  func.func @transform_6(%arg0: i32) -> (i32, i32) {
    %c0_i32 = arith.constant 0 : i32
    %c0_i32_0 = arith.constant 0 : i32
    %c0_i32_1 = arith.constant 0 : i32
    return %c0_i32, %c0_i32_0 : i32, i32
  }
  func.func @transform_7(%arg0: i32) -> (i32, i32) {
    %c0_i32 = arith.constant 0 : i32
    %c0_i32_0 = arith.constant 0 : i32
    %c0_i32_1 = arith.constant 0 : i32
    return %c0_i32, %c0_i32_0 : i32, i32
  }
  func.func @transform_8(%arg0: i32) -> (i32, i32) {
    %c0_i32 = arith.constant 0 : i32
    %c0_i32_0 = arith.constant 0 : i32
    %c0_i32_1 = arith.constant 0 : i32
    return %c0_i32, %c0_i32_0 : i32, i32
  }
  func.func @transform_9(%arg0: i32) -> (i32, i32) {
    %c0_i32 = arith.constant 0 : i32
    %c0_i32_0 = arith.constant 0 : i32
    %c0_i32_1 = arith.constant 0 : i32
    return %c0_i32, %c0_i32_0 : i32, i32
  }
  func.func @transform_10(%arg0: i32) -> (i32, i32) {
    %c0_i32 = arith.constant 0 : i32
    %c0_i32_0 = arith.constant 0 : i32
    %c0_i32_1 = arith.constant 0 : i32
    return %c0_i32, %c0_i32_0 : i32, i32
  }
  func.func @transform_11(%arg0: i32) -> (i32, i32) {
    %c0_i32 = arith.constant 0 : i32
    %c0_i32_0 = arith.constant 0 : i32
    %c0_i32_1 = arith.constant 0 : i32
    return %c0_i32, %c0_i32_0 : i32, i32
  }
  func.func @transform_12(%arg0: i32) -> (i32, i32) {
    %c0_i32 = arith.constant 0 : i32
    %c0_i32_0 = arith.constant 0 : i32
    %c0_i32_1 = arith.constant 0 : i32
    return %c0_i32, %c0_i32_0 : i32, i32
  }
  func.func @transform_13(%arg0: i32) -> (i32, i32) {
    %c0_i32 = arith.constant 0 : i32
    %c0_i32_0 = arith.constant 0 : i32
    %c0_i32_1 = arith.constant 0 : i32
    return %c0_i32, %c0_i32_0 : i32, i32
  }
  func.func @transform_14(%arg0: i32) -> (i32, i32) {
    %c0_i32 = arith.constant 0 : i32
    %c0_i32_0 = arith.constant 0 : i32
    %c0_i32_1 = arith.constant 0 : i32
    return %c0_i32, %c0_i32_0 : i32, i32
  }
  func.func @transform_15(%arg0: i32) -> (i32, i32) {
    %c0_i32 = arith.constant 0 : i32
    %c0_i32_0 = arith.constant 0 : i32
    %c0_i32_1 = arith.constant 0 : i32
    return %c0_i32, %c0_i32_0 : i32, i32
  }
  func.func @transform_16(%arg0: i32) -> (i32, i32) {
    %c0_i32 = arith.constant 0 : i32
    %c0_i32_0 = arith.constant 0 : i32
    %c0_i32_1 = arith.constant 0 : i32
    return %c0_i32, %c0_i32_0 : i32, i32
  }
  func.func @transform_17(%arg0: i32) -> (i32, i32) {
    %c0_i32 = arith.constant 0 : i32
    %c0_i32_0 = arith.constant 0 : i32
    %c0_i32_1 = arith.constant 0 : i32
    return %c0_i32, %c0_i32_0 : i32, i32
  }
  func.func @transform_18(%arg0: i32) -> (i32, i32) {
    %c0_i32 = arith.constant 0 : i32
    %c0_i32_0 = arith.constant 0 : i32
    %c0_i32_1 = arith.constant 0 : i32
    return %c0_i32, %c0_i32_0 : i32, i32
  }
  func.func @transform_19(%arg0: i32) -> (i32, i32) {
    %c0_i32 = arith.constant 0 : i32
    %c0_i32_0 = arith.constant 0 : i32
    %c0_i32_1 = arith.constant 0 : i32
    return %c0_i32, %c0_i32_0 : i32, i32
  }
  func.func @transform_20(%arg0: i32) -> (i32, i32) {
    %c0_i32 = arith.constant 0 : i32
    %c0_i32_0 = arith.constant 0 : i32
    %c0_i32_1 = arith.constant 0 : i32
    return %c0_i32, %c0_i32_0 : i32, i32
  }
  func.func @transform_21(%arg0: i32) -> (i32, i32) {
    %c0_i32 = arith.constant 0 : i32
    %c0_i32_0 = arith.constant 0 : i32
    %c0_i32_1 = arith.constant 0 : i32
    return %c0_i32, %c0_i32_0 : i32, i32
  }
  func.func @transform_22(%arg0: i32) -> (i32, i32) {
    %c0_i32 = arith.constant 0 : i32
    %c0_i32_0 = arith.constant 0 : i32
    %c0_i32_1 = arith.constant 0 : i32
    return %c0_i32, %c0_i32_0 : i32, i32
  }
  func.func @transform_23(%arg0: i32) -> (i32, i32, i32) {
    %c0_i32 = arith.constant 0 : i32
    %c0_i32_0 = arith.constant 0 : i32
    %c0_i32_1 = arith.constant 0 : i32
    return %arg0, %c0_i32, %c0_i32_0 : i32, i32, i32
  }
}

</mosaic_0001>

<bundles_post_ra>
// kernel: gigaam_emo_forward.1
= control target key start
LH: loop header
LB: loop body
LE: loop exit
PB: predicated region body
PF: predicated region fallthrough
CT: control target
= control target key end

     0   :  { %s6710_s0 = inlined_call_operand.vmem [shape: bf16[2,32,128], index: 0, kind: input, shape index: {}]   ;;  %s6711_s1 = inlined_call_operand.vmem [shape: bf16[128,128], index: 1, kind: input, shape index: {}]   ;;  %s6712_s2 = inlined_call_operand.vmem [shape: f32[1,128], index: 2, kind: input, shape index: {}]   ;;  %s6713_s3 = inlined_call_operand.vmem [shape: bf16[128,256], index: 3, kind: input, shape index: {}]   ;;  %s6714_s4 = inlined_call_operand.vmem [shape: f32[1,256], index: 4, kind: input, shape index: {}]   ;;  %s6715_s5 = inlined_call_operand.vmem [shape: bf16[256,128], index: 5, kind: input, shape index: {}]   ;;  %s6716_s6 = inlined_call_operand.vmem [shape: f32[1,128], index: 6, kind: input, shape index: {}]   ;;  %s6717_s7 = inlined_call_operand.vmem [shape: bf16[128,384], index: 7, kind: input, shape index: {}]   ;;  %s6718_s8 = inlined_call_operand.vmem [shape: f32[1,384], index: 8, kind: input, shape index: {}]   ;;  %s6719_s9 = inlined_call_operand.vmem [shape: bf16[128,128], index: 9, kind: input, shape index: {}]   ;;  %s6720_s10 = inlined_call_operand.vmem [shape: f32[1,128], index: 10, kind: input, shape index: {}]   ;;  %s6721_s11 = inlined_call_operand.vmem [shape: bf16[128,256], index: 11, kind: input, shape index: {}]   ;;  %s6722_s12 = inlined_call_operand.vmem [shape: f32[1,256], index: 12, kind: input, shape index: {}]   ;;  %s6723_s13 = inlined_call_operand.vmem [shape: f32[5,128], index: 13, kind: input, shape index: {}]   ;;  %s6724_s14 = inlined_call_operand.vmem [shape: f32[1,128], index: 14, kind: input, shape index: {}]   ;;  %s6725_s15 = inlined_call_operand.vmem [shape: bf16[128,128], index: 15, kind: input, shape index: {}]   ;;  %s6726_s16 = inlined_call_operand.vmem [shape: f32[1,128], index: 16, kind: input, shape index: {}]   ;;  %s6727_s17 = inlined_call_operand.vmem [shape: bf16[128,256], index: 17, kind: input, shape index: {}]   ;;  %s6728_s18 = inlined_call_operand.vmem [shape: f32[1,256], index: 18, kind: input, shape index: {}]   ;;  %s6729_s19 = inlined_call_operand.vmem [shape: bf16[256,128], index: 19, kind: input, shape index: {}]   ;;  %s6730_s20 = inlined_call_operand.vmem [shape: f32[1,128], index: 20, kind: input, shape index: {}]   ;;  %s6731_s21 = inlined_call_operand.vmem [shape: bf16[128,4], index: 21, kind: input, shape index: {}]   ;;  %s6732_s22 = inlined_call_operand.vmem [shape: f32[1,4], index: 22, kind: input, shape index: {}]   ;;  %s6733_s23 = inlined_call_operand.hbm [shape: f32[2,1,4], index: 23, kind: output, shape index: {}]  }
   0x1   :  { %6749 = sst [smem:[#allocation12_spill]] %s6710_s0 }
   0x2   :  { %6750 = sst [smem:[#allocation13_spill]] %s6711_s1 }
   0x3   :  { %6751 = sst [smem:[#allocation14_spill]] %s6712_s2 }
   0x4   :  { %6752 = sst [smem:[#allocation15_spill]] %s6713_s3 }
   0x5   :  { %6753 = sst [smem:[#allocation16_spill]] %s6714_s4 }
   0x6   :  { %6754 = sst [smem:[#allocation17_spill]] %s6715_s5 }
   0x7   :  { %6755 = sst [smem:[#allocation18_spill]] %s6716_s6 }
   0x8   :  { %6756 = sst [smem:[#allocation19_spill]] %s6717_s7 }
   0x9   :  { %6757 = sst [smem:[#allocation20_spill]] %s6718_s8 }
   0xa   :  { %6758 = sst [smem:[#allocation21_spill]] %s6732_s22 }
   0xb   :  { %28 = vsyncpa [#allocation3], 0 }
   0xc   :  { %30 = vsyncpa [#allocation3 + $0x1], 0  ;;  %s5085_s4 = smov 0   ;;  %s5087_s30 = smov 0  }
   0xd   :  { %s5089_s24 = smov 0   ;;  %s5091_s25 = smov 0  }
   0xe LB: > { %6759 = sst [smem:[#allocation5_spill]] %s4946_s4  ;;  %s5106_s5 = sadd.s32 4294967295, %s4958_s25   ;;  %s4958_s25 = sphi %s5091_s25, %s6814_s25   ;;  %s4954_s24 = sphi %s5089_s24, %s6816_s24   ;;  %s4950_s30 = sphi %s5087_s30, %s6818_s30   ;;  %s4946_s4 = sphi %s5085_s4, %s6817_s4  }
   0xf   : > { %6760 = sst [smem:[#allocation6_spill]] %s4954_s24  ;;  %s3873_s1 = sadd.s32 4294967294, %s4958_s25  }
  0x10   : > { %6761 = sst [smem:[#allocation7_spill]] %s4958_s25  ;;  %s5110_s26 = sadd.s32 1, %s4958_s25  }
  0x11   : > { %6762 = sst [smem:[#allocation8_spill]] %s5110_s26  ;;  %s531_s2 = sadd.s32 1, %s4954_s24 }
  0x12   : > { %s528_s6 = ssub.s32 %s4958_s25, %s5110_s26  ;;  %p541_p0 = scmp.ne.s32.totalorder %s4954_s24, %s4950_s30 }
  0x13   : > { %p529_p1 = scmp.eq.s32.totalorder %s528_s6, 0  ;;  %p542_p2 = scmp.eq.s32.totalorder %s5106_s5, 1 }
  0x14   : > { %p547_p3 = scmp.ne.s32.totalorder %s4950_s30, %s4946_s4  ;;  %p548_p4 = scmp.eq.s32.totalorder %s3873_s1, 1 }
  0x15   : > { %s5121_s27 = scalar_select %p529_p1, %s4954_s24, %s531_s2  }
  0x16   : > { %p5123_p5 = por %p542_p2, %p541_p0  ;;  %p5127_p6 = por %p548_p4, %p547_p3 }
  0x17   : > { %6763 = sst [smem:[#allocation9_spill]] %s5121_s27  ;;  %p3876_p7 = scmp.ge.s32.totalorder %s4958_s25, 1 }
  0x18   : > { %s6764_s7 = scalar_select %p5123_p5, 1, 0 }
  0x19   : > { %s6766_s28 = scalar_select %p5127_p6, 1, 0 }
  0x1a   : > { %6765 = sst [smem:[#allocation10_spill]] %s6764_s7  ;;  %p640_p8 = scmp.lt.s32.totalorder %s4958_s25, 3 }
  0x1b   : > { %6767 = sst [smem:[#allocation11_spill]] %s6766_s28 }
  0x1c   : > { %p641_p9 = pnand %p3876_p7, %p640_p8 }
  0x1d   : > { %s6768_s0 = sld [smem:[#allocation13_spill]] (!%p641_p9)  ;;  %p703_p10 = scmp.lt.s32.totalorder (!%p641_p9), %s5106_s5, 1 }
  0x1e   : > { %644 = sbr.rel (%p641_p9) target bundleno = 3918 (0xf4e), region = 112  ;;  %s6769_s25 = sld [smem:[#allocation12_spill]] (!%p641_p9) }
  0x1f   : > { %s6770_s22 = sld [smem:[#allocation14_spill]] (!%p641_p9)  ;;  %s4962_s27 = smov (!%p641_p9), 64  }
  0x20   : > { %s6773_s26 = sld [smem:[#allocation17_spill]] (!%p641_p9)  ;;  %s4963_s6 = smov (!%p641_p9), 96  }
  0x21   : > { %s6774_s24 = sld [smem:[#allocation16_spill]] (!%p641_p9)  ;;  %s701_s1 = sand.u32 (!%p641_p9), 1, %s4950_s30  }
  0x22   : > { %s6789_s28 = sld [smem:[#allocation18_spill]] (!%p641_p9) }
  0x23   : > { %v4481_v0 = vld [vmem:[%s6768_s0 + $0x38] sm:$0xff]  ;;  %v4480_v1 = vld [vmem:[%s6768_s0 + $0x30] sm:$0xff]  ;;  %v4479_v2 = vld [vmem:[%s6768_s0 + $0x28] sm:$0xff]  ;;  %s704_s2 = scalar_select %p703_p10, %s5106_s5, 1  ;;  %v4960_v19 = vmov 128.0  }
  0x24   : > { %996 = vmatpush.bf16.msra.mxu0 %v4481_v0  ;;  %v4478_v3 = vld [vmem:[%s6768_s0 + $0x20] sm:$0xff]  ;;  %v4477_v4 = vld [vmem:[%s6768_s0 + $0x18] sm:$0xff]  ;;  %v4476_v5 = vld [vmem:[%s6768_s0 + $0x10] sm:$0xff]  ;;  %4692 = vrcp.f32 %v4960_v19  ;;  %s6792_s8 = sld [smem:[#allocation20_spill]] }
  0x25   : > { %v4475_v6 = vld [vmem:[%s6768_s0 + $0x8] sm:$0xff]  ;;  %s4473_s4 = sshll.u32 %s704_s2, 4  ;;  %v4474_v7 = vld [vmem:[%s6768_s0] sm:$0xff]  ;;  %s6809_s0 = sld [smem:[#allocation21_spill]] }
  0x26   : > { %s707_s7 = scalar_lea.vmem %s6769_s25, %s4473_s4  ;;  %v4686_v10 = vld [vmem:[%s6770_s22] ss:$0 sm:$0xff]  ;;  %s6771_s25 = sld [smem:[#allocation15_spill]] }
  0x27   : > { %v4610_v8 = vld [vmem:[%s707_s7] sm:$0xff]  ;;  %v4611_v9 = vld [vmem:[%s707_s7 + $0x8] sm:$0xff]  ;;  %s6790_s4 = sld [smem:[#allocation19_spill]] }
  0x28   : > { %997 = vmatpush.bf16.msra.mxu0 %v4480_v1 }
  0x2a   : > { %v4693_v20 = vpop.eup %4692 }
  0x2b   : > { %v1024_v21 = vmul.f32 128.0, %v4693_v20  ;;  %vm1028_vm0 = vweird.f32 %v4693_v20 }
  0x2c   : > { %998 = vmatpush.bf16.msra.mxu0 %v4479_v2  ;;  %s6772_s7 = smov %s6771_s25  ;;  %v3977_v42 = vld [vmem:[%s6771_s25 + $0x70] sm:$0xf]  ;;  %s4961_s25 = smov 32  }
  0x2d   : > { %v1025_v22 = vsub.f32 1.0, %v1024_v21  ;;  %v4497_v43 = vld [vmem:[%s6772_s7 + $0x74] sm:$0xf0]  ;;  %v4496_v44 = vld [vmem:[%s6772_s7 + $0x74] sm:$0xf]  ;;  %s6791_s2 = smov %s6790_s4 }
  0x2e   : > { %v3978_v45 = vor.u32 %v4497_v43, %v3977_v42  ;;  %v3979_v46 = vld [vmem:[%s6772_s7 + $0x78] sm:$0xf0]  ;;  %v3969_v48 = vld [vmem:[%s6772_s7 + $0x60] sm:$0xf]  ;;  %v4495_v49 = vld [vmem:[%s6772_s7 + $0x64] sm:$0xf0] }
  0x2f   : > { %v1026_v23 = vmul.f32 %v4693_v20, %v1025_v22  ;;  %v3982_v47 = vor.u32 %v4496_v44, %v3979_v46  ;;  %v4494_v50 = vld [vmem:[%s6772_s7 + $0x64] sm:$0xf]  ;;  %v3970_v51 = vor.u32 %v4495_v49, %v3969_v48  ;;  %v3971_v52 = vld [vmem:[%s6772_s7 + $0x68] sm:$0xf0]  ;;  %v3961_v54 = vld [vmem:[%s6772_s7 + $0x50] sm:$0xf] }
  0x30   : > { %999 = vmatpush.bf16.msra.mxu0 %v4478_v3  ;;  %1189 = vmatpush.bf16.msra.mxu1 %v3978_v45  ;;  %v3974_v53 = vor.u32 %v4494_v50, %v3971_v52  ;;  %v4493_v55 = vld [vmem:[%s6772_s7 + $0x54] sm:$0xf0]  ;;  %v4492_v56 = vld [vmem:[%s6772_s7 + $0x54] sm:$0xf]  ;;  %v3963_v58 = vld [vmem:[%s6772_s7 + $0x58] sm:$0xf0] }
  0x31   : > { %v1027_v24 = vadd.f32 %v4693_v20, %v1026_v23  ;;  %1208 = vmatpush.bf16.msra.mxu2 %v3982_v47  ;;  %v3962_v57 = vor.u32 %v4493_v55, %v3961_v54  ;;  %v3966_v59 = vor.u32 %v4492_v56, %v3963_v58  ;;  %v3953_v60 = vld [vmem:[%s6772_s7 + $0x40] sm:$0xf]  ;;  %v4491_v61 = vld [vmem:[%s6772_s7 + $0x44] sm:$0xf0]  ;;  %v4490_v62 = vld [vmem:[%s6772_s7 + $0x44] sm:$0xf] }
  0x32   : > { %v3954_v63 = vor.u32 %v4491_v61, %v3953_v60  ;;  %v3955_v0 = vld [vmem:[%s6772_s7 + $0x48] sm:$0xf0]  ;;  %v3945_v2 = vld [vmem:[%s6772_s7 + $0x30] sm:$0xf]  ;;  %v4489_v3 = vld [vmem:[%s6772_s7 + $0x34] sm:$0xf0] }
  0x33   : > { %v5177_v25 = vsel %vm1028_vm0, %v4693_v20, %v1027_v24  ;;  %v3958_v1 = vor.u32 %v4490_v62, %v3955_v0  ;;  %v4485_v19 = vld [vmem:[%s6772_s7 + $0x14] sm:$0xf0]  ;;  %v4484_v20 = vld [vmem:[%s6772_s7 + $0x14] sm:$0xf]  ;;  %v3931_v22 = vld [vmem:[%s6772_s7 + $0x18] sm:$0xf0] }
  0x34   : > { %1000 = vmatpush.bf16.msra.mxu0 %v4477_v4  ;;  %1190 = vmatpush.bf16.msra.mxu1 %v3970_v51  ;;  %v4488_v4 = vld [vmem:[%s6772_s7 + $0x34] sm:$0xf]  ;;  %v3934_v23 = vor.u32 %v4484_v20, %v3931_v22  ;;  %v3921_v24 = vld [vmem:[%s6772_s7] sm:$0xf] }
  0x35   : > { %1209 = vmatpush.bf16.msra.mxu2 %v3974_v53  ;;  %v4504_v20 = vld [vmem:[%s6773_s26 + $0x30] sm:$0xff]  ;;  %v742_v22 = vld [vmem:[%s6774_s24] sm:$0x3]  ;;  %s702_s24 = scalar_lea.vmem [#allocation2], %s701_s1 }
  0x36   : > { %s3816_s29 = sshll.u32 %s702_s24, 4  ;;  %s3817_s29 = int_to_ptr.vmem [resolvable:$true] %s3816_s29 }
  0x38   : > { %1001 = vmatpush.bf16.msra.mxu0 %v4476_v5  ;;  %1191 = vmatpush.bf16.msra.mxu1 %v3962_v57  ;;  %v3946_v5 = vor.u32 %v4489_v3, %v3945_v2 }
  0x39   : > { %1210 = vmatpush.bf16.msra.mxu2 %v3966_v59 }
  0x3c   : > { %1002 = vmatpush.bf16.msra.mxu0 %v4475_v6  ;;  %1192 = vmatpush.bf16.msra.mxu1 %v3954_v63  ;;  %v3947_v6 = vld [vmem:[%s6772_s7 + $0x38] sm:$0xf0] }
  0x3d   : > { %1211 = vmatpush.bf16.msra.mxu2 %v3958_v1 }
  0x40   : > { %1003 = vmatpush.bf16.msra.mxu0 %v4474_v7  ;;  %v3950_v7 = vor.u32 %v4488_v4, %v3947_v6  ;;  %1193 = vmatpush.bf16.msra.mxu1 %v3946_v5 }
  0x42   : > { %1212 = vmatpush.bf16.msra.mxu2 %v3950_v7 }
  0x43   : > { %1004 = vmatmul.bf16.vlgmr.msra.gmra.mxu0 %v4610_v8  ;;  %v3937_v8 = vld [vmem:[%s6772_s7 + $0x20] sm:$0xf] }
  0x53   : > { %1009 = vmatmul.bf16.gmra.mxu0 %v4611_v9  ;;  %v4487_v9 = vld [vmem:[%s6772_s7 + $0x24] sm:$0xf0] }
  0xc0   : > { %v1005_v11 = vpop.f32.mrf.mxu0 }
  0xc1   : > { %v5165_v12 = vadd.f32 %v4686_v10, %v1005_v11  ;;  %v3938_v11 = vor.u32 %v4487_v9, %v3937_v8 }
  0xc3   : > { %1015 = vadd.xlane.f32.xlu0 %v5165_v12  ;;  %1194 = vmatpush.bf16.msra.mxu1 %v3938_v11 }
  0xc8   : > { %v1007_v13 = vpop.f32.mrf.mxu0 }
  0xc9   : > { %v5168_v14 = vadd.f32 %v4686_v10, %v1007_v13  ;;  %v3939_v13 = vld [vmem:[%s6772_s7 + $0x28] sm:$0xf0] }
  0xcb   : > { %1017 = vadd.xlane.f32.xlu0 %v5168_v14 }
  0xd0   : > { %v1010_v15 = vpop.f32.mrf.mxu0 }
  0xd1   : > { %v5171_v16 = vadd.f32 %v4686_v10, %v1010_v15 }
  0xd3   : > { %1019 = vadd.xlane.f32.xlu1 %v5171_v16 }
  0xd8   : > { %v1012_v17 = vpop.f32.mrf.mxu0 }
  0xd9   : > { %v5174_v18 = vadd.f32 %v4686_v10, %v1012_v17  ;;  %v4486_v10 = vld [vmem:[%s6772_s7 + $0x24] sm:$0xf]  ;;  %v3929_v17 = vld [vmem:[%s6772_s7 + $0x10] sm:$0xf] }
  0xda   : > { %v3942_v15 = vor.u32 %v4486_v10, %v3939_v13  ;;  %v3930_v21 = vor.u32 %v4485_v19, %v3929_v17  ;;  %v4505_v19 = vld [vmem:[%s6773_s26 + $0x38] sm:$0xff] }
  0xdb   : > { %1021 = vadd.xlane.f32.xlu1 %v5174_v18  ;;  %1490 = vmatpush.bf16.msra.mxu3 %v4505_v19 }
  0xdc   : > { %1213 = vmatpush.bf16.msra.mxu2 %v3942_v15  ;;  %1195 = vmatpush.bf16.msra.mxu1 %v3930_v21  ;;  %v4513_v21 = vld [vmem:[%s6773_s26 + $0x78] sm:$0xff] }
  0xdd   : > { %1509 = vmatpush.bf16.msrb.mxu0 %v4513_v21 }
  0xdf   : > { %1491 = vmatpush.bf16.msra.mxu3 %v4504_v20 }
  0xe0   : > { %1214 = vmatpush.bf16.msra.mxu2 %v3934_v23  ;;  %v4502_v23 = vld [vmem:[%s6773_s26 + $0x20] sm:$0xff] }
 0x136   : > { %v1016_v26 = vpop.xlane.xlu0 %1015 }
 0x137   : > { %v1030_v27 = vmul.f32 %v5177_v25, %v1016_v26  ;;  %v4483_v26 = vld [vmem:[%s6772_s7 + $0x4] sm:$0xf0] }
 0x139   : > { %v5181_v28 = vsub.f32 %v5165_v12, %v1030_v27  ;;  %v4482_v27 = vld [vmem:[%s6772_s7 + $0x4] sm:$0xf] }
 0x13b   : > { %v1038_v29 = vmul.f32 %v5181_v28, %v5181_v28 }
 0x13d   : > { %1042 = vadd.xlane.f32.xlu2 %v1038_v29  ;;  %v3922_v29 = vor.u32 %v4483_v26, %v3921_v24  ;;  %v1105_v24 = vperm.slane %v742_v22, 0  ;;  %v4511_v26 = vld [vmem:[%s6773_s26 + $0x68] sm:$0xff] }
 0x13e   : > { %v1018_v30 = vpop.xlane.xlu0 %1017 }
 0x13f   : > { %v1031_v31 = vmul.f32 %v5177_v25, %v1018_v30  ;;  %v3923_v30 = vld [vmem:[%s6772_s7 + $0x8] sm:$0xf0]  ;;  %1196 = vmatpush.bf16.msra.mxu1 %v3922_v29  ;;  %v4501_v29 = vld [vmem:[%s6773_s26 + $0x18] sm:$0xff] }
 0x141   : > { %v5187_v32 = vsub.f32 %v5168_v14, %v1031_v31  ;;  %v3926_v31 = vor.u32 %v4482_v27, %v3923_v30 }
 0x143   : > { %v1039_v33 = vmul.f32 %v5187_v32, %v5187_v32  ;;  %1215 = vmatpush.bf16.msra.mxu2 %v3926_v31  ;;  %v4510_v31 = vld [vmem:[%s6773_s26 + $0x60] sm:$0xff] }
 0x145   : > { %1044 = vadd.xlane.f32.xlu2 %v1039_v33 }
 0x146   : > { %v1020_v34 = vpop.xlane.xlu1 %1019 }
 0x147   : > { %v1032_v35 = vmul.f32 %v5177_v25, %v1020_v34 }
 0x149   : > { %v5193_v36 = vsub.f32 %v5171_v16, %v1032_v35 }
 0x14b   : > { %v1040_v37 = vmul.f32 %v5193_v36, %v5193_v36 }
 0x14d   : > { %1046 = vadd.xlane.f32.xlu0 %v1040_v37 }
 0x14e   : > { %v1022_v38 = vpop.xlane.xlu1 %1021 }
 0x14f   : > { %v1033_v39 = vmul.f32 %v5177_v25, %v1022_v38 }
 0x151   : > { %v5199_v40 = vsub.f32 %v5174_v18, %v1033_v39 }
 0x153   : > { %v1041_v41 = vmul.f32 %v5199_v40, %v5199_v40 }
 0x155   : > { %1048 = vadd.xlane.f32.xlu1 %v1041_v41 }
 0x1b0   : > { %v1043_v33 = vpop.xlane.xlu2 %1042 }
 0x1b1   : > { %v1050_v34 = vmul.f32 %v1043_v33, %v5177_v25 }
 0x1b3   : > { %v1054_v35 = vadd.f32 1e-05, %v1050_v34  ;;  %v5340_v34 = vperm.slane %v742_v22, 1 }
 0x1b5   : > { %4694 = vrsqrt.f32 %v1054_v35  ;;  %vm1064_vm2 = vweird.f32 %v1054_v35 }
 0x1b8   : > { %v1045_v37 = vpop.xlane.xlu2 %1044 }
 0x1b9   : > { %v1051_v38 = vmul.f32 %v1045_v37, %v5177_v25 }
 0x1bb   : > { %v4695_v39 = vpop.eup %4694  ;;  %v1055_v41 = vadd.f32 1e-05, %v1051_v38  ;;  %v4509_v38 = vld [vmem:[%s6773_s26 + $0x58] sm:$0xff] }
 0x1bc   : > { %v1059_v42 = vmul.f32 %v4695_v39, %v1054_v35  ;;  %vm1065_vm1 = vweird.f32 %v4695_v39  ;;  %v4500_v35 = vld [vmem:[%s6773_s26 + $0x10] sm:$0xff] }
 0x1bd   : > { %4696 = vrsqrt.f32 %v1055_v41  ;;  %vm1066_vm4 = vmor %vm1064_vm2, %vm1065_vm1  ;;  %vm1074_vm5 = vweird.f32 %v1055_v41 }
 0x1be   : > { %v1060_v43 = vmul.f32 %v4695_v39, %v1059_v42  ;;  %v4499_v42 = vld [vmem:[%s6773_s26 + $0x8] sm:$0xff] }
 0x1c0   : > { %v1061_v44 = vmul.f32 0.5, %v1060_v43  ;;  %v1047_v45 = vpop.xlane.xlu0 %1046 }
 0x1c1   : > { %v1052_v46 = vmul.f32 %v1047_v45, %v5177_v25  ;;  %v4508_v45 = vld [vmem:[%s6773_s26 + $0x50] sm:$0xff] }
 0x1c2   : > { %v1062_v49 = vsub.f32 1.5, %v1061_v44 }
 0x1c3   : > { %v4697_v47 = vpop.eup %4696  ;;  %v1056_v48 = vadd.f32 1e-05, %v1052_v46 }
 0x1c4   : > { %v1069_v50 = vmul.f32 %v4697_v47, %v1055_v41  ;;  %v1063_v54 = vmul.f32 %v4695_v39, %v1062_v49  ;;  %vm1075_vm3 = vweird.f32 %v4697_v47  ;;  %v4498_v49 = vld [vmem:[%s6773_s26] sm:$0xff] }
 0x1c5   : > { %4698 = vrsqrt.f32 %v1056_v48  ;;  %vm1076_vm6 = vmor %vm1074_vm5, %vm1075_vm3  ;;  %vm1084_vm8 = vweird.f32 %v1056_v48 }
 0x1c6   : > { %v1070_v51 = vmul.f32 %v4697_v47, %v1069_v50  ;;  %v1067_v60 = vsel %vm1066_vm4, %v4695_v39, %v1063_v54 }
 0x1c7   : > { %v1098_v0 = vmul.f32 %v1067_v60, %v5181_v28 }
 0x1c8   : > { %v1071_v52 = vmul.f32 0.5, %v1070_v51  ;;  %v1049_v53 = vpop.xlane.xlu1 %1048  ;;  %v4507_v51 = vld [vmem:[%s6773_s26 + $0x48] sm:$0xff] }
 0x1c9   : > { %v1053_v55 = vmul.f32 %v1049_v53, %v5177_v25 }
 0x1ca   : > { %v1072_v56 = vsub.f32 1.5, %v1071_v52 }
 0x1cb   : > { %v4699_v57 = vpop.eup %4698  ;;  %v1057_v58 = vadd.f32 1e-05, %v1053_v55 }
 0x1cc   : > { %v1079_v59 = vmul.f32 %v4699_v57, %v1056_v48  ;;  %v1073_v61 = vmul.f32 %v4697_v47, %v1072_v56  ;;  %vm1085_vm7 = vweird.f32 %v4699_v57 }
 0x1cd   : > { %4700 = vrsqrt.f32 %v1057_v58  ;;  %vm1086_vm10 = vmor %vm1084_vm8, %vm1085_vm7  ;;  %vm1094_vm11 = vweird.f32 %v1057_v58 }
 0x1ce   : > { %v1080_v62 = vmul.f32 %v4699_v57, %v1079_v59  ;;  %v1077_v63 = vsel %vm1076_vm6, %v4697_v47, %v1073_v61 }
 0x1cf   : > { %v1099_v1 = vmul.f32 %v1077_v63, %v5187_v32 }
 0x1d0   : > { %v1081_v2 = vmul.f32 0.5, %v1080_v62 }
 0x1d1   : > { %v1102_v3 = vpack.c.bf16 %v1099_v1, %v1098_v0 }
 0x1d2   : > { %v1082_v5 = vsub.f32 1.5, %v1081_v2 }
 0x1d3   : > { %v4701_v4 = vpop.eup %4700  ;;  %1197 = vmatmul.bf16.vlgmr.msra.gmra.mxu1 %v1102_v3  ;;  %1216 = vmatmul.bf16.vlgmr.msra.gmra.mxu2 %v1102_v3 }
 0x1d4   : > { %v1089_v6 = vmul.f32 %v4701_v4, %v1057_v58  ;;  %v1083_v9 = vmul.f32 %v4699_v57, %v1082_v5  ;;  %vm1095_vm9 = vweird.f32 %v4701_v4  ;;  %v4506_v58 = vld [vmem:[%s6773_s26 + $0x40] sm:$0xff] }
 0x1d5   : > { %vm1096_vm12 = vmor %vm1094_vm11, %vm1095_vm9 }
 0x1d6   : > { %v1090_v7 = vmul.f32 %v4701_v4, %v1089_v6  ;;  %v1087_v11 = vsel %vm1086_vm10, %v4699_v57, %v1083_v9 }
 0x1d7   : > { %v1100_v13 = vmul.f32 %v1087_v11, %v5193_v36  ;;  %v4503_v36 = vld [vmem:[%s6773_s26 + $0x28] sm:$0xff] }
 0x1d8   : > { %v1091_v8 = vmul.f32 0.5, %v1090_v7  ;;  %1492 = vmatpush.bf16.msra.mxu3 %v4503_v36 }
 0x1da   : > { %v1092_v10 = vsub.f32 1.5, %v1091_v8 }
 0x1dc   : > { %v1093_v28 = vmul.f32 %v4701_v4, %v1092_v10  ;;  %1493 = vmatpush.bf16.msra.mxu3 %v4502_v23 }
 0x1de   : > { %v1097_v32 = vsel %vm1096_vm12, %v4701_v4, %v1093_v28 }
 0x1df   : > { %v1101_v15 = vmul.f32 %v1097_v32, %v5199_v40  ;;  %v4512_v40 = vld [vmem:[%s6773_s26 + $0x70] sm:$0xff] }
 0x1e0   : > { %1510 = vmatpush.bf16.msrb.mxu0 %v4512_v40  ;;  %1494 = vmatpush.bf16.msra.mxu3 %v4501_v29 }
 0x1e1   : > { %v1103_v17 = vpack.c.bf16 %v1101_v15, %v1100_v13 }
 0x1e3   : > { %1202 = vmatmul.bf16.gmra.mxu1 %v1103_v17  ;;  %1221 = vmatmul.bf16.gmra.mxu2 %v1103_v17 }
 0x1e4   : > { %1511 = vmatpush.bf16.msrb.mxu0 %v4511_v26  ;;  %1495 = vmatpush.bf16.msra.mxu3 %v4500_v35 }
 0x1e8   : > { %1512 = vmatpush.bf16.msrb.mxu0 %v4510_v31  ;;  %1496 = vmatpush.bf16.msra.mxu3 %v4499_v42 }
 0x1ec   : > { %1513 = vmatpush.bf16.msrb.mxu0 %v4509_v38  ;;  %1497 = vmatpush.bf16.msra.mxu3 %v4498_v49 }
 0x1f0   : > { %1514 = vmatpush.bf16.msrb.mxu0 %v4508_v45 }
 0x1f4   : > { %1515 = vmatpush.bf16.msrb.mxu0 %v4507_v51 }
 0x1f8   : > { %1516 = vmatpush.bf16.msrb.mxu0 %v4506_v58 }
 0x250   : > { %v1198_v27 = vpop.f32.mrf.mxu1 }
 0x251   : > { %v5334_v30 = vadd.f32 %v1198_v27, %v1105_v24 }
 0x253   : > { %v3983_v33 = vmul.f32 -1.442695, %v5334_v30 }
 0x255   : > { %4702 = vpow2.f32 %v3983_v33 }
 0x256   : > { %v1217_v37 = vpop.f32.mrf.mxu2 }
 0x257   : > { %v5349_v39 = vadd.f32 %v1217_v37, %v5340_v34 }
 0x258   : > { %v1200_v41 = vpop.f32.mrf.mxu1 }
 0x259   : > { %v3984_v43 = vmul.f32 -1.442695, %v5349_v39  ;;  %v5355_v44 = vadd.f32 %v1200_v41, %v1105_v24 }
 0x25b   : > { %v4703_v46 = vpop.eup %4702  ;;  %4704 = vpow2.f32 %v3984_v43  ;;  %v3985_v47 = vmul.f32 -1.442695, %v5355_v44 }
 0x25c   : > { %v5361_v48 = vadd.f32 1.0, %v4703_v46 }
 0x25d   : > { %4706 = vpow2.f32 %v3985_v47 }
 0x25e   : > { %4708 = vrcp.f32 %v5361_v48  ;;  %v1219_v50 = vpop.f32.mrf.mxu2  ;;  %v1268_v7 = vand.u32 2147483647, %v5361_v48  ;;  %v1270_v32 = vand.u32 2147483648, %v5361_v48  ;;  %vm1264_vm13 = vweird.f32 %v5361_v48 }
 0x25f   : > { %v5371_v52 = vadd.f32 %v1219_v50, %v5340_v34 }
 0x260   : > { %v1203_v53 = vpop.f32.mrf.mxu1  ;;  %vm5407_vm14 = vcmp.eq.f32.partialorder %v1268_v7, 8.507059e+37  ;;  %v1271_v23 = vor.u32 1.1754944e-38, %v1270_v32 }
 0x261   : > { %v4705_v54 = vpop.eup %4704  ;;  %v3986_v55 = vmul.f32 -1.442695, %v5371_v52  ;;  %v5374_v56 = vadd.f32 %v1203_v53, %v1105_v24 }
 0x262   : > { %v5376_v57 = vadd.f32 1.0, %v4705_v54 }
 0x263   : > { %v4707_v59 = vpop.eup %4706  ;;  %4710 = vpow2.f32 %v3986_v55  ;;  %v3987_v60 = vmul.f32 -1.442695, %v5374_v56 }
 0x264   : > { %v5382_v61 = vpop.eup %4708  ;;  %4712 = vrcp.f32 %v5376_v57  ;;  %v1253_v63 = vadd.f32 1.0, %v4707_v59  ;;  %vm1279_vm0 = vweird.f32 %v5376_v57  ;;  %v1283_v27 = vand.u32 2147483647, %v5376_v57 }
 0x265   : > { %v1260_v62 = vmul.f32 %v5382_v61, %v5361_v48  ;;  %4714 = vpow2.f32 %v3987_v60  ;;  %vm1265_vm15 = vweird.f32 %v5382_v61  ;;  %v1285_v37 = vand.u32 2147483648, %v5376_v57 }
 0x266   : > { %v1222_v0 = vpop.f32.mrf.mxu2  ;;  %4716 = vrcp.f32 %v1253_v63  ;;  %v1298_v22 = vand.u32 2147483647, %v1253_v63  ;;  %v1300_v29 = vand.u32 2147483648, %v1253_v63  ;;  %vm5422_vm1 = vmor %vm1264_vm13, %vm1265_vm15  ;;  %vm1294_vm2 = vweird.f32 %v1253_v63 }
 0x267   : > { %v1261_v1 = vsub.f32 1.0, %v1260_v62  ;;  %v5388_v2 = vadd.f32 %v1222_v0, %v5340_v34  ;;  %v1286_v7 = vor.u32 1.1754944e-38, %v1285_v37  ;;  %vm1284_vm10 = vcmp.eq.f32.partialorder %v1283_v27, 8.507059e+37 }
 0x268   : > { %v1205_v3 = vpop.f32.mrf.mxu1  ;;  %vm5430_vm4 = vcmp.eq.f32.partialorder %v1298_v22, 8.507059e+37  ;;  %v1301_v50 = vor.u32 1.1754944e-38, %v1300_v29 }
 0x269   : > { %v4711_v4 = vpop.eup %4710  ;;  %v5390_v5 = vadd.f32 %v1205_v3, %v1105_v24  ;;  %v3988_v9 = vmul.f32 -1.442695, %v5388_v2  ;;  %v1262_v11 = vmul.f32 %v5382_v61, %v1261_v1 }
 0x26a   : > { %v5392_v6 = vpop.eup %4712  ;;  %v5395_v8 = vadd.f32 1.0, %v4711_v4 }
 0x26b   : > { %v4715_v10 = vpop.eup %4714  ;;  %v1275_v28 = vmul.f32 %v5392_v6, %v5376_v57  ;;  %v3989_v19 = vmul.f32 -1.442695, %v5390_v5  ;;  %v1263_v40 = vadd.f32 %v5382_v61, %v1262_v11  ;;  %vm1280_vm5 = vweird.f32 %v5392_v6 }
 0x26c   : > { %4718 = vrcp.f32 %v5395_v8  ;;  %v4717_v13 = vpop.eup %4716  ;;  %v5403_v17 = vadd.f32 1.0, %v4715_v10  ;;  %v1315_v53 = vand.u32 2147483648, %v5395_v8  ;;  %vm5450_vm7 = vmor %vm1279_vm0, %vm1280_vm5  ;;  %vm1309_vm9 = vweird.f32 %v5395_v8 }
 0x26d   : > { %v1276_v15 = vsub.f32 1.0, %v1275_v28  ;;  %4720 = vpow2.f32 %v3988_v9  ;;  %v1290_v21 = vmul.f32 %v4717_v13, %v1253_v63  ;;  %vm1295_vm3 = vweird.f32 %v4717_v13 }
 0x26e   : > { %v1224_v36 = vpop.f32.mrf.mxu2  ;;  %4722 = vrcp.f32 %v5403_v17  ;;  %v1267_v42 = vsel %vm5422_vm1, %v5382_v61, %v1263_v40  ;;  %vm1296_vm6 = vmor %vm1294_vm2, %vm1295_vm3  ;;  %v1313_v63 = vand.u32 2147483647, %v5395_v8  ;;  %v1316_v10 = vor.u32 1.1754944e-38, %v1315_v53 }
 0x26f   : > { %v1277_v24 = vmul.f32 %v5392_v6, %v1276_v15  ;;  %v1291_v26 = vsub.f32 1.0, %v1290_v21  ;;  %4724 = vpow2.f32 %v3989_v19  ;;  %v5418_v31 = vadd.f32 %v1224_v36, %v5340_v34 }
 0x270   : > { %v1272_v54 = vsel %vm5407_vm14, %v1271_v23, %v1267_v42  ;;  %vm1314_vm12 = vcmp.eq.f32.partialorder %v1313_v63, 8.507059e+37  ;;  %v1328_v22 = vand.u32 2147483647, %v5403_v17  ;;  %vm1324_vm14 = vweird.f32 %v5403_v17 }
 0x271   : > { %v1292_v38 = vmul.f32 %v4717_v13, %v1291_v26  ;;  %v3990_v45 = vmul.f32 -1.442695, %v5418_v31  ;;  %v1278_v46 = vadd.f32 %v5392_v6, %v1277_v24  ;;  %v1379_v57 = vmul.f32 %v1272_v54, %v5334_v30 }
 0x272   : > { %v4719_v33 = vpop.eup %4718  ;;  %vm5479_vm0 = vcmp.eq.f32.partialorder %v1328_v22, 8.507059e+37 }
 0x273   : > { %v4721_v41 = vpop.eup %4720  ;;  %v1305_v43 = vmul.f32 %v4719_v33, %v5395_v8  ;;  %v1293_v47 = vadd.f32 %v4717_v13, %v1292_v38  ;;  %4726 = vpow2.f32 %v3990_v45  ;;  %vm1310_vm8 = vweird.f32 %v4719_v33 }
 0x274   : > { %v5438_v48 = vadd.f32 1.0, %v4721_v41  ;;  %v5440_v49 = vpop.eup %4722  ;;  %v1282_v0 = vsel %vm5450_vm7, %v5392_v6, %v1278_v46  ;;  %vm1311_vm11 = vmor %vm1309_vm9, %vm1310_vm8 }
 0x275   : > { %v1306_v51 = vsub.f32 1.0, %v1305_v43  ;;  %v1297_v55 = vsel %vm1296_vm6, %v4717_v13, %v1293_v47  ;;  %v1320_v58 = vmul.f32 %v5440_v49, %v5403_v17  ;;  %v4725_v59 = vpop.eup %4724  ;;  %v1287_v28 = vsel %vm1284_vm10, %v1286_v7, %v1282_v0 }
 0x276   : > { %4728 = vrcp.f32 %v5438_v48  ;;  %v1302_v61 = vsel %vm5430_vm4, %v1301_v50, %v1297_v55  ;;  %v1257_v4 = vadd.f32 1.0, %v4725_v59  ;;  %v1380_v8 = vmul.f32 %v1287_v28, %v5349_v39 }
 0x277   : > { %v1307_v62 = vmul.f32 %v4719_v33, %v1306_v51  ;;  %v1381_v1 = vmul.f32 %v1302_v61, %v5355_v44  ;;  %v1321_v3 = vsub.f32 1.0, %v1320_v58  ;;  %vm1325_vm13 = vweird.f32 %v5440_v49 }
 0x278   : > { %4730 = vrcp.f32 %v1257_v4  ;;  %vm5472_vm15 = vmor %vm1324_vm14, %vm1325_vm13  ;;  %v1358_v29 = vand.u32 2147483647, %v1257_v4  ;;  %v1360_v38 = vand.u32 2147483648, %v1257_v4  ;;  %vm1339_vm3 = vweird.f32 %v5438_v48 }
 0x279   : > { %v1308_v9 = vadd.f32 %v4719_v33, %v1307_v62  ;;  %v4727_v11 = vpop.eup %4726  ;;  %v1387_v13 = vpack.c.bf16 %v1381_v1, %v1379_v57  ;;  %v1322_v44 = vmul.f32 %v5440_v49, %v1321_v3  ;;  %v1343_v43 = vand.u32 2147483647, %v5438_v48 }
 0x27a   : > { %v1258_v19 = vadd.f32 1.0, %v4727_v11  ;;  %v1345_v45 = vand.u32 2147483648, %v5438_v48  ;;  %vm1354_vm5 = vweird.f32 %v1257_v4  ;;  %vm1359_vm6 = vcmp.eq.f32.partialorder %v1358_v29, 8.507059e+37 }
 0x27b   : > { %v1312_v32 = vsel %vm1311_vm11, %v4719_v33, %v1308_v9  ;;  %1498 = vmatmul.bf16.vlgmr.msra.gmra.mxu3 %v1387_v13  ;;  %v1323_v40 = vadd.f32 %v5440_v49, %v1322_v44  ;;  %v1361_v51 = vor.u32 1.1754944e-38, %v1360_v38  ;;  %vm1344_vm9 = vcmp.eq.f32.partialorder %v1343_v43, 8.507059e+37 }
 0x27c   : > { %v4729_v6 = vpop.eup %4728  ;;  %v1317_v15 = vsel %vm1314_vm12, %v1316_v10, %v1312_v32  ;;  %4732 = vrcp.f32 %v1258_v19  ;;  %v1373_v53 = vand.u32 2147483647, %v1258_v19  ;;  %v1375_v54 = vand.u32 2147483648, %v1258_v19 }
 0x27d   : > { %v1382_v30 = vmul.f32 %v1317_v15, %v5371_v52  ;;  %v1335_v20 = vmul.f32 %v4729_v6, %v5438_v48  ;;  %v1330_v52 = vand.u32 2147483648, %v5403_v17  ;;  %v1327_v35 = vsel %vm5472_vm15, %v5440_v49, %v1323_v40 }
 0x27e   : > { %v4731_v36 = vpop.eup %4730  ;;  %vm1340_vm1 = vweird.f32 %v4729_v6  ;;  %v1346_v59 = vor.u32 1.1754944e-38, %v1345_v45  ;;  %vm1369_vm10 = vweird.f32 %v1258_v19  ;;  %v1376_v1 = vor.u32 1.1754944e-38, %v1375_v54  ;;  %v4149_v54 = vld [vmem:[%s6791_s2 + $0xb0] sm:$0xf] }
 0x27f   : > { %v1336_v21 = vsub.f32 1.0, %v1335_v20  ;;  %v1388_v23 = vpack.c.bf16 %v1382_v30, %v1380_v8  ;;  %v1350_v26 = vmul.f32 %v4731_v36, %v1257_v4  ;;  %vm1355_vm2 = vweird.f32 %v4731_v36  ;;  %vm5486_vm4 = vmor %vm1339_vm3, %vm1340_vm1 }
 0x280   : > { %v1331_v34 = vor.u32 1.1754944e-38, %v1330_v52  ;;  %vm1356_vm7 = vmor %vm1354_vm5, %vm1355_vm2  ;;  %vm1374_vm12 = vcmp.eq.f32.partialorder %v1373_v53, 8.507059e+37  ;;  %v4143_v53 = vld [vmem:[%s6791_s2 + $0xb4] sm:$0xf0] }
 0x281   : > { %v1337_v24 = vmul.f32 %v4729_v6, %v1336_v21  ;;  %1517 = vmatmul.bf16.vlgmr.msrb.gmra.mxu0 %v1388_v23  ;;  %v1351_v39 = vsub.f32 1.0, %v1350_v26 }
 0x282   : > { %v4733_v33 = vpop.eup %4732  ;;  %v1332_v50 = vsel %vm5479_vm0, %v1331_v34, %v1327_v35 }
 0x283   : > { %v1338_v41 = vadd.f32 %v4729_v6, %v1337_v24  ;;  %v1352_v17 = vmul.f32 %v4731_v36, %v1351_v39  ;;  %v1365_v42 = vmul.f32 %v4733_v33, %v1258_v19  ;;  %vm1370_vm8 = vweird.f32 %v4733_v33 }
 0x284   : > { %v1383_v61 = vmul.f32 %v1332_v50, %v5374_v56  ;;  %vm1371_vm11 = vmor %vm1369_vm10, %vm1370_vm8  ;;  %v4687_v56 = vld [vmem:[%s6789_s28] ss:$0 sm:$0xff]  ;;  %v4535_v50 = vld [vmem:[%s6791_s2 + $0xac] sm:$0xf]  ;;  %vm2495_vm10 = vcmask 523264   ;;  %s3806_s28 = scalar_lea.sflag [#allocation3], %s701_s1 }
 0x285   : > { %v1353_v47 = vadd.f32 %v4731_v36, %v1352_v17  ;;  %v1366_v49 = vsub.f32 1.0, %v1365_v42  ;;  %v1342_v55 = vsel %vm5486_vm4, %v4729_v6, %v1338_v41 }
 0x286   : > { %v1347_v0 = vsel %vm1344_vm9, %v1346_v59, %v1342_v55  ;;  %v4537_v55 = vld [vmem:[%s6791_s2 + $0xb8] sm:$0xf0]  ;;  %v4129_v59 = vld [vmem:[%s6791_s2 + $0x90] sm:$0xf]  ;;  %vm1902_vm9 = vcmask 261120  }
 0x287   : > { %v1357_v58 = vsel %vm1356_vm7, %v4731_v36, %v1353_v47  ;;  %v1367_v48 = vmul.f32 %v4733_v33, %v1366_v49  ;;  %v1384_v7 = vmul.f32 %v1347_v0, %v5388_v2  ;;  %v4141_v47 = vld [vmem:[%s6790_s4 + $0xa8] sm:$0xf]  ;;  %v4536_v49 = vld [vmem:[%s6791_s2 + $0xb0] sm:$0xf0]  ;;  %v4137_v0 = vld [vmem:[%s6791_s2 + $0x98] sm:$0xf] }
 0x288   : > { %v1362_v60 = vsel %vm1359_vm6, %v1361_v51, %v1357_v58  ;;  %v4142_v51 = vor.u32 %v4536_v49, %v4141_v47  ;;  %v4146_v58 = vor.u32 %v4535_v50, %v4143_v53  ;;  %v4518_v47 = vld [vmem:[%s6791_s2 + $0x20] sm:$0xf0]  ;;  %v4517_v49 = vld [vmem:[%s6791_s2 + $0x1c] sm:$0xf]  ;;  %v4077_v53 = vld [vmem:[%s6791_s2 + $0x20] sm:$0xf] }
 0x289   : > { %v1385_v62 = vmul.f32 %v1362_v60, %v5390_v5  ;;  %v1368_v63 = vadd.f32 %v4733_v33, %v1367_v48  ;;  %v4150_v48 = vor.u32 %v4537_v55, %v4149_v54  ;;  %v4533_v60 = vld [vmem:[%s6791_s2 + $0x98] sm:$0xf0]  ;;  %v4519_v54 = vld [vmem:[%s6791_s2 + $0x28] sm:$0xf0]  ;;  %s4916_s4 = scalar_lea.hbm %s6733_s23, 2 }
 0x28a   : > { %1753 = vmatpush.bf16.msrb.mxu1 %v4142_v51  ;;  %1772 = vmatpush.bf16.msrb.mxu2 %v4146_v58  ;;  %v4071_v51 = vld [vmem:[%s6791_s2 + $0x24] sm:$0xf0]  ;;  %v4078_v58 = vor.u32 %v4519_v54, %v4077_v53 }
 0x28b   : > { %v1372_v3 = vsel %vm1371_vm11, %v4733_v33, %v1368_v63  ;;  %v1389_v4 = vpack.c.bf16 %v1385_v62, %v1383_v61  ;;  %1791 = vmatpush.bf16.msrb.mxu3 %v4150_v48  ;;  %v4532_v61 = vld [vmem:[%s6791_s2 + $0x94] sm:$0xf]  ;;  %v4130_v62 = vor.u32 %v4533_v60, %v4129_v59  ;;  %v4131_v63 = vld [vmem:[%s6791_s2 + $0x9c] sm:$0xf0]  ;;  %v4074_v55 = vor.u32 %v4517_v49, %v4071_v51 }
 0x28c   : > { %v1377_v57 = vsel %vm1374_vm12, %v1376_v1, %v1372_v3  ;;  %v4534_v1 = vld [vmem:[%s6791_s2 + $0xa0] sm:$0xf0]  ;;  %v4134_v3 = vor.u32 %v4532_v61, %v4131_v63  ;;  %v4057_v60 = vld [vmem:[%s6791_s2] sm:$0xf]  ;;  %v4515_v61 = vld [vmem:[%s6791_s2 + $0x8] sm:$0xf0] }
 0x28d   : > { %v1386_v9 = vmul.f32 %v1377_v57, %v5418_v31  ;;  %1503 = vmatmul.bf16.gmra.mxu3 %v1389_v4  ;;  %v4138_v4 = vor.u32 %v4534_v1, %v4137_v0  ;;  %v4117_v57 = vld [vmem:[%s6791_s2 + $0x78] sm:$0xf]  ;;  %v4058_v63 = vor.u32 %v4515_v61, %v4057_v60  ;;  %v4059_v0 = vld [vmem:[%s6791_s2 + $0xc] sm:$0xf0]  ;;  %v4065_v1 = vld [vmem:[%s6791_s2 + $0x8] sm:$0xf] }
 0x28e   : > { %1754 = vmatpush.bf16.msrb.mxu1 %v4130_v62  ;;  %1773 = vmatpush.bf16.msrb.mxu2 %v4134_v3  ;;  %v4514_v62 = vld [vmem:[%s6791_s2 + $0x4] sm:$0xf]  ;;  %v4516_v3 = vld [vmem:[%s6791_s2 + $0x10] sm:$0xf0]  ;;  %vm2500_vm11 = vcmask 785408  }
 0x28f   : > { %v1390_v10 = vpack.c.bf16 %v1386_v9, %v1384_v7  ;;  %1792 = vmatpush.bf16.msrb.mxu3 %v4138_v4  ;;  %v4530_v7 = vld [vmem:[%s6791_s2 + $0x80] sm:$0xf0]  ;;  %v4529_v9 = vld [vmem:[%s6791_s2 + $0x7c] sm:$0xf] }
 0x291   : > { %1522 = vmatmul.bf16.gmra.mxu0 %v1390_v10  ;;  %v4118_v10 = vor.u32 %v4530_v7, %v4117_v57  ;;  %v4062_v57 = vor.u32 %v4514_v62, %v4059_v0  ;;  %v4066_v7 = vor.u32 %v4516_v3, %v4065_v1  ;;  %v808_v62 = vld [vmem:[%s6792_s8] sm:$0x7] }
 0x292   : > { %v1619_v0 = vperm.slane %v808_v62, 0  ;;  %v1620_v1 = vperm.slane %v808_v62, 1 }
 0x293   : > { %1755 = vmatpush.bf16.msrb.mxu1 %v4118_v10 }
 0x2fe   : > { %v1518_v5 = vpop.f32.mrf.mxu0  ;;  %v1499_v11 = vpop.f32.mrf.mxu3 }
 0x2ff   : > { %v1500_v28 = vadd.f32 %v4687_v56, %v1499_v11  ;;  %v4531_v11 = vld [vmem:[%s6791_s2 + $0x88] sm:$0xf0] }
 0x301   : > { %v1519_v32 = vadd.f32 %v1518_v5, %v1500_v28  ;;  %v4125_v5 = vld [vmem:[%s6791_s2 + $0x80] sm:$0xf] }
 0x303   : > { %v1528_v13 = vmul.f32 0.5, %v1519_v32  ;;  %v4126_v32 = vor.u32 %v4531_v11, %v4125_v5 }
 0x305   : > { %v5502_v6 = vadd.f32 %v1528_v13, %v5165_v12  ;;  %1793 = vmatpush.bf16.msrb.mxu3 %v4126_v32  ;;  %v4105_v13 = vld [vmem:[%s6791_s2 + $0x60] sm:$0xf] }
 0x306   : > { %v1501_v15 = vpop.f32.mrf.mxu3  ;;  %v1520_v44 = vpop.f32.mrf.mxu0 }
 0x307   : > { %v1502_v2 = vadd.f32 %v4687_v56, %v1501_v15  ;;  %1536 = vadd.xlane.f32.xlu2 %v5502_v6  ;;  %v4527_v15 = vld [vmem:[%s6791_s2 + $0x68] sm:$0xf0] }
 0x309   : > { %v1521_v31 = vadd.f32 %v1520_v44, %v1502_v2  ;;  %v4526_v44 = vld [vmem:[%s6791_s2 + $0x64] sm:$0xf]  ;;  %v4106_v2 = vor.u32 %v4527_v15, %v4105_v13 }
 0x30b   : > { %v1529_v19 = vmul.f32 0.5, %v1521_v31  ;;  %v4107_v31 = vld [vmem:[%s6791_s2 + $0x6c] sm:$0xf0]  ;;  %1756 = vmatpush.bf16.msrb.mxu1 %v4106_v2 }
 0x30d   : > { %v5506_v30 = vadd.f32 %v1529_v19, %v5168_v14  ;;  %v4113_v19 = vld [vmem:[%s6791_s2 + $0x68] sm:$0xf] }
 0x30e   : > { %v1523_v8 = vpop.f32.mrf.mxu0 }
 0x30f   : > { %1538 = vadd.xlane.f32.xlu0 %v5506_v30 }
 0x310   : > { %v1504_v20 = vpop.f32.mrf.mxu3 }
 0x311   : > { %v1505_v21 = vadd.f32 %v4687_v56, %v1504_v20  ;;  %v4528_v20 = vld [vmem:[%s6791_s2 + $0x70] sm:$0xf0] }
 0x313   : > { %v1524_v36 = vadd.f32 %v1523_v8, %v1505_v21  ;;  %v4110_v8 = vor.u32 %v4526_v44, %v4107_v31  ;;  %v4114_v21 = vor.u32 %v4528_v20, %v4113_v19 }
 0x315   : > { %v1530_v40 = vmul.f32 0.5, %v1524_v36  ;;  %1794 = vmatpush.bf16.msrb.mxu3 %v4114_v21  ;;  %v4093_v36 = vld [vmem:[%s6791_s2 + $0x48] sm:$0xf] }
 0x316   : > { %v1525_v24 = vpop.f32.mrf.mxu0 }
 0x317   : > { %v5510_v12 = vadd.f32 %v1530_v40, %v5171_v16  ;;  %v4524_v40 = vld [vmem:[%s6791_s2 + $0x50] sm:$0xf0] }
 0x318   : > { %v1506_v22 = vpop.f32.mrf.mxu3 }
 0x319   : > { %v1507_v23 = vadd.f32 %v4687_v56, %v1506_v22  ;;  %1540 = vadd.xlane.f32.xlu1 %v5510_v12  ;;  %v4119_v56 = vld [vmem:[%s6791_s2 + $0x84] sm:$0xf0]  ;;  %v4523_v22 = vld [vmem:[%s6791_s2 + $0x4c] sm:$0xf] }
 0x31a   : > { %v4122_v28 = vor.u32 %v4529_v9, %v4119_v56 }
 0x31b   : > { %v1526_v26 = vadd.f32 %v1525_v24, %v1507_v23  ;;  %v4094_v23 = vor.u32 %v4524_v40, %v4093_v36  ;;  %v4095_v24 = vld [vmem:[%s6791_s2 + $0x54] sm:$0xf0] }
 0x31c   : > { %1774 = vmatpush.bf16.msrb.mxu2 %v4122_v28 }
 0x31d   : > { %v1531_v52 = vmul.f32 0.5, %v1526_v26  ;;  %v4101_v26 = vld [vmem:[%s6791_s2 + $0x50] sm:$0xf]  ;;  %1757 = vmatpush.bf16.msrb.mxu1 %v4094_v23 }
 0x31f   : > { %v5514_v14 = vadd.f32 %v1531_v52, %v5174_v18  ;;  %v4525_v52 = vld [vmem:[%s6791_s2 + $0x58] sm:$0xf0] }
 0x320   : > { %1775 = vmatpush.bf16.msrb.mxu2 %v4110_v8 }
 0x321   : > { %1542 = vadd.xlane.f32.xlu2 %v5514_v14 }
 0x37a   : > { %v1537_v27 = vpop.xlane.xlu2 %1536 }
 0x37b   : > { %v1544_v39 = vmul.f32 %v1537_v27, %v5177_v25  ;;  %v4098_v27 = vor.u32 %v4523_v22, %v4095_v24 }
 0x37d   : > { %v5519_v29 = vsub.f32 %v5502_v6, %v1544_v39  ;;  %v4102_v39 = vor.u32 %v4525_v52, %v4101_v26  ;;  %1776 = vmatpush.bf16.msrb.mxu2 %v4098_v27 }
 0x37f   : > { %v1552_v16 = vmul.f32 %v5519_v29, %v5519_v29  ;;  %1795 = vmatpush.bf16.msrb.mxu3 %v4102_v39 }
 0x381   : > { %1556 = vadd.xlane.f32.xlu0 %v1552_v16  ;;  %v4081_v16 = vld [vmem:[%s6791_s2 + $0x30] sm:$0xf] }
 0x382   : > { %v1539_v33 = vpop.xlane.xlu0 %1538 }
 0x383   : > { %v1545_v35 = vmul.f32 %v1539_v33, %v5177_v25  ;;  %v4521_v33 = vld [vmem:[%s6791_s2 + $0x38] sm:$0xf0] }
 0x385   : > { %v5525_v37 = vsub.f32 %v5506_v30, %v1545_v35  ;;  %v4520_v35 = vld [vmem:[%s6791_s2 + $0x34] sm:$0xf] }
 0x387   : > { %v1553_v18 = vmul.f32 %v5525_v37, %v5525_v37 }
 0x389   : > { %1558 = vadd.xlane.f32.xlu1 %v1553_v18  ;;  %v4082_v18 = vor.u32 %v4521_v33, %v4081_v16 }
 0x38b   : > { %1758 = vmatpush.bf16.msrb.mxu1 %v4082_v18 }
 0x38c   : > { %v1541_v38 = vpop.xlane.xlu1 %1540 }
 0x38d   : > { %v1546_v41 = vmul.f32 %v1541_v38, %v5177_v25  ;;  %v4083_v38 = vld [vmem:[%s6791_s2 + $0x3c] sm:$0xf0] }
 0x38f   : > { %v5531_v17 = vsub.f32 %v5510_v12, %v1546_v41  ;;  %v4089_v41 = vld [vmem:[%s6791_s2 + $0x38] sm:$0xf] }
 0x391   : > { %v1554_v42 = vmul.f32 %v5531_v17, %v5531_v17 }
 0x393   : > { %1560 = vadd.xlane.f32.xlu2 %v1554_v42  ;;  %v4522_v42 = vld [vmem:[%s6791_s2 + $0x40] sm:$0xf0] }
 0x394   : > { %v1543_v34 = vpop.xlane.xlu2 %1542 }
 0x395   : > { %v1547_v43 = vmul.f32 %v1543_v34, %v5177_v25  ;;  %v4086_v34 = vor.u32 %v4520_v35, %v4083_v38 }
 0x397   : > { %v5537_v45 = vsub.f32 %v5514_v14, %v1547_v43  ;;  %v4090_v43 = vor.u32 %v4522_v42, %v4089_v41  ;;  %1777 = vmatpush.bf16.msrb.mxu2 %v4086_v34 }
 0x399   : > { %v1555_v46 = vmul.f32 %v5537_v45, %v5537_v45  ;;  %1796 = vmatpush.bf16.msrb.mxu3 %v4090_v43 }
 0x39b   : > { %1562 = vadd.xlane.f32.xlu0 %v1555_v46  ;;  %v4069_v46 = vld [vmem:[%s6791_s2 + $0x18] sm:$0xf]  ;;  %1778 = vmatpush.bf16.msrb.mxu2 %v4074_v55 }
 0x39c   : > { %v4070_v50 = vor.u32 %v4518_v47, %v4069_v46 }
 0x39d   : > { %1797 = vmatpush.bf16.msrb.mxu3 %v4078_v58 }
 0x39e   : > { %1759 = vmatpush.bf16.msrb.mxu1 %v4070_v50 }
 0x39f   : > { %1779 = vmatpush.bf16.msrb.mxu2 %v4062_v57 }
 0x3a1   : > { %1798 = vmatpush.bf16.msrb.mxu3 %v4066_v7 }
 0x3a2   : > { %1760 = vmatpush.bf16.msrb.mxu1 %v4058_v63 }
 0x3f4   : > { %v1557_v48 = vpop.xlane.xlu0 %1556 }
 0x3f5   : > { %v1564_v59 = vmul.f32 %v1557_v48, %v5177_v25 }
 0x3f7   : > { %v1568_v4 = vadd.f32 1e-05, %v1564_v59 }
 0x3f9   : > { %4734 = vrsqrt.f32 %v1568_v4  ;;  %vm1578_vm14 = vweird.f32 %v1568_v4 }
 0x3fc   : > { %v1559_v9 = vpop.xlane.xlu1 %1558 }
 0x3fd   : > { %v1565_v10 = vmul.f32 %v1559_v9, %v5177_v25 }
 0x3ff   : > { %v4735_v56 = vpop.eup %4734  ;;  %v1569_v5 = vadd.f32 1e-05, %v1565_v10 }
 0x400   : > { %v1573_v11 = vmul.f32 %v4735_v56, %v1568_v4  ;;  %vm1579_vm13 = vweird.f32 %v4735_v56 }
 0x401   : > { %4736 = vrsqrt.f32 %v1569_v5  ;;  %vm1580_vm0 = vmor %vm1578_vm14, %vm1579_vm13  ;;  %vm1588_vm1 = vweird.f32 %v1569_v5 }
 0x402   : > { %v1574_v28 = vmul.f32 %v4735_v56, %v1573_v11 }
 0x404   : > { %v1575_v32 = vmul.f32 0.5, %v1574_v28 }
 0x406   : > { %v1561_v13 = vpop.xlane.xlu2 %1560  ;;  %v1576_v2 = vsub.f32 1.5, %v1575_v32 }
 0x407   : > { %v4737_v15 = vpop.eup %4736  ;;  %v1566_v44 = vmul.f32 %v1561_v13, %v5177_v25 }
 0x408   : > { %v1583_v31 = vmul.f32 %v4737_v15, %v1569_v5  ;;  %v1577_v8 = vmul.f32 %v4735_v56, %v1576_v2  ;;  %vm1589_vm15 = vweird.f32 %v4737_v15 }
 0x409   : > { %v1570_v19 = vadd.f32 1e-05, %v1566_v44  ;;  %vm1590_vm2 = vmor %vm1588_vm1, %vm1589_vm15 }
 0x40a   : > { %v1584_v20 = vmul.f32 %v4737_v15, %v1583_v31  ;;  %v1581_v24 = vsel %vm1580_vm0, %v4735_v56, %v1577_v8 }
 0x40b   : > { %4738 = vrsqrt.f32 %v1570_v19  ;;  %v1612_v16 = vmul.f32 %v1581_v24, %v5519_v29  ;;  %vm1598_vm4 = vweird.f32 %v1570_v19 }
 0x40c   : > { %v1585_v21 = vmul.f32 0.5, %v1584_v20  ;;  %v1621_v20 = vperm.slane %v808_v62, 2 }
 0x40e   : > { %v1586_v36 = vsub.f32 1.5, %v1585_v21  ;;  %v1563_v40 = vpop.xlane.xlu0 %1562 }
 0x40f   : > { %v1567_v22 = vmul.f32 %v1563_v40, %v5177_v25 }
 0x410   : > { %v1587_v23 = vmul.f32 %v4737_v15, %v1586_v36 }
 0x411   : > { %v4739_v26 = vpop.eup %4738  ;;  %v1571_v52 = vadd.f32 1e-05, %v1567_v22 }
 0x412   : > { %v1593_v27 = vmul.f32 %v4739_v26, %v1570_v19  ;;  %v1591_v39 = vsel %vm1590_vm2, %v4737_v15, %v1587_v23  ;;  %vm1599_vm3 = vweird.f32 %v4739_v26 }
 0x413   : > { %4740 = vrsqrt.f32 %v1571_v52  ;;  %v1613_v33 = vmul.f32 %v1591_v39, %v5525_v37  ;;  %vm1600_vm6 = vmor %vm1598_vm4, %vm1599_vm3  ;;  %vm1608_vm7 = vweird.f32 %v1571_v52 }
 0x414   : > { %v1594_v35 = vmul.f32 %v4739_v26, %v1593_v27 }
 0x415   : > { %v1616_v18 = vpack.c.bf16 %v1613_v33, %v1612_v16 }
 0x416   : > { %v1595_v38 = vmul.f32 0.5, %v1594_v35 }
 0x417   : > { %1761 = vmatmul.bf16.vlgmr.msrb.gmra.mxu1 %v1616_v18  ;;  %1780 = vmatmul.bf16.vlgmr.msrb.gmra.mxu2 %v1616_v18 }
 0x418   : > { %1799 = vmatmul.bf16.vlgmr.msrb.gmra.mxu3 %v1616_v18  ;;  %v1596_v42 = vsub.f32 1.5, %v1595_v38 }
 0x419   : > { %v4741_v41 = vpop.eup %4740 }
 0x41a   : > { %v1603_v34 = vmul.f32 %v4741_v41, %v1571_v52  ;;  %v1597_v46 = vmul.f32 %v4739_v26, %v1596_v42  ;;  %vm1609_vm5 = vweird.f32 %v4741_v41 }
 0x41b   : > { %vm1610_vm8 = vmor %vm1608_vm7, %vm1609_vm5 }
 0x41c   : > { %v1604_v43 = vmul.f32 %v4741_v41, %v1603_v34  ;;  %v1601_v37 = vsel %vm1600_vm6, %v4739_v26, %v1597_v46 }
 0x41d   : > { %v1614_v51 = vmul.f32 %v1601_v37, %v5531_v17 }
 0x41e   : > { %v1605_v47 = vmul.f32 0.5, %v1604_v43 }
 0x420   : > { %v1606_v49 = vsub.f32 1.5, %v1605_v47 }
 0x422   : > { %v1607_v29 = vmul.f32 %v4741_v41, %v1606_v49 }
 0x424   : > { %v1611_v50 = vsel %vm1610_vm8, %v4741_v41, %v1607_v29 }
 0x425   : > { %v1615_v53 = vmul.f32 %v1611_v50, %v5537_v45 }
 0x427   : > { %v1617_v54 = vpack.c.bf16 %v1615_v53, %v1614_v51 }
 0x429   : > { %1766 = vmatmul.bf16.gmra.mxu1 %v1617_v54  ;;  %1785 = vmatmul.bf16.gmra.mxu2 %v1617_v54 }
 0x42a   : > { %1804 = vmatmul.bf16.gmra.mxu3 %v1617_v54 }
 0x494   : > { %v1762_v55 = vpop.f32.mrf.mxu1 }
 0x495   : > { %v1763_v32 = vadd.f32 %v1762_v55, %v1619_v0 }
 0x49a   : > { %v1781_v58 = vpop.f32.mrf.mxu2 }
 0x49b   : > { %v1800_v48 = vpop.f32.mrf.mxu3  ;;  %v1782_v10 = vadd.f32 %v1781_v58, %v1620_v1 }
 0x49c   : > { %v1764_v59 = vpop.f32.mrf.mxu1  ;;  %v1801_v33 = vadd.f32 %v1800_v48, %v1621_v20 }
 0x49d   : > { %v1765_v5 = vadd.f32 %v1764_v59, %v1619_v0  ;;  %v1810_v2 = vpack.c.bf16 %v1782_v10, %v1763_v32 }
 0x49e   : > { %v5713_v42 = vpack.c.bf16 %v1801_v33, %v1801_v33 }
 0x49f   : > { %v1846_v23 = vrot.slane %v1810_v2, 4  ;;  %v1890_v37 = vunpack.c.l.b16 %v1810_v2 }
 0x4a0   : > { %v2281_v29 = vunpack.c.l.b16 %v5713_v42 }
 0x4a1   : > { %v1896_v16 = vunpack.c.l.b16 %v1846_v23 }
 0x4a2   : > { %v1783_v60 = vpop.f32.mrf.mxu2 }
 0x4a3   : > { %v1802_v61 = vpop.f32.mrf.mxu3  ;;  %v1784_v9 = vadd.f32 %v1783_v60, %v1620_v1 }
 0x4a4   : > { %v1803_v27 = vadd.f32 %v1802_v61, %v1621_v20 }
 0x4a5   : > { %v1812_v13 = vpack.c.bf16 %v1784_v9, %v1765_v5 }
 0x4a6   : > { %v1767_v63 = vpop.f32.mrf.mxu1  ;;  %v5711_v38 = vpack.c.bf16 %v1803_v27, %v1803_v27 }
 0x4a7   : > { %v1768_v3 = vadd.f32 %v1767_v63, %v1619_v0  ;;  %v1847_v36 = vrot.slane %v1812_v13, 4  ;;  %v1891_v49 = vunpack.c.l.b16 %v1812_v13 }
 0x4a8   : > { %v2282_v47 = vunpack.c.l.b16 %v5711_v38 }
 0x4a9   : > { %v1897_v52 = vunpack.c.l.b16 %v1847_v36  ;;  %v1894_v51 = vpack.c.b16 %v1891_v49, %v1890_v37 }
 0x4aa   : > { %v2285_v50 = vpack.c.b16 %v2282_v47, %v2281_v29 }
 0x4ab   : > { %v1900_v18 = vpack.c.b16 %v1897_v52, %v1896_v16 }
 0x4ac   : > { %v1786_v17 = vpop.f32.mrf.mxu2 }
 0x4ad   : > { %v1787_v45 = vadd.f32 %v1786_v17, %v1620_v1  ;;  %v1805_v57 = vpop.f32.mrf.mxu3  ;;  %v1910_v43 = vsel %vm1902_vm9, %v1900_v18, 0 }
 0x4ae   : > { %v1769_v7 = vpop.f32.mrf.mxu1  ;;  %v1806_v24 = vadd.f32 %v1805_v57, %v1621_v20 }
 0x4af   : > { %v5696_v4 = vpack.c.bf16 %v1787_v45, %v1768_v3  ;;  %v1770_v11 = vadd.f32 %v1769_v7, %v1619_v0 }
 0x4b0   : > { %v1815_v35 = vpack.c.bf16 %v1806_v24, %v1806_v24 }
 0x4b1   : > { %1842 = vrot.lane.b32.xlu0 %v5696_v4, %s4961_s25  ;;  %1834 = vrot.lane.b32.xlu1 %v5696_v4, %s4962_s27  ;;  %v1848_v44 = vrot.slane %v5696_v4, 4  ;;  %v1892_v54 = vunpack.c.l.b16 %v5696_v4 }
 0x4b2   : > { %v2283_v34 = vunpack.c.l.b16 %v1815_v35 }
 0x4b3   : > { %v1898_v8 = vunpack.c.l.b16 %v1848_v44 }
 0x4b4   : > { %v1788_v56 = vpop.f32.mrf.mxu2 }
 0x4b5   : > { %v1789_v28 = vadd.f32 %v1788_v56, %v1620_v1  ;;  %v1807_v31 = vpop.f32.mrf.mxu3 }
 0x4b6   : > { %v1808_v40 = vadd.f32 %v1807_v31, %v1621_v20 }
 0x4b7   : > { %v1816_v15 = vpack.c.bf16 %v1789_v28, %v1770_v11 }
 0x4b8   : > { %v1817_v39 = vpack.c.bf16 %v1808_v40, %v1808_v40 }
 0x4b9   : > { %1836 = vrot.lane.b32.xlu2 %v1816_v15, %s4962_s27  ;;  %1832 = vrot.lane.b32.xlu0 %v1812_v13, %s4962_s27  ;;  %v1849_v19 = vrot.slane %v1816_v15, 4  ;;  %v1893_v53 = vunpack.c.l.b16 %v1816_v15 }
 0x4ba   : > { %1830 = vrot.lane.b32.xlu1 %v1810_v2, %s4962_s27  ;;  %v2284_v41 = vunpack.c.l.b16 %v1817_v39 }
 0x4bb   : > { %v1899_v21 = vunpack.c.l.b16 %v1849_v19  ;;  %v1895_v55 = vpack.c.b16 %v1893_v53, %v1892_v54 }
 0x4bc   : > { %v2286_v46 = vpack.c.b16 %v2284_v41, %v2283_v34 }
 0x4bd   : > { %v1901_v22 = vpack.c.b16 %v1899_v21, %v1898_v8 }
 0x4bf   : > { %v1913_v26 = vsel %vm1902_vm9, %v1901_v22, 0 }
 0x4c0   : > { %1921 = vmatpush.bf16.xpose.msra.mxu0 %v1913_v26 }
 0x4c1   : > { %1844 = vrot.lane.b32.xlu2 %v1816_v15, %s4961_s25  ;;  %1826 = vrot.lane.b32.xlu0 %v5696_v4, %s4963_s6 }
 0x4c2   : > { %1840 = vrot.lane.b32.xlu1 %v1812_v13, %s4961_s25 }
 0x4c8   : > { %1922 = vmatpush.bf16.xpose.msra.mxu0 %v1910_v43 }
 0x4c9   : > { %1838 = vrot.lane.b32.xlu2 %v1810_v2, %s4961_s25  ;;  %1824 = vrot.lane.b32.xlu0 %v1812_v13, %s4963_s6 }
 0x4ca   : > { %1822 = vrot.lane.b32.xlu1 %v1810_v2, %s4963_s6 }
 0x4cf   : > { %4151 = vmatmul.msk.bf16.vlgmr.msra.gmra.mxu0 %vm1902_vm9, %v1894_v51 }
 0x4d0   : > { %2301 = vmatpush.bf16.msrb.mxu0 %v2286_v46 }
 0x4d1   : > { %1828 = vrot.lane.b32.xlu2 %v1816_v15, %s4963_s6  ;;  %1886 = vrot.lane.b32.xlu0 %v1815_v35, %s4961_s25 }
 0x4d2   : > { %1880 = vrot.lane.b32.xlu1 %v1817_v39, %s4962_s27 }
 0x4d4   : > { %2302 = vmatpush.bf16.msrb.mxu0 %v2285_v50 }
 0x4d9   : > { %1878 = vrot.lane.b32.xlu2 %v1815_v35, %s4962_s27  ;;  %1874 = vrot.lane.b32.xlu0 %v5713_v42, %s4962_s27 }
 0x4df   : > { %4152 = vmatmul.msk.bf16.gmra.mxu0 %vm1902_vm9, %v1895_v55 }
 0x4e1   : > { %1888 = vrot.lane.b32.xlu2 %v1817_v39, %s4961_s25  ;;  %1876 = vrot.lane.b32.xlu0 %v5711_v38, %s4962_s27 }
 0x4e9   : > { %1870 = vrot.lane.b32.xlu0 %v1815_v35, %s4963_s6 }
 0x4f1   : > { %1872 = vrot.lane.b32.xlu0 %v1817_v39, %s4963_s6 }
 0x513   : > { %v5735_v58 = vpop.permute.xlu2 %1836 }
 0x514   : > { %v1857_v60 = vrot.slane %v5735_v58, 4 }
 0x516   : > { %v1986_v45 = vunpack.c.l.b16 %v1857_v60 }
 0x51b   : > { %v5737_v48 = vpop.permute.xlu2 %1844 }
 0x51c   : > { %v1861_v59 = vrot.slane %v5737_v48, 4 }
 0x51e   : > { %v2029_v17 = vunpack.c.l.b16 %v1861_v59 }
 0x523   : > { %v1839_v61 = vpop.permute.xlu2 %1838  ;;  %v5741_v62 = vpop.permute.xlu0 %1842 }
 0x524   : > { %v1860_v63 = vrot.slane %v5741_v62, 4  ;;  %v5744_v0 = vpop.permute.xlu1 %1834  ;;  %v1858_v31 = vrot.slane %v1839_v61, 4  ;;  %v2020_v29 = vunpack.c.l.b16 %v1839_v61 }
 0x525   : > { %v1856_v1 = vrot.slane %v5744_v0, 4  ;;  %v1979_v59 = vunpack.c.l.b16 %v5744_v0 }
 0x526   : > { %v2028_v3 = vunpack.c.l.b16 %v1860_v63  ;;  %v2026_v26 = vunpack.c.l.b16 %v1858_v31 }
 0x527   : > { %v1985_v4 = vunpack.c.l.b16 %v1856_v1 }
 0x528   : > { %v2031_v57 = vpack.c.b16 %v2029_v17, %v2028_v3 }
 0x529   : > { %v1988_v7 = vpack.c.b16 %v1986_v45, %v1985_v4 }
 0x52a   : > { %v2042_v9 = vsel %vm1902_vm9, %v2031_v57, 0  ;;  %v1980_v57 = vunpack.c.l.b16 %v5735_v58 }
 0x52b   : > { %2050 = vmatpush.bf16.xpose.msra.mxu3 %v2042_v9  ;;  %v1833_v10 = vpop.permute.xlu0 %1832  ;;  %v1999_v56 = vsel %vm1902_vm9, %v1988_v7, 0  ;;  %v5749_v28 = vpop.permute.xlu2 %1828 }
 0x52c   : > { %v1855_v5 = vrot.slane %v1833_v10, 4  ;;  %2007 = vmatpush.bf16.xpose.msra.mxu2 %v1999_v56  ;;  %v1831_v11 = vpop.permute.xlu1 %1830  ;;  %v1853_v2 = vrot.slane %v5749_v28, 4  ;;  %v1978_v36 = vunpack.c.l.b16 %v1833_v10  ;;  %v1982_v9 = vpack.c.b16 %v1980_v57, %v1979_v59 }
 0x52d   : > { %v1854_v32 = vrot.slane %v1831_v11, 4  ;;  %v1977_v40 = vunpack.c.l.b16 %v1831_v11 }
 0x52e   : > { %v1984_v13 = vunpack.c.l.b16 %v1855_v5  ;;  %v1943_v23 = vunpack.c.l.b16 %v1853_v2  ;;  %v2022_v5 = vunpack.c.l.b16 %v5741_v62 }
 0x52f   : > { %v1983_v15 = vunpack.c.l.b16 %v1854_v32  ;;  %v1981_v16 = vpack.c.b16 %v1978_v36, %v1977_v40  ;;  %v2023_v32 = vunpack.c.l.b16 %v5737_v48 }
 0x531   : > { %v1987_v44 = vpack.c.b16 %v1984_v13, %v1983_v15  ;;  %v2025_v13 = vpack.c.b16 %v2023_v32, %v2022_v5 }
 0x533   : > { %v5752_v19 = vpop.permute.xlu0 %1826  ;;  %v1996_v20 = vsel %vm1902_vm9, %v1987_v44, 0  ;;  %v1879_v52 = vpop.permute.xlu2 %1878 }
 0x534   : > { %v1852_v8 = vrot.slane %v5752_v19, 4  ;;  %2008 = vmatpush.bf16.xpose.msra.mxu2 %v1996_v20  ;;  %v1841_v21 = vpop.permute.xlu1 %1840  ;;  %v2369_v17 = vunpack.c.l.b16 %v1879_v52  ;;  %v1936_v20 = vunpack.c.l.b16 %v5752_v19 }
 0x535   : > { %v1859_v22 = vrot.slane %v1841_v21, 4  ;;  %v2021_v46 = vunpack.c.l.b16 %v1841_v21  ;;  %v1937_v21 = vunpack.c.l.b16 %v5749_v28 }
 0x536   : > { %v1942_v24 = vunpack.c.l.b16 %v1852_v8 }
 0x537   : > { %v2027_v27 = vunpack.c.l.b16 %v1859_v22  ;;  %v2024_v50 = vpack.c.b16 %v2021_v46, %v2020_v29  ;;  %v1939_v36 = vpack.c.b16 %v1937_v21, %v1936_v20 }
 0x538   : > { %v1945_v39 = vpack.c.b16 %v1943_v23, %v1942_v24 }
 0x539   : > { %v2030_v33 = vpack.c.b16 %v2027_v27, %v2026_v26 }
 0x53a   : > { %v1956_v35 = vsel %vm1902_vm9, %v1945_v39, 0 }
 0x53b   : > { %4155 = vmatmul.msk.bf16.vlgmr.msra.gmra.mxu2 %vm1902_vm9, %v1981_v16  ;;  %1964 = vmatpush.bf16.xpose.msra.mxu1 %v1956_v35  ;;  %v1825_v18 = vpop.permute.xlu0 %1824  ;;  %v2039_v41 = vsel %vm1902_vm9, %v2030_v33, 0  ;;  %v1889_v51 = vpop.permute.xlu2 %1888 }
 0x53c   : > { %v1851_v34 = vrot.slane %v1825_v18, 4  ;;  %2051 = vmatpush.bf16.xpose.msra.mxu3 %v2039_v41  ;;  %v1823_v43 = vpop.permute.xlu1 %1822  ;;  %v2413_v60 = vunpack.c.l.b16 %v1889_v51  ;;  %v1935_v3 = vunpack.c.l.b16 %v1825_v18 }
 0x53d   : > { %v1850_v47 = vrot.slane %v1823_v43, 4  ;;  %v1934_v45 = vunpack.c.l.b16 %v1823_v43 }
 0x53e   : > { %v1941_v49 = vunpack.c.l.b16 %v1851_v34 }
 0x53f   : > { %v1940_v37 = vunpack.c.l.b16 %v1850_v47  ;;  %v1938_v10 = vpack.c.b16 %v1935_v3, %v1934_v45 }
 0x541   : > { %v1944_v53 = vpack.c.b16 %v1941_v49, %v1940_v37 }
 0x543   : > { %4157 = vmatmul.msk.bf16.vlgmr.msra.gmra.mxu3 %vm1902_vm9, %v2024_v50  ;;  %v1887_v54 = vpop.permute.xlu0 %1886  ;;  %v1953_v55 = vsel %vm1902_vm9, %v1944_v53, 0 }
 0x544   : > { %v2412_v63 = vunpack.c.l.b16 %v1887_v54  ;;  %1965 = vmatpush.bf16.xpose.msra.mxu1 %v1953_v55  ;;  %v1881_v1 = vpop.permute.xlu1 %1880 }
 0x545   : > { %v2370_v4 = vunpack.c.l.b16 %v1881_v1 }
 0x546   : > { %v2415_v61 = vpack.c.b16 %v2413_v60, %v2412_v63 }
 0x547   : > { %v2372_v7 = vpack.c.b16 %v2370_v4, %v2369_v17 }
 0x548   : > { %2430 = vmatpush.bf16.msrb.mxu3 %v2415_v61 }
 0x549   : > { %2387 = vmatpush.bf16.msrb.mxu2 %v2372_v7 }
 0x54b   : > { %4153 = vmatmul.msk.bf16.vlgmr.msra.gmra.mxu1 %vm1902_vm9, %v1938_v10  ;;  %4156 = vmatmul.msk.bf16.gmra.mxu2 %vm1902_vm9, %v1982_v9  ;;  %v1875_v0 = vpop.permute.xlu0 %1874 }
 0x54c   : > { %v1924_v56 = vpop.f32.mrf.mxu0  ;;  %v2367_v44 = vunpack.c.l.b16 %v1875_v0 }
 0x54d   : > { %v5766_v11 = vmul.f32 0.17677669, %v1924_v56 }
 0x54f   : > { %v2079_v58 = vsel %vm1902_vm9, %v5766_v11, -inf }
 0x550   : > { %2080 = vmax.xlane.f32.xlu2 %v2079_v58 }
 0x553   : > { %4158 = vmatmul.msk.bf16.gmra.mxu3 %vm1902_vm9, %v2025_v13  ;;  %v1877_v15 = vpop.permute.xlu0 %1876 }
 0x554   : > { %v2368_v2 = vunpack.c.l.b16 %v1877_v15  ;;  %v1926_v31 = vpop.f32.mrf.mxu0 }
 0x555   : > { %v5773_v8 = vmul.f32 0.17677669, %v1926_v31 }
 0x556   : > { %v2371_v62 = vpack.c.b16 %v2368_v2, %v2367_v44 }
 0x557   : > { %v2082_v48 = vsel %vm1902_vm9, %v5773_v8, -inf }
 0x558   : > { %2388 = vmatpush.bf16.msrb.mxu2 %v2371_v62  ;;  %2083 = vmax.xlane.f32.xlu1 %v2082_v48 }
 0x55b   : > { %4154 = vmatmul.msk.bf16.gmra.mxu1 %vm1902_vm9, %v1939_v36  ;;  %v1871_v40 = vpop.permute.xlu0 %1870 }
 0x55c   : > { %v1929_v22 = vpop.f32.mrf.mxu0  ;;  %v2326_v26 = vunpack.c.l.b16 %v1871_v40 }
 0x55d   : > { %v5779_v23 = vmul.f32 0.17677669, %v1929_v22 }
 0x55f   : > { %v2085_v19 = vsel %vm1902_vm9, %v5779_v23, -inf }
 0x560   : > { %2086 = vmax.xlane.f32.xlu1 %v2085_v19 }
 0x563   : > { %v1873_v24 = vpop.permute.xlu0 %1872 }
 0x564   : > { %v2327_v52 = vunpack.c.l.b16 %v1873_v24  ;;  %v1931_v28 = vpop.f32.mrf.mxu0 }
 0x565   : > { %v5783_v27 = vmul.f32 0.17677669, %v1931_v28 }
 0x566   : > { %v2329_v39 = vpack.c.b16 %v2327_v52, %v2326_v26 }
 0x567   : > { %v2088_v16 = vsel %vm1902_vm9, %v5783_v27, -inf }
 0x568   : > { %2344 = vmatpush.bf16.msrb.mxu1 %v2329_v39  ;;  %2089 = vmax.xlane.f32.xlu2 %v2088_v16 }
 0x5be   : > { %v2010_v33 = vpop.f32.mrf.mxu2 }
 0x5bf   : > { %v2071_v35 = vmul.f32 0.17677669, %v2010_v33 }
 0x5c1   : > { %v2103_v18 = vsel %vm1902_vm9, %v2071_v35, -inf }
 0x5c2   : > { %2104 = vmax.xlane.f32.xlu2 %v2103_v18 }
 0x5c3   : > { %v5820_v2 = vpop.xlane.xlu2 %2080 }
 0x5c6   : > { %v2053_v41 = vpop.f32.mrf.mxu3  ;;  %v2012_v43 = vpop.f32.mrf.mxu2 }
 0x5c7   : > { %v2075_v34 = vmul.f32 0.17677669, %v2053_v41  ;;  %v2072_v50 = vmul.f32 0.17677669, %v2012_v43 }
 0x5c8   : > { %v1967_v46 = vpop.f32.mrf.mxu1 }
 0x5c9   : > { %v2067_v47 = vmul.f32 0.17677669, %v1967_v46  ;;  %v2115_v49 = vsel %vm1902_vm9, %v2075_v34, -inf  ;;  %v2106_v63 = vsel %vm1902_vm9, %v2072_v50, -inf }
 0x5ca   : > { %2116 = vmax.xlane.f32.xlu0 %v2115_v49 }
 0x5cb   : > { %v2091_v29 = vsel %vm1902_vm9, %v2067_v47, -inf  ;;  %v2084_v44 = vpop.xlane.xlu1 %2083 }
 0x5cc   : > { %2092 = vmax.xlane.f32.xlu1 %v2091_v29 }
 0x5ce   : > { %v2055_v37 = vpop.f32.mrf.mxu3  ;;  %v2015_v59 = vpop.f32.mrf.mxu2 }
 0x5cf   : > { %v5790_v51 = vmul.f32 0.17677669, %v2055_v37  ;;  %v5799_v1 = vmul.f32 0.17677669, %v2015_v59 }
 0x5d0   : > { %v1969_v53 = vpop.f32.mrf.mxu1 }
 0x5d1   : > { %v5792_v54 = vmul.f32 0.17677669, %v1969_v53  ;;  %v2118_v55 = vsel %vm1902_vm9, %v5790_v51, -inf  ;;  %v2109_v61 = vsel %vm1902_vm9, %v5799_v1, -inf }
 0x5d2   : > { %2119 = vmax.xlane.f32.xlu2 %v2118_v55 }
 0x5d3   : > { %v2094_v60 = vsel %vm1902_vm9, %v5792_v54, -inf  ;;  %v5822_v31 = vpop.xlane.xlu1 %2086 }
 0x5d4   : > { %2095 = vmax.xlane.f32.xlu0 %v2094_v60  ;;  %2107 = vmax.xlane.f32.xlu1 %v2106_v63 }
 0x5d6   : > { %v2058_v17 = vpop.f32.mrf.mxu3  ;;  %v2017_v9 = vpop.f32.mrf.mxu2 }
 0x5d7   : > { %v5801_v3 = vmul.f32 0.17677669, %v2058_v17  ;;  %v2074_v0 = vmul.f32 0.17677669, %v2017_v9 }
 0x5d8   : > { %v1972_v45 = vpop.f32.mrf.mxu1 }
 0x5d9   : > { %v5803_v4 = vmul.f32 0.17677669, %v1972_v45  ;;  %v2121_v57 = vsel %vm1902_vm9, %v5801_v3, -inf  ;;  %v2112_v15 = vsel %vm1902_vm9, %v2074_v0, -inf }
 0x5da   : > { %2110 = vmax.xlane.f32.xlu2 %v2109_v61 }
 0x5db   : > { %v2097_v7 = vsel %vm1902_vm9, %v5803_v4, -inf  ;;  %v5824_v20 = vpop.xlane.xlu2 %2089 }
 0x5dc   : > { %2122 = vmax.xlane.f32.xlu0 %v2121_v57  ;;  %2098 = vmax.xlane.f32.xlu1 %v2097_v7  ;;  %v2128_v57 = vsub.f32 %v5773_v8, %v2084_v44  ;;  %v2129_v8 = vsub.f32 %v5779_v23, %v5822_v31 }
 0x5de   : > { %v2060_v10 = vpop.f32.mrf.mxu3  ;;  %v2145_v9 = vmul.f32 1.442695, %v2128_v57 }
 0x5df   : > { %v5811_v56 = vmul.f32 0.17677669, %v2060_v10 }
 0x5e0   : > { %v1974_v5 = vpop.f32.mrf.mxu1 }
 0x5e1   : > { %v5813_v32 = vmul.f32 0.17677669, %v1974_v5  ;;  %v2124_v58 = vsel %vm1902_vm9, %v5811_v56, -inf }
 0x5e2   : > { %2125 = vmax.xlane.f32.xlu2 %v2124_v58 }
 0x5e3   : > { %v2100_v13 = vsel %vm1902_vm9, %v5813_v32, -inf }
 0x5e4   : > { %2101 = vmax.xlane.f32.xlu0 %v2100_v13  ;;  %2113 = vmax.xlane.f32.xlu1 %v2112_v15  ;;  %v2147_v13 = vmul.f32 1.442695, %v2129_v8 }
 0x635   : > { %v2105_v48 = vpop.xlane.xlu2 %2104 }
 0x636   : > { %v2135_v19 = vsub.f32 %v2071_v35, %v2105_v48 }
 0x638   : > { %v2159_v26 = vmul.f32 1.442695, %v2135_v19 }
 0x63d   : > { %v2117_v62 = vpop.xlane.xlu0 %2116 }
 0x63e   : > { %v2139_v21 = vsub.f32 %v2075_v34, %v2117_v62 }
 0x63f   : > { %v2093_v36 = vpop.xlane.xlu1 %2092 }
 0x640   : > { %v2167_v40 = vmul.f32 1.442695, %v2139_v21  ;;  %v2131_v22 = vsub.f32 %v2067_v47, %v2093_v36 }
 0x642   : > { %4742 = vpow2.f32 %v2167_v40  ;;  %v2151_v24 = vmul.f32 1.442695, %v2131_v22 }
 0x644   : > { %4744 = vpow2.f32 %v2151_v24 }
 0x645   : > { %4746 = vpow2.f32 %v2159_v26  ;;  %v2120_v48 = vpop.xlane.xlu2 %2119 }
 0x646   : > { %v2140_v40 = vsub.f32 %v5790_v51, %v2120_v48 }
 0x647   : > { %v2108_v52 = vpop.xlane.xlu1 %2107  ;;  %v2096_v49 = vpop.xlane.xlu0 %2095 }
 0x648   : > { %v5826_v28 = vpop.eup %4742  ;;  %v2136_v39 = vsub.f32 %v2072_v50, %v2108_v52  ;;  %v2132_v55 = vsub.f32 %v5792_v54, %v2096_v49  ;;  %v2169_v24 = vmul.f32 1.442695, %v2140_v40 }
 0x649   : > { %v2211_v16 = vsel %vm1902_vm9, %v5826_v28, 0.0 }
 0x64a   : > { %v5830_v33 = vpop.eup %4744  ;;  %v2161_v18 = vmul.f32 1.442695, %v2136_v39  ;;  %2212 = vadd.xlane.f32.xlu1 %v2211_v16  ;;  %v2153_v60 = vmul.f32 1.442695, %v2132_v55 }
 0x64b   : > { %v2187_v41 = vsel %vm1902_vm9, %v5830_v33, 0.0  ;;  %v5834_v35 = vpop.eup %4746 }
 0x64c   : > { %2188 = vadd.xlane.f32.xlu0 %v2187_v41  ;;  %4748 = vpow2.f32 %v2161_v18  ;;  %v2199_v43 = vsel %vm1902_vm9, %v5834_v35, 0.0 }
 0x64d   : > { %v2111_v36 = vpop.xlane.xlu2 %2110 }
 0x64e   : > { %v2137_v26 = vsub.f32 %v5799_v1, %v2111_v36 }
 0x64f   : > { %v2099_v47 = vpop.xlane.xlu1 %2098  ;;  %v2123_v50 = vpop.xlane.xlu0 %2122 }
 0x650   : > { %v2133_v59 = vsub.f32 %v5803_v4, %v2099_v47  ;;  %v2141_v63 = vsub.f32 %v5801_v3, %v2123_v50  ;;  %v2163_v16 = vmul.f32 1.442695, %v2137_v26 }
 0x652   : > { %v5836_v34 = vpop.eup %4748  ;;  %v2155_v17 = vmul.f32 1.442695, %v2133_v59  ;;  %v2171_v45 = vmul.f32 1.442695, %v2141_v63 }
 0x653   : > { %v2202_v46 = vsel %vm1902_vm9, %v5836_v34, 0.0 }
 0x654   : > { %2200 = vadd.xlane.f32.xlu0 %v2199_v43  ;;  %2203 = vadd.xlane.f32.xlu2 %v2202_v46 }
 0x655   : > { %v2126_v19 = vpop.xlane.xlu2 %2125 }
 0x657   : > { %v2114_v29 = vpop.xlane.xlu1 %2113 }
 0x658   : > { %v2138_v37 = vsub.f32 %v2074_v0, %v2114_v29 }
 0x65a   : > { %v2165_v53 = vmul.f32 1.442695, %v2138_v37 }
 0x65c   : > { %4750 = vpow2.f32 %v2165_v53 }
 0x65d   : > { %4752 = vpow2.f32 %v2153_v60 }
 0x65e   : > { %4754 = vpow2.f32 %v2155_v17 }
 0x65f   : > { %4756 = vpow2.f32 %v2171_v45 }
 0x660   : > { %4758 = vpow2.f32 %v2145_v9 }
 0x662   : > { %v5851_v61 = vpop.eup %4750 }
 0x663   : > { %1882 = vrot.lane.b32.xlu1 %v5713_v42, %s4961_s25  ;;  %v2208_v54 = vsel %vm1902_vm9, %v5851_v61, 0.0  ;;  %v5857_v4 = vpop.eup %4752 }
 0x664   : > { %v5859_v10 = vpop.eup %4754  ;;  %v2190_v0 = vsel %vm1902_vm9, %v5857_v4, 0.0 }
 0x665   : > { %v5863_v5 = vpop.eup %4756 }
 0x666   : > { %v2217_v58 = vsel %vm1902_vm9, %v5863_v5, 0.0  ;;  %v5871_v15 = vpop.eup %4758 }
 0x667   : > { %v2178_v62 = vsel %vm1902_vm9, %v5871_v15, 0.0 }
 0x668   : > { %1884 = vrot.lane.b32.xlu0 %v5711_v38, %s4961_s25 }
 0x66c   : > { %1866 = vrot.lane.b32.xlu2 %v5713_v42, %s4963_s6  ;;  %v2102_v42 = vpop.xlane.xlu0 %2101 }
 0x66d   : > { %v2134_v7 = vsub.f32 %v5813_v32, %v2102_v42  ;;  %v2193_v32 = vsel %vm1902_vm9, %v5859_v10, 0.0 }
 0x66f   : > { %v2157_v3 = vmul.f32 1.442695, %v2134_v7 }
 0x671   : > { %4760 = vpow2.f32 %v2157_v3 }
 0x672   : > { %4762 = vpow2.f32 %v2147_v13 }
 0x673   : > { %4764 = vpow2.f32 %v2169_v24 }
 0x677   : > { %v5873_v44 = vpop.eup %4760 }
 0x678   : > { %v2196_v23 = vsel %vm1902_vm9, %v5873_v44, 0.0  ;;  %v5879_v31 = vpop.eup %4762 }
 0x679   : > { %v2181_v21 = vsel %vm1902_vm9, %v5879_v31, 0.0  ;;  %v5887_v18 = vpop.eup %4764 }
 0x67a   : > { %v2214_v46 = vsel %vm1902_vm9, %v5887_v18, 0.0 }
 0x68d   : > { %2209 = vadd.xlane.f32.xlu1 %v2208_v54 }
 0x692   : > { %2191 = vadd.xlane.f32.xlu0 %v2190_v0 }
 0x695   : > { %2194 = vadd.xlane.f32.xlu1 %v2193_v32  ;;  %2218 = vadd.xlane.f32.xlu2 %v2217_v58 }
 0x69d   : > { %2179 = vadd.xlane.f32.xlu1 %v2178_v62  ;;  %2197 = vadd.xlane.f32.xlu2 %v2196_v23 }
 0x6a5   : > { %2182 = vadd.xlane.f32.xlu2 %v2181_v21 }
 0x6a6   : > { %1868 = vrot.lane.b32.xlu0 %v5711_v38, %s4963_s6  ;;  %v2142_v38 = vsub.f32 %v5811_v56, %v2126_v19  ;;  %v2127_v56 = vsub.f32 %v5766_v11, %v5820_v2  ;;  %v2130_v11 = vsub.f32 %v5783_v27, %v5824_v20 }
 0x6a8   : > { %v2173_v29 = vmul.f32 1.442695, %v2142_v38  ;;  %v2149_v7 = vmul.f32 1.442695, %v2130_v11 }
 0x6bd   : > { %v5893_v47 = vpop.xlane.xlu1 %2212 }
 0x6bf   : > { %v2189_v22 = vpop.xlane.xlu0 %2188 }
 0x6c7   : > { %v2201_v52 = vpop.xlane.xlu0 %2200  ;;  %v2204_v39 = vpop.xlane.xlu2 %2203 }
 0x6c8   : > { %4766 = vrcp.f32 %v2201_v52 }
 0x6c9   : > { %4768 = vrcp.f32 %v2204_v39 }
 0x6ca   : > { %4770 = vpow2.f32 %v2163_v16 }
 0x6cb   : > { %4772 = vpow2.f32 %v2173_v29 }
 0x6ce   : > { %v4767_v41 = vpop.eup %4766 }
 0x6cf   : > { %v4769_v43 = vpop.eup %4768  ;;  %v2247_v51 = vmul.f32 %v4767_v41, %v5834_v35  ;;  %v1867_v27 = vpop.permute.xlu2 %1866 }
 0x6d0   : > { %v2248_v1 = vmul.f32 %v4769_v43, %v5836_v34  ;;  %2215 = vadd.xlane.f32.xlu0 %v2214_v46  ;;  %v5896_v53 = vpop.eup %4770  ;;  %v2143_v34 = vmul.f32 1.442695, %v2127_v56  ;;  %v2324_v24 = vunpack.c.l.b16 %v1867_v27 }
 0x6d1   : > { %v2263_v49 = vpack.c.bf16 %v2247_v51, %v2247_v51  ;;  %v2205_v59 = vsel %vm1902_vm9, %v5896_v53, 0.0  ;;  %v5903_v42 = vpop.eup %4772 }
 0x6d2   : > { %v2264_v37 = vpack.c.bf16 %v2248_v1, %v2248_v1  ;;  %4774 = vpow2.f32 %v2143_v34  ;;  %v2220_v2 = vsel %vm1902_vm9, %v5903_v42, 0.0 }
 0x6d3   : > { %v2361_v50 = vunpack.c.l.b16 %v2263_v49  ;;  %4776 = vpow2.f32 %v2149_v7 }
 0x6d4   : > { %v2362_v55 = vunpack.c.l.b16 %v2264_v37 }
 0x6d5   : > { %v1883_v60 = vpop.permute.xlu1 %1882 }
 0x6d6   : > { %v2365_v35 = vpack.c.b16 %v2362_v55, %v2361_v50  ;;  %v2410_v17 = vunpack.c.l.b16 %v1883_v60 }
 0x6d8   : > { %4163 = vmatmul.msk.bf16.vlgmr.msrb.gmra.mxu2 %vm1902_vm9, %v2365_v35  ;;  %2206 = vadd.xlane.f32.xlu0 %v2205_v59  ;;  %v5909_v54 = vpop.eup %4774 }
 0x6d9   : > { %v2175_v9 = vsel %vm1902_vm9, %v5909_v54, 0.0  ;;  %v5913_v3 = vpop.eup %4776 }
 0x6da   : > { %v1885_v63 = vpop.permute.xlu0 %1884  ;;  %v2184_v0 = vsel %vm1902_vm9, %v5913_v3, 0.0 }
 0x6db   : > { %v2411_v45 = vunpack.c.l.b16 %v1885_v63 }
 0x6dd   : > { %v2414_v57 = vpack.c.b16 %v2411_v45, %v2410_v17 }
 0x6df   : > { %2431 = vmatpush.bf16.msrb.mxu3 %v2414_v57 }
 0x6e0   : > { %2221 = vadd.xlane.f32.xlu0 %v2220_v2 }
 0x6e8   : > { %2176 = vadd.xlane.f32.xlu0 %v2175_v9 }
 0x6f0   : > { %2185 = vadd.xlane.f32.xlu0 %v2184_v0 }
 0x700   : > { %v2210_v32 = vpop.xlane.xlu1 %2209 }
 0x705   : > { %v2192_v20 = vpop.xlane.xlu0 %2191 }
 0x706   : > { %4778 = vrcp.f32 %v2192_v20 }
 0x707   : > { %4780 = vrcp.f32 %v2189_v22 }
 0x708   : > { %v2219_v8 = vpop.xlane.xlu2 %2218  ;;  %v2195_v40 = vpop.xlane.xlu1 %2194 }
 0x70c   : > { %v4779_v58 = vpop.eup %4778 }
 0x70d   : > { %v4781_v13 = vpop.eup %4780  ;;  %v2244_v62 = vmul.f32 %v4779_v58, %v5857_v4 }
 0x70e   : > { %v2243_v23 = vmul.f32 %v4781_v13, %v5830_v33 }
 0x70f   : > { %v2260_v21 = vpack.c.bf16 %v2244_v62, %v2244_v62 }
 0x710   : > { %v2198_v48 = vpop.xlane.xlu2 %2197  ;;  %v2259_v36 = vpack.c.bf16 %v2243_v23, %v2243_v23  ;;  %v2180_v45 = vpop.xlane.xlu1 %2179 }
 0x711   : > { %4782 = vrcp.f32 %v2198_v48  ;;  %v2319_v52 = vunpack.c.l.b16 %v2260_v21 }
 0x712   : > { %4784 = vrcp.f32 %v2195_v40  ;;  %v2318_v22 = vunpack.c.l.b16 %v2259_v36 }
 0x713   : > { %4786 = vrcp.f32 %v5893_v47 }
 0x714   : > { %v2322_v16 = vpack.c.b16 %v2319_v52, %v2318_v22 }
 0x717   : > { %v4783_v41 = vpop.eup %4782 }
 0x718   : > { %v1869_v19 = vpop.permute.xlu0 %1868  ;;  %v4785_v4 = vpop.eup %4784  ;;  %v2246_v33 = vmul.f32 %v4783_v41, %v5873_v44 }
 0x719   : > { %v2325_v26 = vunpack.c.l.b16 %v1869_v19  ;;  %v2245_v38 = vmul.f32 %v4785_v4, %v5859_v10  ;;  %v4787_v37 = vpop.eup %4786  ;;  %v2183_v40 = vpop.xlane.xlu2 %2182 }
 0x71a   : > { %v2262_v43 = vpack.c.bf16 %v2246_v33, %v2246_v33  ;;  %v2251_v50 = vmul.f32 %v4787_v37, %v5826_v28 }
 0x71b   : > { %v2328_v39 = vpack.c.b16 %v2325_v26, %v2324_v24  ;;  %v2261_v51 = vpack.c.bf16 %v2245_v38, %v2245_v38 }
 0x71c   : > { %v2321_v46 = vunpack.c.l.b16 %v2262_v43  ;;  %v2267_v56 = vpack.c.bf16 %v2251_v50, %v2251_v50 }
 0x71d   : > { %2345 = vmatpush.bf16.msrb.mxu1 %v2328_v39  ;;  %v2320_v1 = vunpack.c.l.b16 %v2261_v51 }
 0x71e   : > { %v2404_v60 = vunpack.c.l.b16 %v2267_v56 }
 0x71f   : > { %v2323_v49 = vpack.c.b16 %v2321_v46, %v2320_v1 }
 0x720   : > { %4161 = vmatmul.msk.bf16.vlgmr.msrb.gmra.mxu1 %vm1902_vm9, %v2322_v16 }
 0x730   : > { %4162 = vmatmul.msk.bf16.gmra.mxu1 %vm1902_vm9, %v2323_v49 }
 0x743   : > { %v2216_v29 = vpop.xlane.xlu0 %2215 }
 0x744   : > { %4788 = vrcp.f32 %v2216_v29 }
 0x745   : > { %4790 = vrcp.f32 %v2210_v32 }
 0x74a   : > { %v4789_v55 = vpop.eup %4788 }
 0x74b   : > { %v2252_v44 = vmul.f32 %v4789_v55, %v5887_v18  ;;  %v2207_v10 = vpop.xlane.xlu0 %2206  ;;  %v4791_v35 = vpop.eup %4790 }
 0x74c   : > { %4792 = vrcp.f32 %v2207_v10  ;;  %v2250_v63 = vmul.f32 %v4791_v35, %v5851_v61 }
 0x74d   : > { %v2268_v59 = vpack.c.bf16 %v2252_v44, %v2252_v44  ;;  %4794 = vrcp.f32 %v2219_v8 }
 0x74e   : > { %v2266_v11 = vpack.c.bf16 %v2250_v63, %v2250_v63  ;;  %v4545_v63 = vld [vmem:[%s6719_s9 + $0x38] sm:$0xff] }
 0x74f   : > { %v2405_v34 = vunpack.c.l.b16 %v2268_v59  ;;  %2558 = vmatpush.bf16.msra.mxu0 %v4545_v63 }
 0x750   : > { %v2364_v9 = vunpack.c.l.b16 %v2266_v11  ;;  %v4539_v11 = vld [vmem:[%s6719_s9 + $0x8] sm:$0xff] }
 0x751   : > { %v2408_v47 = vpack.c.b16 %v2405_v34, %v2404_v60 }
 0x752   : > { %v4793_v17 = vpop.eup %4792 }
 0x753   : > { %4165 = vmatmul.msk.bf16.vlgmr.msrb.gmra.mxu3 %vm1902_vm9, %v2408_v47  ;;  %v2222_v57 = vpop.xlane.xlu0 %2221  ;;  %v2249_v28 = vmul.f32 %v4793_v17, %v5896_v53  ;;  %v4795_v2 = vpop.eup %4794  ;;  %v4544_v47 = vld [vmem:[%s6719_s9 + $0x30] sm:$0xff]  ;;  %v4543_v17 = vld [vmem:[%s6719_s9 + $0x28] sm:$0xff] }
 0x754   : > { %4796 = vrcp.f32 %v2222_v57  ;;  %v2253_v0 = vmul.f32 %v4795_v2, %v5863_v5  ;;  %2559 = vmatpush.bf16.msra.mxu0 %v4544_v47  ;;  %v4541_v57 = vld [vmem:[%s6719_s9 + $0x18] sm:$0xff]  ;;  %v4538_v2 = vld [vmem:[%s6719_s9] sm:$0xff] }
 0x755   : > { %v2265_v18 = vpack.c.bf16 %v2249_v28, %v2249_v28  ;;  %4798 = vrcp.f32 %v2180_v45  ;;  %v4542_v45 = vld [vmem:[%s6719_s9 + $0x20] sm:$0xff]  ;;  %v4540_v28 = vld [vmem:[%s6719_s9 + $0x10] sm:$0xff] }
 0x756   : > { %v2269_v58 = vpack.c.bf16 %v2253_v0, %v2253_v0 }
 0x757   : > { %v2363_v7 = vunpack.c.l.b16 %v2265_v18 }
 0x758   : > { %v2406_v23 = vunpack.c.l.b16 %v2269_v58  ;;  %2560 = vmatpush.bf16.msra.mxu0 %v4543_v17 }
 0x759   : > { %v2366_v27 = vpack.c.b16 %v2364_v9, %v2363_v7 }
 0x75a   : > { %v4797_v20 = vpop.eup %4796 }
 0x75b   : > { %v2390_v61 = vpop.f32.mrf.mxu2  ;;  %v2177_v8 = vpop.xlane.xlu0 %2176  ;;  %4164 = vmatmul.msk.bf16.gmra.mxu2 %vm1902_vm9, %v2366_v27  ;;  %v2254_v32 = vmul.f32 %v4797_v20, %v5903_v42 }
 0x75c   : > { %v4799_v13 = vpop.eup %4798  ;;  %4800 = vrcp.f32 %v2177_v8  ;;  %2561 = vmatpush.bf16.msra.mxu0 %v4542_v45 }
 0x75d   : > { %v2270_v53 = vpack.c.bf16 %v2254_v32, %v2254_v32  ;;  %v2240_v62 = vmul.f32 %v4799_v13, %v5871_v15 }
 0x75f   : > { %v2407_v21 = vunpack.c.l.b16 %v2270_v53  ;;  %v2256_v5 = vpack.c.bf16 %v2240_v62, %v2240_v62 }
 0x760   : > { %2562 = vmatpush.bf16.msra.mxu0 %v4541_v57 }
 0x761   : > { %v2409_v48 = vpack.c.b16 %v2407_v21, %v2406_v23  ;;  %v2276_v39 = vunpack.c.l.b16 %v2256_v5 }
 0x762   : > { %v4801_v36 = vpop.eup %4800 }
 0x763   : > { %v2239_v19 = vmul.f32 %v4801_v36, %v5909_v54  ;;  %v2392_v24 = vpop.f32.mrf.mxu2  ;;  %v2186_v26 = vpop.xlane.xlu0 %2185  ;;  %4166 = vmatmul.msk.bf16.gmra.mxu3 %vm1902_vm9, %v2409_v48 }
 0x764   : > { %v4661_v52 = vpack.i.bf16 %v2392_v24, %v2390_v61  ;;  %4802 = vrcp.f32 %v2186_v26  ;;  %2563 = vmatpush.bf16.msra.mxu0 %v4540_v28 }
 0x765   : > { %v2255_v42 = vpack.c.bf16 %v2239_v19, %v2239_v19  ;;  %4804 = vrcp.f32 %v2183_v40 }
 0x766   : > { %4662 = vrot.lane.b32.xlu2 %v4661_v52, %s4962_s27 }
 0x767   : > { %v2275_v15 = vunpack.c.l.b16 %v2255_v42 }
 0x768   : > { %2564 = vmatpush.bf16.msra.mxu0 %v4539_v11 }
 0x769   : > { %v2279_v22 = vpack.c.b16 %v2276_v39, %v2275_v15 }
 0x76a   : > { %v4803_v16 = vpop.eup %4802 }
 0x76b   : > { %4159 = vmatmul.msk.bf16.vlgmr.msrb.gmra.mxu0 %vm1902_vm9, %v2279_v22  ;;  %v4805_v41 = vpop.eup %4804  ;;  %v2242_v4 = vmul.f32 %v4803_v16, %v5913_v3 }
 0x76c   : > { %v2241_v54 = vmul.f32 %v4805_v41, %v5879_v31  ;;  %2565 = vmatpush.bf16.msra.mxu0 %v4538_v2 }
 0x76d   : > { %v2258_v33 = vpack.c.bf16 %v2242_v4, %v2242_v4 }
 0x76e   : > { %v2257_v38 = vpack.c.bf16 %v2241_v54, %v2241_v54 }
 0x76f   : > { %v2278_v43 = vunpack.c.l.b16 %v2258_v33 }
 0x770   : > { %v2277_v51 = vunpack.c.l.b16 %v2257_v38 }
 0x772   : > { %v2280_v46 = vpack.c.b16 %v2278_v43, %v2277_v51 }
 0x77b   : > { %4160 = vmatmul.msk.bf16.gmra.mxu0 %vm1902_vm9, %v2280_v46 }
 0x79d   : > { %v2347_v1 = vpop.f32.mrf.mxu1 }
 0x7a5   : > { %v2349_v49 = vpop.f32.mrf.mxu1 }
 0x7a6   : > { %v4656_v29 = vpack.i.bf16 %v2349_v49, %v2347_v1  ;;  %v4688_v1 = vld [vmem:[%s6720_s10] ss:$0 sm:$0xff] }
 0x7a8   : > { %4657 = vrot.lane.b32.xlu1 %v4656_v29, %s4961_s25 }
 0x7ad   : > { %v2352_v50 = vpop.f32.mrf.mxu1 }
 0x7b5   : > { %v2354_v31 = vpop.f32.mrf.mxu1 }
 0x7b6   : > { %v4671_v35 = vpack.i.bf16 %v2354_v31, %v2352_v50 }
 0x7c0   : > { %v4663_v20 = vpop.permute.xlu2 %4662 }
 0x7c1   : > { %v4665_v32 = vunpack.i.h.bf16 %v4663_v20  ;;  %v4664_v58 = vunpack.i.l.bf16 %v4663_v20 }
 0x7d6   : > { %v2433_v37 = vpop.f32.mrf.mxu3 }
 0x7de   : > { %v2395_v55 = vpop.f32.mrf.mxu2  ;;  %v2435_v56 = vpop.f32.mrf.mxu3 }
 0x7df   : > { %v4666_v44 = vpack.i.bf16 %v2435_v56, %v2433_v37 }
 0x7e1   : > { %4667 = vrot.lane.b32.xlu0 %v4666_v44, %s4963_s6 }
 0x7e6   : > { %v2397_v3 = vpop.f32.mrf.mxu2  ;;  %v2438_v10 = vpop.f32.mrf.mxu3 }
 0x7e7   : > { %v4676_v59 = vpack.i.bf16 %v2397_v3, %v2395_v55 }
 0x7e8   : > { %v2304_v18 = vpop.f32.mrf.mxu0 }
 0x7e9   : > { %4677 = vrot.lane.b32.xlu1 %v4676_v59, %s4962_s27  ;;  %4672 = vrot.lane.b32.xlu0 %v4671_v35, %s4961_s25  ;;  %s3814_s25 = scalar_lea.hbm %s6733_s23, %s5106_s5 }
 0x7ea   : > { %s3818_s3 = sshll.u32 %s3814_s25, 4  ;;  %s3819_s3 = int_to_ptr.hbm [resolvable:$true] %s3818_s3 }
 0x7eb   : > { %s4910_s2 = sshra.s32 %s3819_s3, 4  ;;  %s4911_s2 = int_to_ptr.hbm [resolvable:$true] %s4910_s2 }
 0x7ec   : > { %s4912_s8 = scalar_lea.hbm %s4911_s2, 1  ;;  %p4917_p0 = scmp.lt.s32.totalorder %s4911_s2, %s6733_s23 }
 0x7ed   : > { %p4913_p11 = scmp.ne.s32.totalorder %s4911_s2, %s4912_s8  ;;  %p4918_p1 = scmp.lt.s32.totalorder %s4916_s4, %s4912_s8 }
 0x7ee   : > { %v2440_v60 = vpop.f32.mrf.mxu3 }
 0x7ef   : > { %v4681_v34 = vpack.i.bf16 %v2440_v60, %v2438_v10  ;;  %p4914_p12 = pnand %p4913_p11, %p5123_p5  ;;  %p4919_p2 = por %p4918_p1, %p4917_p0 }
 0x7f0   : > { %v2306_v7 = vpop.f32.mrf.mxu0 }
 0x7f1   : > { %4682 = vrot.lane.b32.xlu2 %v4681_v34, %s4963_s6  ;;  %p4915_p13 = pneg %p4914_p12 }
 0x7f3   : > { %p4920_p3 = pnand %p4919_p2, %p4915_p13 }
 0x7f8   : > { %v2309_v13 = vpop.f32.mrf.mxu0 }
 0x800   : > { %v2311_v42 = vpop.f32.mrf.mxu0 }
 0x81a   : > { %v4658_v9 = vpop.permute.xlu1 %4657 }
 0x81b   : > { %v4660_v0 = vunpack.i.h.bf16 %v4658_v9  ;;  %v4659_v27 = vunpack.i.l.bf16 %v4658_v9  ;;  %v4257_v9 = vld [vmem:[%s6721_s11 + $0x70] sm:$0xf] }
 0x81d   : > { %v2492_v61 = vsel %vm1902_vm9, %v2306_v7, %v4660_v0  ;;  %v2491_v8 = vsel %vm1902_vm9, %v2304_v18, %v4659_v27  ;;  %v4561_v0 = vld [vmem:[%s6721_s11 + $0x74] sm:$0xf0]  ;;  %v4560_v27 = vld [vmem:[%s6721_s11 + $0x74] sm:$0xf] }
 0x81e   : > { %v2496_v21 = vsel %vm2495_vm10, %v2491_v8, %v4664_v58  ;;  %v2497_v48 = vsel %vm2495_vm10, %v2492_v61, %v4665_v32  ;;  %v4258_v20 = vor.u32 %v4561_v0, %v4257_v9  ;;  %v4259_v61 = vld [vmem:[%s6721_s11 + $0x78] sm:$0xf0]  ;;  %v4249_v32 = vld [vmem:[%s6721_s11 + $0x60] sm:$0xf]  ;;  %v4559_v58 = vld [vmem:[%s6721_s11 + $0x64] sm:$0xf0] }
 0x81f   : > { %v4262_v8 = vor.u32 %v4560_v27, %v4259_v61 }
 0x820   : > { %2748 = vmatpush.bf16.msra.mxu1 %v4258_v20 }
 0x821   : > { %2767 = vmatpush.bf16.msra.mxu2 %v4262_v8 }
 0x84b   : > { %v4683_v41 = vpop.permute.xlu2 %4682 }
 0x84c   : > { %v4685_v33 = vunpack.i.h.bf16 %v4683_v41  ;;  %v4684_v38 = vunpack.i.l.bf16 %v4683_v41  ;;  %v4552_v41 = vld [vmem:[%s6721_s11 + $0x34] sm:$0xf] }
 0x853   : > { %v4668_v53 = vpop.permute.xlu0 %4667 }
 0x854   : > { %v4670_v62 = vunpack.i.h.bf16 %v4668_v53  ;;  %v4669_v23 = vunpack.i.l.bf16 %v4668_v53  ;;  %v4250_v53 = vor.u32 %v4559_v58, %v4249_v32 }
 0x856   : > { %v2501_v36 = vsel %vm2500_vm11, %v2496_v21, %v4669_v23  ;;  %v2502_v40 = vsel %vm2500_vm11, %v2497_v48, %v4670_v62  ;;  %v4251_v62 = vld [vmem:[%s6721_s11 + $0x68] sm:$0xf0]  ;;  %2749 = vmatpush.bf16.msra.mxu1 %v4250_v53  ;;  %v4241_v21 = vld [vmem:[%s6721_s11 + $0x50] sm:$0xf]  ;;  %v4557_v48 = vld [vmem:[%s6721_s11 + $0x54] sm:$0xf0] }
 0x857   : > { %v2505_v5 = vpack.c.bf16 %v2502_v40, %v2501_v36  ;;  %v4556_v36 = vld [vmem:[%s6721_s11 + $0x54] sm:$0xf]  ;;  %v4242_v40 = vor.u32 %v4557_v48, %v4241_v21 }
 0x859   : > { %2566 = vmatmul.bf16.vlgmr.msra.gmra.mxu0 %v2505_v5  ;;  %v4243_v5 = vld [vmem:[%s6721_s11 + $0x58] sm:$0xf0] }
 0x85a   : > { %2750 = vmatpush.bf16.msra.mxu1 %v4242_v40 }
 0x85b   : > { %v4678_v19 = vpop.permute.xlu1 %4677  ;;  %v4673_v24 = vpop.permute.xlu0 %4672 }
 0x85c   : > { %v4675_v26 = vunpack.i.h.bf16 %v4673_v24  ;;  %v4674_v52 = vunpack.i.l.bf16 %v4673_v24  ;;  %v4680_v39 = vunpack.i.h.bf16 %v4678_v19  ;;  %v4679_v15 = vunpack.i.l.bf16 %v4678_v19  ;;  %v4233_v24 = vld [vmem:[%s6721_s11 + $0x40] sm:$0xf] }
 0x85d   : > { %v4246_v19 = vor.u32 %v4556_v36, %v4243_v5 }
 0x85e   : > { %v2493_v22 = vsel %vm1902_vm9, %v2309_v13, %v4674_v52  ;;  %v2494_v16 = vsel %vm1902_vm9, %v2311_v42, %v4675_v26  ;;  %v4558_v13 = vld [vmem:[%s6721_s11 + $0x64] sm:$0xf]  ;;  %v4555_v26 = vld [vmem:[%s6721_s11 + $0x44] sm:$0xf0] }
 0x85f   : > { %v2498_v4 = vsel %vm2495_vm10, %v2493_v22, %v4679_v15  ;;  %v2499_v54 = vsel %vm2495_vm10, %v2494_v16, %v4680_v39  ;;  %v4254_v23 = vor.u32 %v4558_v13, %v4251_v62  ;;  %v4554_v52 = vld [vmem:[%s6721_s11 + $0x44] sm:$0xf]  ;;  %v4234_v42 = vor.u32 %v4555_v26, %v4233_v24  ;;  %v4235_v39 = vld [vmem:[%s6721_s11 + $0x48] sm:$0xf0]  ;;  %v4225_v22 = vld [vmem:[%s6721_s11 + $0x30] sm:$0xf] }
 0x860   : > { %v2503_v43 = vsel %vm2500_vm11, %v2498_v4, %v4684_v38  ;;  %v2504_v51 = vsel %vm2500_vm11, %v2499_v54, %v4685_v33  ;;  %v4238_v15 = vor.u32 %v4554_v52, %v4235_v39  ;;  %v4553_v16 = vld [vmem:[%s6721_s11 + $0x34] sm:$0xf0]  ;;  %v4227_v54 = vld [vmem:[%s6721_s11 + $0x38] sm:$0xf0]  ;;  %v4217_v38 = vld [vmem:[%s6721_s11 + $0x20] sm:$0xf] }
 0x861   : > { %v2506_v46 = vpack.c.bf16 %v2504_v51, %v2503_v43  ;;  %2768 = vmatpush.bf16.msra.mxu2 %v4254_v23  ;;  %2751 = vmatpush.bf16.msra.mxu1 %v4234_v42  ;;  %v4226_v4 = vor.u32 %v4553_v16, %v4225_v22  ;;  %v4230_v33 = vor.u32 %v4552_v41, %v4227_v54  ;;  %v4551_v43 = vld [vmem:[%s6721_s11 + $0x24] sm:$0xf0]  ;;  %v4550_v51 = vld [vmem:[%s6721_s11 + $0x24] sm:$0xf] }
 0x865   : > { %2769 = vmatpush.bf16.msra.mxu2 %v4246_v19  ;;  %2752 = vmatpush.bf16.msra.mxu1 %v4226_v4 }
 0x869   : > { %2571 = vmatmul.bf16.gmra.mxu0 %v2506_v46  ;;  %2770 = vmatpush.bf16.msra.mxu2 %v4238_v15  ;;  %v4218_v46 = vor.u32 %v4551_v43, %v4217_v38 }
 0x86b   : > { %2753 = vmatpush.bf16.msra.mxu1 %v4218_v46 }
 0x86d   : > { %2771 = vmatpush.bf16.msra.mxu2 %v4230_v33 }
 0x8d6   : > { %v2567_v49 = vpop.f32.mrf.mxu0 }
 0x8d7   : > { %v2568_v29 = vadd.f32 %v4688_v1, %v2567_v49 }
 0x8d9   : > { %v5985_v37 = vadd.f32 %v2568_v29, %v5502_v6  ;;  %v4209_v29 = vld [vmem:[%s6721_s11 + $0x10] sm:$0xf] }
 0x8db   : > { %2581 = vadd.xlane.f32.xlu0 %v5985_v37 }
 0x8de   : > { %v2569_v50 = vpop.f32.mrf.mxu0 }
 0x8df   : > { %v2570_v55 = vadd.f32 %v4688_v1, %v2569_v50  ;;  %v4549_v50 = vld [vmem:[%s6721_s11 + $0x14] sm:$0xf0] }
 0x8e1   : > { %v5989_v56 = vadd.f32 %v2570_v55, %v5506_v30  ;;  %v4548_v55 = vld [vmem:[%s6721_s11 + $0x14] sm:$0xf] }
 0x8e3   : > { %2583 = vadd.xlane.f32.xlu1 %v5989_v56 }
 0x8e6   : > { %v2572_v44 = vpop.f32.mrf.mxu0 }
 0x8e7   : > { %v2573_v31 = vadd.f32 %v4688_v1, %v2572_v44  ;;  %v4210_v44 = vor.u32 %v4549_v50, %v4209_v29  ;;  %v842_v50 = vld [vmem:[%s6722_s12] sm:$0x3] }
 0x8e9   : > { %v5993_v3 = vadd.f32 %v2573_v31, %v5510_v12  ;;  %v4211_v31 = vld [vmem:[%s6721_s11 + $0x18] sm:$0xf0]  ;;  %2754 = vmatpush.bf16.msra.mxu1 %v4210_v44 }
 0x8eb   : > { %2585 = vadd.xlane.f32.xlu2 %v5993_v3 }
 0x8ee   : > { %v2574_v10 = vpop.f32.mrf.mxu0 }
 0x8ef   : > { %v2575_v35 = vadd.f32 %v4688_v1, %v2574_v10  ;;  %v4219_v1 = vld [vmem:[%s6721_s11 + $0x28] sm:$0xf0]  ;;  %v4214_v10 = vor.u32 %v4548_v55, %v4211_v31  ;;  %v2665_v55 = vperm.slane %v842_v50, 1 }
 0x8f0   : > { %v4222_v49 = vor.u32 %v4550_v51, %v4219_v1 }
 0x8f1   : > { %v5997_v6 = vadd.f32 %v2575_v35, %v5514_v14  ;;  %v4201_v35 = vld [vmem:[%s6721_s11] sm:$0xf] }
 0x8f2   : > { %2772 = vmatpush.bf16.msra.mxu2 %v4222_v49 }
 0x8f3   : > { %2587 = vadd.xlane.f32.xlu0 %v5997_v6 }
 0x8f6   : > { %2773 = vmatpush.bf16.msra.mxu2 %v4214_v10 }
 0x94e   : > { %v2582_v59 = vpop.xlane.xlu0 %2581 }
 0x94f   : > { %v2589_v30 = vmul.f32 %v2582_v59, %v5177_v25  ;;  %v4547_v59 = vld [vmem:[%s6721_s11 + $0x4] sm:$0xf0] }
 0x951   : > { %v6002_v60 = vsub.f32 %v5985_v37, %v2589_v30  ;;  %v4546_v30 = vld [vmem:[%s6721_s11 + $0x4] sm:$0xf] }
 0x953   : > { %v2597_v34 = vmul.f32 %v6002_v60, %v6002_v60 }
 0x955   : > { %2601 = vadd.xlane.f32.xlu1 %v2597_v34  ;;  %v4202_v34 = vor.u32 %v4547_v59, %v4201_v35 }
 0x956   : > { %v2584_v12 = vpop.xlane.xlu1 %2583 }
 0x957   : > { %v2590_v63 = vmul.f32 %v2584_v12, %v5177_v25  ;;  %v4203_v12 = vld [vmem:[%s6721_s11 + $0x8] sm:$0xf0]  ;;  %2755 = vmatpush.bf16.msra.mxu1 %v4202_v34 }
 0x959   : > { %v6008_v47 = vsub.f32 %v5989_v56, %v2590_v63 }
 0x95b   : > { %v2598_v14 = vmul.f32 %v6008_v47, %v6008_v47 }
 0x95d   : > { %2603 = vadd.xlane.f32.xlu2 %v2598_v14  ;;  %v4206_v14 = vor.u32 %v4546_v30, %v4203_v12 }
 0x95e   : > { %v2586_v17 = vpop.xlane.xlu2 %2585 }
 0x95f   : > { %v2591_v45 = vmul.f32 %v2586_v17, %v5177_v25  ;;  %2774 = vmatpush.bf16.msra.mxu2 %v4206_v14 }
 0x961   : > { %v6014_v57 = vsub.f32 %v5993_v3, %v2591_v45 }
 0x963   : > { %v2599_v28 = vmul.f32 %v6014_v57, %v6014_v57 }
 0x965   : > { %2605 = vadd.xlane.f32.xlu0 %v2599_v28 }
 0x966   : > { %v2588_v11 = vpop.xlane.xlu0 %2587 }
 0x967   : > { %v2592_v2 = vmul.f32 %v2588_v11, %v5177_v25 }
 0x969   : > { %v6020_v18 = vsub.f32 %v5997_v6, %v2592_v2 }
 0x96b   : > { %v2600_v7 = vmul.f32 %v6020_v18, %v6020_v18 }
 0x96d   : > { %2607 = vadd.xlane.f32.xlu1 %v2600_v7 }
 0x9c8   : > { %v2602_v63 = vpop.xlane.xlu1 %2601 }
 0x9c9   : > { %v2609_v17 = vmul.f32 %v2602_v63, %v5177_v25 }
 0x9cb   : > { %v2613_v45 = vadd.f32 1e-05, %v2609_v17 }
 0x9cd   : > { %4806 = vrsqrt.f32 %v2613_v45  ;;  %vm2623_vm13 = vweird.f32 %v2613_v45 }
 0x9d0   : > { %v2604_v28 = vpop.xlane.xlu2 %2603 }
 0x9d1   : > { %v2610_v11 = vmul.f32 %v2604_v28, %v5177_v25 }
 0x9d3   : > { %v4807_v2 = vpop.eup %4806  ;;  %v2614_v7 = vadd.f32 1e-05, %v2610_v11 }
 0x9d4   : > { %v2618_v9 = vmul.f32 %v4807_v2, %v2613_v45  ;;  %vm2624_vm12 = vweird.f32 %v4807_v2 }
 0x9d5   : > { %4808 = vrsqrt.f32 %v2614_v7  ;;  %vm2625_vm15 = vmor %vm2623_vm13, %vm2624_vm12  ;;  %vm2633_vm0 = vweird.f32 %v2614_v7  ;;  %vm2870_vm12 = vcmask 1041408   ;;  %vm2892_vm13 = vcmask 1040384  }
 0x9d6   : > { %v2619_v0 = vmul.f32 %v4807_v2, %v2618_v9  ;;  %v4569_v9 = vld [vmem:[%s6725_s15 + $0x38] sm:$0xff] }
 0x9d7   : > { %3107 = vmatpush.bf16.msra.mxu3 %v4569_v9 }
 0x9d8   : > { %v2620_v27 = vmul.f32 0.5, %v2619_v0  ;;  %v2606_v20 = vpop.xlane.xlu0 %2605  ;;  %v6134_v0 = vperm.slane %v842_v50, 0 }
 0x9d9   : > { %v2611_v61 = vmul.f32 %v2606_v20, %v5177_v25 }
 0x9da   : > { %v2621_v58 = vsub.f32 1.5, %v2620_v27 }
 0x9db   : > { %v4809_v8 = vpop.eup %4808  ;;  %v2615_v32 = vadd.f32 1e-05, %v2611_v61 }
 0x9dc   : > { %v2628_v13 = vmul.f32 %v4809_v8, %v2614_v7  ;;  %v2622_v62 = vmul.f32 %v4807_v2, %v2621_v58  ;;  %vm2634_vm14 = vweird.f32 %v4809_v8  ;;  %v4568_v58 = vld [vmem:[%s6725_s15 + $0x30] sm:$0xff] }
 0x9dd   : > { %4810 = vrsqrt.f32 %v2615_v32  ;;  %vm2635_vm1 = vmor %vm2633_vm0, %vm2634_vm14  ;;  %vm2643_vm3 = vweird.f32 %v2615_v32  ;;  %3108 = vmatpush.bf16.msra.mxu3 %v4568_v58  ;;  %vm2923_vm0 = vcmask 1046528  }
 0x9de   : > { %v2629_v53 = vmul.f32 %v4809_v8, %v2628_v13  ;;  %v2626_v19 = vsel %vm2625_vm15, %v4807_v2, %v2622_v62 }
 0x9df   : > { %v2657_v39 = vmul.f32 %v2626_v19, %v6002_v60 }
 0x9e0   : > { %v2630_v23 = vmul.f32 0.5, %v2629_v53  ;;  %v2608_v21 = vpop.xlane.xlu1 %2607 }
 0x9e1   : > { %v2612_v48 = vmul.f32 %v2608_v21, %v5177_v25 }
 0x9e2   : > { %v2631_v36 = vsub.f32 1.5, %v2630_v23  ;;  %v843_v23 = vld [vmem:[%s6723_s13] sm:$0x1f] }
 0x9e3   : > { %v4811_v40 = vpop.eup %4810  ;;  %v2616_v5 = vadd.f32 1e-05, %v2612_v48 }
 0x9e4   : > { %v2632_v24 = vmul.f32 %v4809_v8, %v2631_v36  ;;  %v2638_v26 = vmul.f32 %v4811_v40, %v2615_v32  ;;  %vm2644_vm2 = vweird.f32 %v4811_v40 }
 0x9e5   : > { %4812 = vrsqrt.f32 %v2616_v5  ;;  %vm2645_vm5 = vmor %vm2643_vm3, %vm2644_vm2  ;;  %vm2653_vm6 = vweird.f32 %v2616_v5  ;;  %vm2945_vm3 = vcmask 1045504  }
 0x9e6   : > { %v2636_v52 = vsel %vm2635_vm1, %v4809_v8, %v2632_v24  ;;  %v2639_v42 = vmul.f32 %v4811_v40, %v2638_v26  ;;  %v4567_v24 = vld [vmem:[%s6725_s15 + $0x28] sm:$0xff] }
 0x9e7   : > { %v2658_v15 = vmul.f32 %v2636_v52, %v6008_v47  ;;  %v6149_v52 = vperm.slane %v843_v23, 2  ;;  %3109 = vmatpush.bf16.msra.mxu3 %v4567_v24 }
 0x9e8   : > { %v2640_v22 = vmul.f32 0.5, %v2639_v42 }
 0x9e9   : > { %v2661_v16 = vpack.c.bf16 %v2658_v15, %v2657_v39 }
 0x9ea   : > { %v2641_v4 = vsub.f32 1.5, %v2640_v22 }
 0x9eb   : > { %v4813_v41 = vpop.eup %4812  ;;  %2756 = vmatmul.bf16.vlgmr.msra.gmra.mxu1 %v2661_v16  ;;  %2775 = vmatmul.bf16.vlgmr.msra.gmra.mxu2 %v2661_v16 }
 0x9ec   : > { %v2648_v54 = vmul.f32 %v4813_v41, %v2616_v5  ;;  %v2642_v43 = vmul.f32 %v4811_v40, %v2641_v4  ;;  %vm2654_vm4 = vweird.f32 %v4813_v41  ;;  %v6155_v4 = vperm.slane %v843_v23, 1 }
 0x9ed   : > { %vm2655_vm7 = vmor %vm2653_vm6, %vm2654_vm4 }
 0x9ee   : > { %v2649_v33 = vmul.f32 %v4813_v41, %v2648_v54  ;;  %v2646_v46 = vsel %vm2645_vm5, %v4811_v40, %v2642_v43 }
 0x9ef   : > { %v2659_v1 = vmul.f32 %v2646_v46, %v6014_v57 }
 0x9f0   : > { %v2650_v38 = vmul.f32 0.5, %v2649_v33  ;;  %v4566_v33 = vld [vmem:[%s6725_s15 + $0x20] sm:$0xff] }
 0x9f1   : > { %3110 = vmatpush.bf16.msra.mxu3 %v4566_v33 }
 0x9f2   : > { %v2651_v51 = vsub.f32 1.5, %v2650_v38 }
 0x9f4   : > { %v2652_v60 = vmul.f32 %v4813_v41, %v2651_v51 }
 0x9f6   : > { %v2656_v47 = vsel %vm2655_vm7, %v4813_v41, %v2652_v60  ;;  %v6153_v41 = vperm.slane %v843_v23, 0 }
 0x9f7   : > { %v2660_v49 = vmul.f32 %v2656_v47, %v6020_v18 }
 0x9f9   : > { %v2662_v29 = vpack.c.bf16 %v2660_v49, %v2659_v1 }
 0x9fb   : > { %2761 = vmatmul.bf16.gmra.mxu1 %v2662_v29  ;;  %2780 = vmatmul.bf16.gmra.mxu2 %v2662_v29 }
 0xa68   : > { %v2757_v34 = vpop.f32.mrf.mxu1 }
 0xa69   : > { %v2758_v48 = vadd.f32 %v2757_v34, %v6134_v0 }
 0xa6e   : > { %v2776_v44 = vpop.f32.mrf.mxu2 }
 0xa6f   : > { %v2777_v31 = vadd.f32 %v2776_v44, %v2665_v55 }
 0xa70   : > { %v2759_v2 = vpop.f32.mrf.mxu1 }
 0xa71   : > { %v4263_v10 = vmul.f32 -1.442695, %v2777_v31  ;;  %v2760_v51 = vadd.f32 %v2759_v2, %v6134_v0  ;;  %v4564_v2 = vld [vmem:[%s6725_s15 + $0x10] sm:$0xff] }
 0xa73   : > { %4814 = vpow2.f32 %v4263_v10 }
 0xa76   : > { %v2778_v35 = vpop.f32.mrf.mxu2 }
 0xa77   : > { %v2779_v59 = vadd.f32 %v2778_v35, %v2665_v55 }
 0xa78   : > { %v2762_v22 = vpop.f32.mrf.mxu1 }
 0xa79   : > { %v4815_v30 = vpop.eup %4814  ;;  %v4264_v12 = vmul.f32 -1.442695, %v2779_v59  ;;  %v2763_v46 = vadd.f32 %v2762_v22, %v6134_v0  ;;  %v4565_v59 = vld [vmem:[%s6725_s15 + $0x18] sm:$0xff] }
 0xa7a   : > { %v2798_v57 = vadd.f32 1.0, %v4815_v30  ;;  %3111 = vmatpush.bf16.msra.mxu3 %v4565_v59 }
 0xa7b   : > { %4816 = vpow2.f32 %v4264_v12 }
 0xa7c   : > { %4818 = vrcp.f32 %v2798_v57  ;;  %v2813_v27 = vand.u32 2147483648, %v2798_v57  ;;  %v2811_v8 = vand.u32 2147483647, %v2798_v57  ;;  %vm2807_vm9 = vweird.f32 %v2798_v57 }
 0xa7e   : > { %v2781_v18 = vpop.f32.mrf.mxu2  ;;  %v2814_v36 = vor.u32 1.1754944e-38, %v2813_v27  ;;  %vm2812_vm11 = vcmp.eq.f32.partialorder %v2811_v8, 8.507059e+37  ;;  %3112 = vmatpush.bf16.msra.mxu3 %v4564_v2 }
 0xa7f   : > { %v2782_v63 = vadd.f32 %v2781_v18, %v2665_v55 }
 0xa81   : > { %v4817_v14 = vpop.eup %4816  ;;  %v4265_v17 = vmul.f32 -1.442695, %v2782_v63 }
 0xa82   : > { %v4819_v45 = vpop.eup %4818  ;;  %v2799_v28 = vadd.f32 1.0, %v4817_v14  ;;  %v6183_v14 = vperm.slane %v843_v23, 4 }
 0xa83   : > { %v2803_v11 = vmul.f32 %v4819_v45, %v2798_v57  ;;  %4820 = vpow2.f32 %v4265_v17  ;;  %vm2808_vm8 = vweird.f32 %v4819_v45  ;;  %v6178_v57 = vperm.slane %v843_v23, 3 }
 0xa84   : > { %4822 = vrcp.f32 %v2799_v28  ;;  %vm2809_vm10 = vmor %vm2807_vm9, %vm2808_vm8  ;;  %v2826_v15 = vand.u32 2147483647, %v2799_v28  ;;  %v2828_v16 = vand.u32 2147483648, %v2799_v28  ;;  %vm2822_vm15 = vweird.f32 %v2799_v28 }
 0xa85   : > { %v2804_v7 = vsub.f32 1.0, %v2803_v11 }
 0xa86   : > { %v2783_v20 = vpop.f32.mrf.mxu2  ;;  %vm2827_vm1 = vcmp.eq.f32.partialorder %v2826_v15, 8.507059e+37  ;;  %v2829_v50 = vor.u32 1.1754944e-38, %v2828_v16 }
 0xa87   : > { %v2805_v61 = vmul.f32 %v4819_v45, %v2804_v7  ;;  %v2784_v32 = vadd.f32 %v2783_v20, %v2665_v55 }
 0xa89   : > { %v4821_v13 = vpop.eup %4820  ;;  %v2806_v53 = vadd.f32 %v4819_v45, %v2805_v61  ;;  %v4266_v62 = vmul.f32 -1.442695, %v2784_v32 }
 0xa8a   : > { %v4823_v21 = vpop.eup %4822  ;;  %v6143_v40 = vadd.f32 1.0, %v4821_v13  ;;  %v2764_v13 = vpop.f32.mrf.mxu1 }
 0xa8b   : > { %v2810_v5 = vsel %vm2809_vm10, %v4819_v45, %v2806_v53  ;;  %v2818_v19 = vmul.f32 %v4823_v21, %v2799_v28  ;;  %4824 = vpow2.f32 %v4266_v62  ;;  %vm2823_vm14 = vweird.f32 %v4823_v21 }
 0xa8c   : > { %v2815_v26 = vsel %vm2812_vm11, %v2814_v36, %v2810_v5  ;;  %4826 = vrcp.f32 %v6143_v40  ;;  %vm2824_vm2 = vmor %vm2822_vm15, %vm2823_vm14  ;;  %v2841_v55 = vand.u32 2147483647, %v6143_v40  ;;  %v2843_v44 = vand.u32 2147483648, %v6143_v40 }
 0xa8d   : > { %v6151_v42 = vmul.f32 %v2815_v26, %v2758_v48  ;;  %v2819_v39 = vsub.f32 1.0, %v2818_v19  ;;  %vm2837_vm4 = vweird.f32 %v6143_v40  ;;  %v2765_v22 = vadd.f32 %v2764_v13, %v6134_v0 }
 0xa8e   : > { %vm6185_vm6 = vcmp.eq.f32.partialorder %v2841_v55, 8.507059e+37  ;;  %v2844_v45 = vor.u32 1.1754944e-38, %v2843_v44 }
 0xa8f   : > { %v2820_v54 = vmul.f32 %v4823_v21, %v2819_v39  ;;  %v2871_v38 = vrot.slane %v6151_v42, 6  ;;  %v2893_v43 = vrot.slane %v6151_v42, 7  ;;  %v2915_v28 = vmul.f32 %v6149_v52, %v6151_v42 }
 0xa90   : > { %v2924_v20 = vrot.slane %v6151_v42, 1  ;;  %v2946_v8 = vrot.slane %v6151_v42, 2  ;;  %v4563_v42 = vld [vmem:[%s6725_s15 + $0x8] sm:$0xff] }
 0xa91   : > { %v4825_v60 = vpop.eup %4824  ;;  %v2821_v47 = vadd.f32 %v4823_v21, %v2820_v54  ;;  %v2882_v1 = vsel %vm2870_vm12, 0.0, %v2871_v38  ;;  %v2904_v49 = vsel %vm2892_vm13, 0.0, %v2893_v43  ;;  %3113 = vmatpush.bf16.msra.mxu3 %v4563_v42 }
 0xa92   : > { %v4827_v29 = vpop.eup %4826  ;;  %v6169_v31 = vadd.f32 1.0, %v4825_v60  ;;  %v2884_v30 = vmul.f32 %v6153_v41, %v2882_v1  ;;  %v2906_v34 = vmul.f32 %v6155_v4, %v2904_v49 }
 0xa93   : > { %v2825_v10 = vsel %vm2824_vm2, %v4823_v21, %v2821_v47  ;;  %v2833_v35 = vmul.f32 %v4827_v29, %v6143_v40  ;;  %vm2838_vm5 = vweird.f32 %v4827_v29 }
 0xa94   : > { %v2830_v12 = vsel %vm2827_vm1, %v2829_v50, %v2825_v10  ;;  %4828 = vrcp.f32 %v6169_v31  ;;  %v2910_v27 = vadd.f32 %v2906_v34, %v2884_v30  ;;  %v2856_v53 = vand.u32 2147483647, %v6169_v31  ;;  %vm2839_vm7 = vmor %vm2837_vm4, %vm2838_vm5 }
 0xa95   : > { %v6180_v18 = vmul.f32 %v2830_v12, %v2760_v51  ;;  %v2834_v63 = vsub.f32 1.0, %v2833_v35  ;;  %v2858_v16 = vand.u32 2147483648, %v6169_v31  ;;  %v6223_v51 = vld [vmem:[%s6724_s14] ss:$0 sm:$0xff]  ;;  %vm2852_vm8 = vweird.f32 %v6169_v31 }
 0xa96   : > { %v2919_v39 = vadd.f32 %v2915_v28, %v2910_v27  ;;  %vm6226_vm10 = vcmp.eq.f32.partialorder %v2856_v53, 8.507059e+37 }
 0xa97   : > { %v2835_v11 = vmul.f32 %v4827_v29, %v2834_v63  ;;  %v2872_v7 = vrot.slane %v6180_v18, 6  ;;  %v2894_v9 = vrot.slane %v6180_v18, 7  ;;  %v2925_v61 = vrot.slane %v6180_v18, 1 }
 0xa98   : > { %v2947_v32 = vrot.slane %v6180_v18, 2  ;;  %v2859_v50 = vor.u32 1.1754944e-38, %v2858_v16  ;;  %v2916_v55 = vmul.f32 %v6149_v52, %v6180_v18 }
 0xa99   : > { %v2836_v58 = vadd.f32 %v4827_v29, %v2835_v11  ;;  %v2873_v62 = vsel %vm2870_vm12, %v2871_v38, %v2872_v7  ;;  %v2895_v23 = vsel %vm2892_vm13, %v2893_v43, %v2894_v9  ;;  %v2926_v5 = vsel %vm2923_vm0, %v2924_v20, %v2925_v61 }
 0xa9a   : > { %v4829_v21 = vpop.eup %4828  ;;  %v2885_v48 = vmul.f32 %v6153_v41, %v2873_v62  ;;  %v2907_v36 = vmul.f32 %v6155_v4, %v2895_v23  ;;  %v2948_v19 = vsel %vm2945_vm3, %v2946_v8, %v2947_v32  ;;  %v2937_v40 = vmul.f32 %v6178_v57, %v2926_v5 }
 0xa9b   : > { %v2840_v24 = vsel %vm2839_vm7, %v4827_v29, %v2836_v58  ;;  %v2848_v26 = vmul.f32 %v4829_v21, %v6169_v31  ;;  %v2959_v43 = vmul.f32 %v6183_v14, %v2948_v19  ;;  %vm2853_vm9 = vweird.f32 %v4829_v21 }
 0xa9c   : > { %v2845_v15 = vsel %vm6185_vm6, %v2844_v45, %v2840_v24  ;;  %v2941_v38 = vadd.f32 %v2937_v40, %v2919_v39  ;;  %v2911_v0 = vadd.f32 %v2907_v36, %v2885_v48  ;;  %vm2854_vm11 = vmor %vm2852_vm8, %vm2853_vm9 }
 0xa9d   : > { %v2864_v54 = vmul.f32 %v2845_v15, %v2763_v46  ;;  %v2849_v33 = vsub.f32 1.0, %v2848_v26  ;;  %v4562_v46 = vld [vmem:[%s6725_s15] sm:$0xff] }
 0xa9e   : > { %v2963_v29 = vadd.f32 %v2959_v43, %v2941_v38  ;;  %v2920_v12 = vadd.f32 %v2916_v55, %v2911_v0  ;;  %3114 = vmatpush.bf16.msra.mxu3 %v4562_v46 }
 0xa9f   : > { %v2850_v47 = vmul.f32 %v4829_v21, %v2849_v33  ;;  %v2927_v1 = vrot.slane %v2864_v54, 1  ;;  %v2949_v49 = vrot.slane %v2864_v54, 2  ;;  %v2874_v44 = vrot.slane %v2864_v54, 6 }
 0xaa0   : > { %v2896_v10 = vrot.slane %v2864_v54, 7  ;;  %v6238_v34 = vadd.f32 %v6223_v51, %v2963_v29 }
 0xaa1   : > { %v2851_v35 = vadd.f32 %v4829_v21, %v2850_v47  ;;  %v2928_v59 = vsel %vm2923_vm0, %v2925_v61, %v2927_v1  ;;  %v2950_v30 = vsel %vm2945_vm3, %v2947_v32, %v2949_v49  ;;  %v2875_v17 = vsel %vm2870_vm12, %v2872_v7, %v2874_v44 }
 0xaa2   : > { %v2938_v63 = vmul.f32 %v6178_v57, %v2928_v59  ;;  %v2897_v18 = vsel %vm2892_vm13, %v2894_v9, %v2896_v10  ;;  %v4267_v28 = vmul.f32 -1.442695, %v6238_v34  ;;  %v2886_v11 = vmul.f32 %v6153_v41, %v2875_v17 }
 0xaa3   : > { %v2855_v45 = vsel %vm2854_vm11, %v4829_v21, %v2851_v35  ;;  %v2908_v2 = vmul.f32 %v6155_v4, %v2897_v18  ;;  %v2960_v20 = vmul.f32 %v6183_v14, %v2950_v30  ;;  %v2917_v21 = vmul.f32 %v6149_v52, %v2864_v54 }
 0xaa4   : > { %v2860_v27 = vsel %vm6226_vm10, %v2859_v50, %v2855_v45  ;;  %v2942_v31 = vadd.f32 %v2938_v63, %v2920_v12  ;;  %4830 = vpow2.f32 %v4267_v28 }
 0xaa5   : > { %v2865_v61 = vmul.f32 %v2860_v27, %v2765_v22  ;;  %v2912_v9 = vadd.f32 %v2908_v2, %v2886_v11 }
 0xaa6   : > { %v2964_v8 = vadd.f32 %v2960_v20, %v2942_v31 }
 0xaa7   : > { %v2876_v7 = vrot.slane %v2865_v61, 6  ;;  %v2898_v32 = vrot.slane %v2865_v61, 7  ;;  %v2929_v13 = vrot.slane %v2865_v61, 1  ;;  %v2951_v53 = vrot.slane %v2865_v61, 2 }
 0xaa8   : > { %v6253_v58 = vadd.f32 %v6223_v51, %v2964_v8  ;;  %v2921_v26 = vadd.f32 %v2917_v21, %v2912_v9  ;;  %v2918_v16 = vmul.f32 %v6149_v52, %v2865_v61 }
 0xaa9   : > { %v2877_v62 = vsel %vm2870_vm12, %v2874_v44, %v2876_v7  ;;  %v2899_v23 = vsel %vm2892_vm13, %v2896_v10, %v2898_v32  ;;  %v2930_v19 = vsel %vm2923_vm0, %v2927_v1, %v2929_v13  ;;  %v2952_v39 = vsel %vm2945_vm3, %v2949_v49, %v2951_v53 }
 0xaaa   : > { %v4268_v48 = vmul.f32 -1.442695, %v6253_v58  ;;  %v2887_v36 = vmul.f32 %v6153_v41, %v2877_v62  ;;  %v2909_v5 = vmul.f32 %v6155_v4, %v2899_v23  ;;  %v4831_v24 = vpop.eup %4830  ;;  %v2939_v42 = vmul.f32 %v6178_v57, %v2930_v19 }
 0xaab   : > { %v2986_v40 = vadd.f32 1.0, %v4831_v24  ;;  %v2935_v22 = vsel %vm2923_vm0, %v2929_v13, 0.0  ;;  %v2961_v41 = vmul.f32 %v6183_v14, %v2952_v39  ;;  %v2957_v4 = vsel %vm2945_vm3, %v2951_v53, 0.0 }
 0xaac   : > { %4832 = vpow2.f32 %v4268_v48  ;;  %v2913_v15 = vadd.f32 %v2909_v5, %v2887_v36  ;;  %v2943_v54 = vadd.f32 %v2939_v42, %v2921_v26  ;;  %v2940_v38 = vmul.f32 %v6178_v57, %v2935_v22 }
 0xaad   : > { %4834 = vrcp.f32 %v2986_v40  ;;  %v2962_v0 = vmul.f32 %v6183_v14, %v2957_v4  ;;  %v3001_v12 = vand.u32 2147483648, %v2986_v40  ;;  %vm2995_vm13 = vweird.f32 %v2986_v40 }
 0xaae   : > { %v2922_v33 = vadd.f32 %v2918_v16, %v2913_v15  ;;  %v2965_v43 = vadd.f32 %v2961_v41, %v2943_v54  ;;  %v2999_v17 = vand.u32 2147483647, %v2986_v40 }
 0xaaf   : > { %v3002_v27 = vor.u32 1.1754944e-38, %v3001_v12 }
 0xab0   : > { %v2944_v60 = vadd.f32 %v2940_v38, %v2922_v33  ;;  %v6271_v47 = vadd.f32 %v6223_v51, %v2965_v43  ;;  %vm3000_vm0 = vcmp.eq.f32.partialorder %v2999_v17, 8.507059e+37 }
 0xab2   : > { %v4833_v46 = vpop.eup %4832  ;;  %v2966_v49 = vadd.f32 %v2962_v0, %v2944_v60  ;;  %v4269_v52 = vmul.f32 -1.442695, %v6271_v47  ;;  %v4690_v60 = vld [vmem:[%s6726_s16] ss:$0 sm:$0xff] }
 0xab3   : > { %v2987_v1 = vadd.f32 1.0, %v4833_v46  ;;  %v4835_v29 = vpop.eup %4834 }
 0xab4   : > { %v2991_v50 = vmul.f32 %v4835_v29, %v2986_v40  ;;  %v6275_v55 = vadd.f32 %v6223_v51, %v2966_v49  ;;  %vm2996_vm12 = vweird.f32 %v4835_v29 }
 0xab5   : > { %4836 = vrcp.f32 %v2987_v1  ;;  %vm2997_vm14 = vmor %vm2995_vm13, %vm2996_vm12  ;;  %v3016_v45 = vand.u32 2147483648, %v2987_v1  ;;  %v3014_v2 = vand.u32 2147483647, %v2987_v1  ;;  %vm3010_vm1 = vweird.f32 %v2987_v1 }
 0xab6   : > { %4838 = vpow2.f32 %v4269_v52  ;;  %v2992_v57 = vsub.f32 1.0, %v2991_v50  ;;  %v4270_v44 = vmul.f32 -1.442695, %v6275_v55 }
 0xab7   : > { %v3017_v8 = vor.u32 1.1754944e-38, %v3016_v45  ;;  %vm3015_vm3 = vcmp.eq.f32.partialorder %v3014_v2, 8.507059e+37  ;;  %v4361_v2 = vld [vmem:[%s6727_s17 + $0x70] sm:$0xf] }
 0xab8   : > { %v2993_v10 = vmul.f32 %v4835_v29, %v2992_v57  ;;  %4840 = vpow2.f32 %v4270_v44 }
 0xaba   : > { %v2994_v59 = vadd.f32 %v4835_v29, %v2993_v10 }
 0xabb   : > { %v4837_v14 = vpop.eup %4836 }
 0xabc   : > { %v4839_v35 = vpop.eup %4838  ;;  %v3006_v30 = vmul.f32 %v4837_v14, %v2987_v1  ;;  %v2998_v28 = vsel %vm2997_vm14, %v4835_v29, %v2994_v59  ;;  %vm3011_vm15 = vweird.f32 %v4837_v14 }
 0xabd   : > { %v2988_v63 = vadd.f32 1.0, %v4839_v35  ;;  %v3003_v61 = vsel %vm3000_vm0, %v3002_v27, %v2998_v28  ;;  %vm3012_vm2 = vmor %vm3010_vm1, %vm3011_vm15  ;;  %v4585_v27 = vld [vmem:[%s6727_s17 + $0x74] sm:$0xf0] }
 0xabe   : > { %v3007_v18 = vsub.f32 1.0, %v3006_v30  ;;  %v4841_v51 = vpop.eup %4840  ;;  %v3050_v13 = vmul.f32 %v3003_v61, %v6238_v34  ;;  %v4363_v61 = vld [vmem:[%s6727_s17 + $0x78] sm:$0xf0] }
 0xabf   : > { %4842 = vrcp.f32 %v2988_v63  ;;  %v2989_v31 = vadd.f32 1.0, %v4841_v51  ;;  %vm3025_vm5 = vweird.f32 %v2988_v63  ;;  %v3031_v26 = vand.u32 2147483648, %v2988_v63 }
 0xac0   : > { %v3008_v11 = vmul.f32 %v4837_v14, %v3007_v18  ;;  %v3029_v39 = vand.u32 2147483647, %v2988_v63 }
 0xac1   : > { %4844 = vrcp.f32 %v2989_v31  ;;  %v3046_v42 = vand.u32 2147483648, %v2989_v31  ;;  %v3044_v15 = vand.u32 2147483647, %v2989_v31  ;;  %vm3040_vm8 = vweird.f32 %v2989_v31 }
 0xac2   : > { %v3009_v20 = vadd.f32 %v4837_v14, %v3008_v11  ;;  %v3032_v22 = vor.u32 1.1754944e-38, %v3031_v26  ;;  %vm3030_vm10 = vcmp.eq.f32.partialorder %v3029_v39, 8.507059e+37  ;;  %v4579_v26 = vld [vmem:[%s6727_s17 + $0x44] sm:$0xf0] }
 0xac3   : > { %v3047_v16 = vor.u32 1.1754944e-38, %v3046_v42  ;;  %vm3045_vm11 = vcmp.eq.f32.partialorder %v3044_v15, 8.507059e+37  ;;  %v4578_v42 = vld [vmem:[%s6727_s17 + $0x44] sm:$0xf] }
 0xac4   : > { %v3013_v7 = vsel %vm3012_vm2, %v4837_v14, %v3009_v20  ;;  %v4362_v20 = vor.u32 %v4585_v27, %v4361_v2 }
 0xac5   : > { %v4843_v32 = vpop.eup %4842  ;;  %v3018_v9 = vsel %vm3015_vm3, %v3017_v8, %v3013_v7  ;;  %v4353_v7 = vld [vmem:[%s6727_s17 + $0x60] sm:$0xf] }
 0xac6   : > { %v3051_v53 = vmul.f32 %v3018_v9, %v6253_v58  ;;  %v3021_v62 = vmul.f32 %v4843_v32, %v2988_v63  ;;  %vm3026_vm4 = vweird.f32 %v4843_v32  ;;  %3297 = vmatpush.bf16.msrb.mxu0 %v4362_v20  ;;  %v4582_v9 = vld [vmem:[%s6727_s17 + $0x64] sm:$0xf] }
 0xac7   : > { %v4845_v48 = vpop.eup %4844  ;;  %vm3027_vm7 = vmor %vm3025_vm5, %vm3026_vm4 }
 0xac8   : > { %v3054_v23 = vpack.c.bf16 %v3051_v53, %v3050_v13  ;;  %v3022_v21 = vsub.f32 1.0, %v3021_v62  ;;  %v3036_v5 = vmul.f32 %v4845_v48, %v2989_v31  ;;  %vm3041_vm6 = vweird.f32 %v4845_v48  ;;  %v4584_v31 = vld [vmem:[%s6727_s17 + $0x74] sm:$0xf]  ;;  %v4355_v53 = vld [vmem:[%s6727_s17 + $0x68] sm:$0xf0] }
 0xac9   : > { %vm3042_vm9 = vmor %vm3040_vm8, %vm3041_vm6  ;;  %v4366_v8 = vor.u32 %v4584_v31, %v4363_v61  ;;  %v4358_v62 = vor.u32 %v4582_v9, %v4355_v53 }
 0xaca   : > { %3115 = vmatmul.bf16.vlgmr.msra.gmra.mxu3 %v3054_v23  ;;  %v3023_v36 = vmul.f32 %v4843_v32, %v3022_v21  ;;  %v3037_v24 = vsub.f32 1.0, %v3036_v5  ;;  %v4345_v23 = vld [vmem:[%s6727_s17 + $0x50] sm:$0xf]  ;;  %v4581_v21 = vld [vmem:[%s6727_s17 + $0x54] sm:$0xf0] }
 0xacb   : > { %3316 = vmatpush.bf16.msrb.mxu1 %v4366_v8  ;;  %v4347_v5 = vld [vmem:[%s6727_s17 + $0x58] sm:$0xf0] }
 0xacc   : > { %v3024_v19 = vadd.f32 %v4843_v32, %v3023_v36  ;;  %v3038_v40 = vmul.f32 %v4845_v48, %v3037_v24  ;;  %v4346_v36 = vor.u32 %v4581_v21, %v4345_v23  ;;  %v4337_v24 = vld [vmem:[%s6727_s17 + $0x40] sm:$0xf] }
 0xacd   : > { %v4338_v39 = vor.u32 %v4579_v26, %v4337_v24 }
 0xace   : > { %v3028_v34 = vsel %vm3027_vm7, %v4843_v32, %v3024_v19  ;;  %v3039_v58 = vadd.f32 %v4845_v48, %v3038_v40  ;;  %v4583_v32 = vld [vmem:[%s6727_s17 + $0x64] sm:$0xf0]  ;;  %v4339_v40 = vld [vmem:[%s6727_s17 + $0x48] sm:$0xf0] }
 0xacf   : > { %v3033_v41 = vsel %vm3030_vm10, %v3032_v22, %v3028_v34  ;;  %v4354_v13 = vor.u32 %v4583_v32, %v4353_v7  ;;  %3317 = vmatpush.bf16.msrb.mxu1 %v4358_v62  ;;  %v4342_v15 = vor.u32 %v4578_v42, %v4339_v40  ;;  %v4329_v34 = vld [vmem:[%s6727_s17 + $0x30] sm:$0xf]  ;;  %v4576_v22 = vld [vmem:[%s6727_s17 + $0x34] sm:$0xf] }
 0xad0   : > { %v3043_v54 = vsel %vm3042_vm9, %v4845_v48, %v3039_v58  ;;  %v3052_v38 = vmul.f32 %v3033_v41, %v6271_v47  ;;  %v4580_v48 = vld [vmem:[%s6727_s17 + $0x54] sm:$0xf]  ;;  %v4577_v58 = vld [vmem:[%s6727_s17 + $0x34] sm:$0xf0] }
 0xad1   : > { %v3048_v4 = vsel %vm3045_vm11, %v3047_v16, %v3043_v54  ;;  %3298 = vmatpush.bf16.msrb.mxu0 %v4354_v13  ;;  %v4350_v19 = vor.u32 %v4580_v48, %v4347_v5  ;;  %v4330_v16 = vor.u32 %v4577_v58, %v4329_v34  ;;  %v4331_v54 = vld [vmem:[%s6727_s17 + $0x38] sm:$0xf0] }
 0xad2   : > { %v3053_v33 = vmul.f32 %v3048_v4, %v6275_v55  ;;  %v4334_v41 = vor.u32 %v4576_v22, %v4331_v54  ;;  %v4321_v4 = vld [vmem:[%s6727_s17 + $0x20] sm:$0xf] }
 0xad3   : > { %3318 = vmatpush.bf16.msrb.mxu1 %v4350_v19 }
 0xad4   : > { %v3055_v43 = vpack.c.bf16 %v3053_v33, %v3052_v38  ;;  %v4575_v33 = vld [vmem:[%s6727_s17 + $0x24] sm:$0xf0]  ;;  %v4574_v38 = vld [vmem:[%s6727_s17 + $0x24] sm:$0xf] }
 0xad5   : > { %3299 = vmatpush.bf16.msrb.mxu0 %v4346_v36 }
 0xad7   : > { %3319 = vmatpush.bf16.msrb.mxu1 %v4342_v15 }
 0xad9   : > { %3300 = vmatpush.bf16.msrb.mxu0 %v4338_v39 }
 0xada   : > { %3120 = vmatmul.bf16.gmra.mxu3 %v3055_v43  ;;  %v4322_v43 = vor.u32 %v4575_v33, %v4321_v4 }
 0xadb   : > { %3320 = vmatpush.bf16.msrb.mxu1 %v4334_v41 }
 0xadd   : > { %3301 = vmatpush.bf16.msrb.mxu0 %v4330_v16 }
 0xae1   : > { %3302 = vmatpush.bf16.msrb.mxu0 %v4322_v43 }
 0xb4d   : > { %v3116_v0 = vpop.f32.mrf.mxu3 }
 0xb4e   : > { %v3117_v46 = vadd.f32 %v4690_v60, %v3116_v0 }
 0xb50   : > { %v6286_v1 = vadd.f32 %v3117_v46, %v5985_v37  ;;  %v4313_v46 = vld [vmem:[%s6727_s17 + $0x10] sm:$0xf] }
 0xb52   : > { %3130 = vadd.xlane.f32.xlu2 %v6286_v1 }
 0xb55   : > { %v3118_v49 = vpop.f32.mrf.mxu3 }
 0xb56   : > { %v3119_v52 = vadd.f32 %v4690_v60, %v3118_v49  ;;  %v4573_v49 = vld [vmem:[%s6727_s17 + $0x14] sm:$0xf0] }
 0xb58   : > { %v6290_v29 = vadd.f32 %v3119_v52, %v5989_v56  ;;  %v4572_v52 = vld [vmem:[%s6727_s17 + $0x14] sm:$0xf] }
 0xb5a   : > { %3132 = vadd.xlane.f32.xlu0 %v6290_v29 }
 0xb5d   : > { %v3121_v47 = vpop.f32.mrf.mxu3 }
 0xb5e   : > { %v3122_v50 = vadd.f32 %v4690_v60, %v3121_v47  ;;  %v4314_v47 = vor.u32 %v4573_v49, %v4313_v46  ;;  %v4593_v49 = vld [vmem:[%s6729_s19 + $0x38] sm:$0xff] }
 0xb5f   : > { %3598 = vmatpush.bf16.msrb.mxu2 %v4593_v49 }
 0xb60   : > { %v6294_v55 = vadd.f32 %v3122_v50, %v5993_v3  ;;  %v4315_v50 = vld [vmem:[%s6727_s17 + $0x18] sm:$0xf0]  ;;  %3303 = vmatpush.bf16.msrb.mxu0 %v4314_v47  ;;  %v4592_v47 = vld [vmem:[%s6729_s19 + $0x30] sm:$0xff] }
 0xb62   : > { %3134 = vadd.xlane.f32.xlu1 %v6294_v55 }
 0xb63   : > { %3599 = vmatpush.bf16.msrb.mxu2 %v4592_v47 }
 0xb65   : > { %v3123_v57 = vpop.f32.mrf.mxu3 }
 0xb66   : > { %v3124_v44 = vadd.f32 %v4690_v60, %v3123_v57  ;;  %v4323_v60 = vld [vmem:[%s6727_s17 + $0x28] sm:$0xf0]  ;;  %v4318_v57 = vor.u32 %v4572_v52, %v4315_v50  ;;  %v4601_v52 = vld [vmem:[%s6729_s19 + $0x78] sm:$0xff] }
 0xb67   : > { %v4326_v0 = vor.u32 %v4574_v38, %v4323_v60  ;;  %3617 = vmatpush.bf16.msrb.mxu3 %v4601_v52  ;;  %v4599_v50 = vld [vmem:[%s6729_s19 + $0x68] sm:$0xff] }
 0xb68   : > { %v6298_v37 = vadd.f32 %v3124_v44, %v5997_v6 }
 0xb69   : > { %3321 = vmatpush.bf16.msrb.mxu1 %v4326_v0 }
 0xb6a   : > { %3136 = vadd.xlane.f32.xlu2 %v6298_v37 }
 0xb6d   : > { %3322 = vmatpush.bf16.msrb.mxu1 %v4318_v57  ;;  %v878_v57 = vld [vmem:[%s6728_s18] sm:$0x3] }
 0xbc5   : > { %v3131_v10 = vpop.xlane.xlu2 %3130 }
 0xbc6   : > { %v3138_v56 = vmul.f32 %v3131_v10, %v5177_v25  ;;  %v4305_v10 = vld [vmem:[%s6727_s17] sm:$0xf] }
 0xbc8   : > { %v6303_v14 = vsub.f32 %v6286_v1, %v3138_v56  ;;  %v4571_v56 = vld [vmem:[%s6727_s17 + $0x4] sm:$0xf0] }
 0xbca   : > { %v3146_v35 = vmul.f32 %v6303_v14, %v6303_v14 }
 0xbcc   : > { %3150 = vadd.xlane.f32.xlu0 %v3146_v35  ;;  %v4570_v35 = vld [vmem:[%s6727_s17 + $0x4] sm:$0xf] }
 0xbcd   : > { %v3133_v3 = vpop.xlane.xlu0 %3132 }
 0xbce   : > { %v3139_v59 = vmul.f32 %v3133_v3, %v5177_v25 }
 0xbd0   : > { %v6309_v30 = vsub.f32 %v6290_v29, %v3139_v59  ;;  %v4306_v59 = vor.u32 %v4571_v56, %v4305_v10  ;;  %v6452_v10 = vperm.slane %v878_v57, 1  ;;  %v4590_v56 = vld [vmem:[%s6729_s19 + $0x20] sm:$0xff] }
 0xbd2   : > { %v3147_v6 = vmul.f32 %v6309_v30, %v6309_v30  ;;  %3304 = vmatpush.bf16.msrb.mxu0 %v4306_v59 }
 0xbd4   : > { %3152 = vadd.xlane.f32.xlu1 %v3147_v6  ;;  %v4307_v6 = vld [vmem:[%s6727_s17 + $0x8] sm:$0xf0] }
 0xbd5   : > { %v3135_v12 = vpop.xlane.xlu1 %3134 }
 0xbd6   : > { %v3140_v63 = vmul.f32 %v3135_v12, %v5177_v25  ;;  %v4310_v12 = vor.u32 %v4570_v35, %v4307_v6  ;;  %v4598_v35 = vld [vmem:[%s6729_s19 + $0x60] sm:$0xff] }
 0xbd8   : > { %v6315_v17 = vsub.f32 %v6294_v55, %v3140_v63  ;;  %3323 = vmatpush.bf16.msrb.mxu1 %v4310_v12 }
 0xbda   : > { %v3148_v18 = vmul.f32 %v6315_v17, %v6315_v17 }
 0xbdc   : > { %3154 = vadd.xlane.f32.xlu2 %v3148_v18 }
 0xbdd   : > { %v3137_v45 = vpop.xlane.xlu2 %3136 }
 0xbde   : > { %v3141_v51 = vmul.f32 %v3137_v45, %v5177_v25 }
 0xbe0   : > { %v6321_v28 = vsub.f32 %v6298_v37, %v3141_v51 }
 0xbe2   : > { %v3149_v11 = vmul.f32 %v6321_v28, %v6321_v28 }
 0xbe4   : > { %3156 = vadd.xlane.f32.xlu0 %v3149_v11 }
 0xc3f   : > { %v3151_v44 = vpop.xlane.xlu0 %3150 }
 0xc40   : > { %v3158_v3 = vmul.f32 %v3151_v44, %v5177_v25  ;;  %v6450_v44 = vperm.slane %v878_v57, 0 }
 0xc42   : > { %v3162_v63 = vadd.f32 1e-05, %v3158_v3 }
 0xc44   : > { %4846 = vrsqrt.f32 %v3162_v63  ;;  %vm3172_vm13 = vweird.f32 %v3162_v63 }
 0xc47   : > { %v3153_v18 = vpop.xlane.xlu1 %3152 }
 0xc48   : > { %v3159_v45 = vmul.f32 %v3153_v18, %v5177_v25 }
 0xc4a   : > { %v4847_v51 = vpop.eup %4846  ;;  %v3163_v11 = vadd.f32 1e-05, %v3159_v45  ;;  %v4589_v45 = vld [vmem:[%s6729_s19 + $0x18] sm:$0xff] }
 0xc4b   : > { %v3167_v2 = vmul.f32 %v4847_v51, %v3162_v63  ;;  %vm3173_vm12 = vweird.f32 %v4847_v51 }
 0xc4c   : > { %4848 = vrsqrt.f32 %v3163_v11  ;;  %vm3174_vm15 = vmor %vm3172_vm13, %vm3173_vm12  ;;  %vm3182_vm0 = vweird.f32 %v3163_v11 }
 0xc4d   : > { %v3168_v27 = vmul.f32 %v4847_v51, %v3167_v2  ;;  %v4596_v2 = vld [vmem:[%s6729_s19 + $0x50] sm:$0xff] }
 0xc4f   : > { %v3169_v31 = vmul.f32 0.5, %v3168_v27  ;;  %v3155_v20 = vpop.xlane.xlu2 %3154 }
 0xc50   : > { %v3160_v61 = vmul.f32 %v3155_v20, %v5177_v25 }
 0xc51   : > { %v3170_v32 = vsub.f32 1.5, %v3169_v31 }
 0xc52   : > { %v4849_v8 = vpop.eup %4848  ;;  %v3164_v7 = vadd.f32 1e-05, %v3160_v61 }
 0xc53   : > { %v3177_v9 = vmul.f32 %v4849_v8, %v3163_v11  ;;  %v3171_v53 = vmul.f32 %v4847_v51, %v3170_v32  ;;  %vm3183_vm14 = vweird.f32 %v4849_v8  ;;  %v4588_v11 = vld [vmem:[%s6729_s19 + $0x10] sm:$0xff]  ;;  %v4587_v32 = vld [vmem:[%s6729_s19 + $0x8] sm:$0xff] }
 0xc54   : > { %4850 = vrsqrt.f32 %v3164_v7  ;;  %vm3184_vm1 = vmor %vm3182_vm0, %vm3183_vm14  ;;  %vm3192_vm3 = vweird.f32 %v3164_v7 }
 0xc55   : > { %v3178_v13 = vmul.f32 %v4849_v8, %v3177_v9  ;;  %v3175_v19 = vsel %vm3174_vm15, %v4847_v51, %v3171_v53  ;;  %v4597_v51 = vld [vmem:[%s6729_s19 + $0x58] sm:$0xff]  ;;  %v4595_v9 = vld [vmem:[%s6729_s19 + $0x48] sm:$0xff] }
 0xc56   : > { %v3206_v40 = vmul.f32 %v3175_v19, %v6303_v14 }
 0xc57   : > { %v3179_v62 = vmul.f32 0.5, %v3178_v13  ;;  %v3157_v23 = vpop.xlane.xlu0 %3156 }
 0xc58   : > { %v3161_v21 = vmul.f32 %v3157_v23, %v5177_v25 }
 0xc59   : > { %v3180_v48 = vsub.f32 1.5, %v3179_v62 }
 0xc5a   : > { %v4851_v36 = vpop.eup %4850  ;;  %v3165_v5 = vadd.f32 1e-05, %v3161_v21  ;;  %v4586_v21 = vld [vmem:[%s6729_s19] sm:$0xff] }
 0xc5b   : > { %v3181_v24 = vmul.f32 %v4849_v8, %v3180_v48  ;;  %v3187_v26 = vmul.f32 %v4851_v36, %v3164_v7  ;;  %vm3193_vm2 = vweird.f32 %v4851_v36  ;;  %v4594_v48 = vld [vmem:[%s6729_s19 + $0x40] sm:$0xff] }
 0xc5c   : > { %4852 = vrsqrt.f32 %v3165_v5  ;;  %vm3194_vm5 = vmor %vm3192_vm3, %vm3193_vm2  ;;  %vm3202_vm6 = vweird.f32 %v3165_v5 }
 0xc5d   : > { %v3185_v42 = vsel %vm3184_vm1, %v4849_v8, %v3181_v24  ;;  %v3188_v39 = vmul.f32 %v4851_v36, %v3187_v26 }
 0xc5e   : > { %v3207_v15 = vmul.f32 %v3185_v42, %v6309_v30 }
 0xc5f   : > { %v3189_v34 = vmul.f32 0.5, %v3188_v39 }
 0xc60   : > { %v3210_v58 = vpack.c.bf16 %v3207_v15, %v3206_v40 }
 0xc61   : > { %v3190_v16 = vsub.f32 1.5, %v3189_v34 }
 0xc62   : > { %v4853_v22 = vpop.eup %4852  ;;  %3305 = vmatmul.bf16.vlgmr.msrb.gmra.mxu0 %v3210_v58  ;;  %3324 = vmatmul.bf16.vlgmr.msrb.gmra.mxu1 %v3210_v58 }
 0xc63   : > { %v3197_v54 = vmul.f32 %v4853_v22, %v3165_v5  ;;  %v3191_v33 = vmul.f32 %v4851_v36, %v3190_v16  ;;  %vm3203_vm4 = vweird.f32 %v4853_v22 }
 0xc64   : > { %vm3204_vm7 = vmor %vm3202_vm6, %vm3203_vm4 }
 0xc65   : > { %v3198_v41 = vmul.f32 %v4853_v22, %v3197_v54  ;;  %v3195_v43 = vsel %vm3194_vm5, %v4851_v36, %v3191_v33 }
 0xc66   : > { %v3208_v60 = vmul.f32 %v3195_v43, %v6315_v17  ;;  %v4600_v17 = vld [vmem:[%s6729_s19 + $0x70] sm:$0xff] }
 0xc67   : > { %v3199_v4 = vmul.f32 0.5, %v3198_v41  ;;  %3618 = vmatpush.bf16.msrb.mxu3 %v4600_v17 }
 0xc69   : > { %v3200_v38 = vsub.f32 1.5, %v3199_v4 }
 0xc6b   : > { %v3201_v14 = vmul.f32 %v4853_v22, %v3200_v38  ;;  %3619 = vmatpush.bf16.msrb.mxu3 %v4599_v50 }
 0xc6d   : > { %v3205_v30 = vsel %vm3204_vm7, %v4853_v22, %v3201_v14 }
 0xc6e   : > { %v3209_v0 = vmul.f32 %v3205_v30, %v6321_v28  ;;  %v4591_v28 = vld [vmem:[%s6729_s19 + $0x28] sm:$0xff] }
 0xc6f   : > { %3600 = vmatpush.bf16.msrb.mxu2 %v4591_v28  ;;  %3620 = vmatpush.bf16.msrb.mxu3 %v4598_v35 }
 0xc70   : > { %v3211_v46 = vpack.c.bf16 %v3209_v0, %v3208_v60 }
 0xc72   : > { %3310 = vmatmul.bf16.gmra.mxu0 %v3211_v46  ;;  %3329 = vmatmul.bf16.gmra.mxu1 %v3211_v46 }
 0xc73   : > { %3601 = vmatpush.bf16.msrb.mxu2 %v4590_v56  ;;  %3621 = vmatpush.bf16.msrb.mxu3 %v4597_v51 }
 0xc77   : > { %3602 = vmatpush.bf16.msrb.mxu2 %v4589_v45  ;;  %3622 = vmatpush.bf16.msrb.mxu3 %v4596_v2 }
 0xc7b   : > { %3603 = vmatpush.bf16.msrb.mxu2 %v4588_v11  ;;  %3623 = vmatpush.bf16.msrb.mxu3 %v4595_v9 }
 0xc7f   : > { %3604 = vmatpush.bf16.msrb.mxu2 %v4587_v32  ;;  %3624 = vmatpush.bf16.msrb.mxu3 %v4594_v48 }
 0xc83   : > { %3605 = vmatpush.bf16.msrb.mxu2 %v4586_v21 }
 0xcdf   : > { %v3306_v3 = vpop.f32.mrf.mxu0  ;;  %v3325_v59 = vpop.f32.mrf.mxu1 }
 0xce0   : > { %v6461_v6 = vadd.f32 %v3306_v3, %v6450_v44  ;;  %v6464_v12 = vadd.f32 %v3325_v59, %v6452_v10 }
 0xce2   : > { %v4367_v63 = vmul.f32 -1.442695, %v6461_v6  ;;  %v4368_v18 = vmul.f32 -1.442695, %v6464_v12 }
 0xce4   : > { %4854 = vpow2.f32 %v4367_v63 }
 0xce5   : > { %4856 = vpow2.f32 %v4368_v18 }
 0xce7   : > { %v3308_v27 = vpop.f32.mrf.mxu0  ;;  %v3327_v31 = vpop.f32.mrf.mxu1 }
 0xce8   : > { %v6481_v20 = vadd.f32 %v3308_v27, %v6450_v44  ;;  %v6484_v61 = vadd.f32 %v3327_v31, %v6452_v10 }
 0xcea   : > { %v4855_v8 = vpop.eup %4854  ;;  %v4369_v7 = vmul.f32 -1.442695, %v6481_v20  ;;  %v4370_v62 = vmul.f32 -1.442695, %v6484_v61 }
 0xceb   : > { %v4857_v13 = vpop.eup %4856  ;;  %v3359_v53 = vadd.f32 1.0, %v4855_v8 }
 0xcec   : > { %v6494_v23 = vadd.f32 1.0, %v4857_v13  ;;  %4858 = vpow2.f32 %v4369_v7 }
 0xced   : > { %4860 = vrcp.f32 %v3359_v53  ;;  %v3376_v43 = vand.u32 2147483647, %v3359_v53  ;;  %vm3372_vm8 = vweird.f32 %v3359_v53  ;;  %v3378_v30 = vand.u32 2147483648, %v3359_v53 }
 0xcee   : > { %4862 = vrcp.f32 %v6494_v23  ;;  %vm3387_vm9 = vweird.f32 %v6494_v23  ;;  %v3391_v17 = vand.u32 2147483647, %v6494_v23  ;;  %v3393_v28 = vand.u32 2147483648, %v6494_v23 }
 0xcef   : > { %4864 = vpow2.f32 %v4370_v62  ;;  %v3311_v36 = vpop.f32.mrf.mxu0  ;;  %v3330_v5 = vpop.f32.mrf.mxu1  ;;  %vm6532_vm11 = vcmp.eq.f32.partialorder %v3376_v43, 8.507059e+37  ;;  %v3379_v18 = vor.u32 1.1754944e-38, %v3378_v30 }
 0xcf0   : > { %v6504_v19 = vadd.f32 %v3311_v36, %v6450_v44  ;;  %v6507_v24 = vadd.f32 %v3330_v5, %v6452_v10  ;;  %vm3392_vm4 = vcmp.eq.f32.partialorder %v3391_v17, 8.507059e+37 }
 0xcf2   : > { %v4859_v26 = vpop.eup %4858  ;;  %v4371_v42 = vmul.f32 -1.442695, %v6504_v19  ;;  %v4372_v15 = vmul.f32 -1.442695, %v6507_v24 }
 0xcf3   : > { %v4861_v39 = vpop.eup %4860  ;;  %v6510_v40 = vadd.f32 1.0, %v4859_v26 }
 0xcf4   : > { %v6513_v34 = vpop.eup %4862  ;;  %v3368_v58 = vmul.f32 %v4861_v39, %v3359_v53  ;;  %4866 = vpow2.f32 %v4371_v42  ;;  %vm3373_vm10 = vweird.f32 %v4861_v39 }
 0xcf5   : > { %v4865_v22 = vpop.eup %4864  ;;  %v3383_v16 = vmul.f32 %v6513_v34, %v6494_v23  ;;  %4868 = vrcp.f32 %v6510_v40  ;;  %v3408_v35 = vand.u32 2147483648, %v6510_v40  ;;  %vm6542_vm12 = vmor %vm3372_vm8, %vm3373_vm10  ;;  %vm3388_vm13 = vweird.f32 %v6513_v34 }
 0xcf6   : > { %v3369_v54 = vsub.f32 1.0, %v3368_v58  ;;  %v6518_v41 = vadd.f32 1.0, %v4865_v22  ;;  %4870 = vpow2.f32 %v4372_v15  ;;  %vm3402_vm14 = vweird.f32 %v6510_v40  ;;  %vm6563_vm0 = vmor %vm3387_vm9, %vm3388_vm13 }
 0xcf7   : > { %v3384_v4 = vsub.f32 1.0, %v3383_v16  ;;  %v3313_v33 = vpop.f32.mrf.mxu0  ;;  %v3332_v0 = vpop.f32.mrf.mxu1  ;;  %v3409_v8 = vor.u32 1.1754944e-38, %v3408_v35  ;;  %v3394_v23 = vor.u32 1.1754944e-38, %v3393_v28 }
 0xcf8   : > { %v3370_v38 = vmul.f32 %v4861_v39, %v3369_v54  ;;  %4872 = vrcp.f32 %v6518_v41  ;;  %v6523_v60 = vadd.f32 %v3313_v33, %v6450_v44  ;;  %v6539_v3 = vadd.f32 %v3332_v0, %v6452_v10 }
 0xcf9   : > { %v3385_v52 = vmul.f32 %v6513_v34, %v3384_v4  ;;  %v3406_v10 = vand.u32 2147483647, %v6510_v40  ;;  %v3421_v32 = vand.u32 2147483647, %v6518_v41  ;;  %v3423_v21 = vand.u32 2147483648, %v6518_v41 }
 0xcfa   : > { %v4867_v14 = vpop.eup %4866  ;;  %v3371_v49 = vadd.f32 %v4861_v39, %v3370_v38  ;;  %v4373_v57 = vmul.f32 -1.442695, %v6523_v60  ;;  %v4374_v9 = vmul.f32 -1.442695, %v6539_v3  ;;  %vm3417_vm5 = vweird.f32 %v6518_v41 }
 0xcfb   : > { %v4869_v46 = vpop.eup %4868  ;;  %v6526_v47 = vadd.f32 1.0, %v4867_v14  ;;  %v3386_v11 = vadd.f32 %v6513_v34, %v3385_v52  ;;  %vm3407_vm3 = vcmp.eq.f32.partialorder %v3406_v10, 8.507059e+37  ;;  %v3424_v16 = vor.u32 1.1754944e-38, %v3423_v21 }
 0xcfc   : > { %v3398_v50 = vmul.f32 %v4869_v46, %v6510_v40  ;;  %v4871_v56 = vpop.eup %4870  ;;  %v3375_v51 = vsel %vm6542_vm12, %v4861_v39, %v3371_v49  ;;  %vm3403_vm15 = vweird.f32 %v4869_v46  ;;  %vm3422_vm7 = vcmp.eq.f32.partialorder %v3421_v32, 8.507059e+37 }
 0xcfd   : > { %4874 = vrcp.f32 %v6526_v47  ;;  %v6553_v31 = vadd.f32 1.0, %v4871_v56  ;;  %v3380_v13 = vsel %vm6532_vm11, %v3379_v18, %v3375_v51  ;;  %v3390_v36 = vsel %vm6563_vm0, %v6513_v34, %v3386_v11  ;;  %vm3404_vm1 = vmor %vm3402_vm14, %vm3403_vm15 }
 0xcfe   : > { %v4873_v59 = vpop.eup %4872  ;;  %v3399_v45 = vsub.f32 1.0, %v3398_v50  ;;  %4876 = vpow2.f32 %v4373_v57  ;;  %v3487_v34 = vmul.f32 %v3380_v13, %v6461_v6  ;;  %v3395_v22 = vsel %vm3392_vm4, %v3394_v23, %v3390_v36 }
 0xcff   : > { %v3413_v2 = vmul.f32 %v4873_v59, %v6518_v41  ;;  %4878 = vrcp.f32 %v6553_v31  ;;  %vm3418_vm2 = vweird.f32 %v4873_v59  ;;  %v3488_v0 = vmul.f32 %v3395_v22, %v6464_v12 }
 0xd00   : > { %v3400_v27 = vmul.f32 %v4869_v46, %v3399_v45  ;;  %4880 = vpow2.f32 %v4374_v9  ;;  %vm3419_vm6 = vmor %vm3417_vm5, %vm3418_vm2  ;;  %v3436_v12 = vand.u32 2147483647, %v6526_v47  ;;  %vm3432_vm9 = vweird.f32 %v6526_v47 }
 0xd01   : > { %v3414_v7 = vsub.f32 1.0, %v3413_v2  ;;  %v3438_v57 = vand.u32 2147483648, %v6526_v47  ;;  %vm3447_vm14 = vweird.f32 %v6553_v31  ;;  %v3451_v2 = vand.u32 2147483647, %v6553_v31 }
 0xd02   : > { %v3401_v62 = vadd.f32 %v4869_v46, %v3400_v27  ;;  %vm6597_vm11 = vcmp.eq.f32.partialorder %v3436_v12, 8.507059e+37  ;;  %v3453_v27 = vand.u32 2147483648, %v6553_v31 }
 0xd03   : > { %v6569_v48 = vpop.eup %4874  ;;  %v3415_v5 = vmul.f32 %v4873_v59, %v3414_v7  ;;  %v3439_v10 = vor.u32 1.1754944e-38, %v3438_v57  ;;  %vm3452_vm4 = vcmp.eq.f32.partialorder %v3451_v2, 8.507059e+37 }
 0xd04   : > { %v3405_v26 = vsel %vm3404_vm1, %v4869_v46, %v3401_v62  ;;  %v3428_v42 = vmul.f32 %v6569_v48, %v6526_v47  ;;  %v4877_v58 = vpop.eup %4876  ;;  %vm3433_vm8 = vweird.f32 %v6569_v48  ;;  %v3454_v36 = vor.u32 1.1754944e-38, %v3453_v27 }
 0xd05   : > { %v3410_v39 = vsel %vm3407_vm3, %v3409_v8, %v3405_v26  ;;  %v3416_v15 = vadd.f32 %v4873_v59, %v3415_v5  ;;  %v3365_v33 = vadd.f32 1.0, %v4877_v58  ;;  %v4879_v38 = vpop.eup %4878  ;;  %vm6590_vm10 = vmor %vm3432_vm9, %vm3433_vm8 }
 0xd06   : > { %v3489_v40 = vmul.f32 %v3410_v39, %v6481_v20  ;;  %v3429_v4 = vsub.f32 1.0, %v3428_v42  ;;  %v4881_v30 = vpop.eup %4880  ;;  %v3443_v46 = vmul.f32 %v4879_v38, %v6553_v31  ;;  %vm3448_vm12 = vweird.f32 %v4879_v38 }
 0xd07   : > { %v3420_v54 = vsel %vm3419_vm6, %v4873_v59, %v3416_v15  ;;  %4882 = vrcp.f32 %v3365_v33  ;;  %v3366_v49 = vadd.f32 1.0, %v4881_v30  ;;  %v3466_v35 = vand.u32 2147483647, %v3365_v33  ;;  %vm6604_vm15 = vmor %vm3447_vm14, %vm3448_vm12 }
 0xd08   : > { %v3495_v43 = vpack.c.bf16 %v3489_v40, %v3487_v34  ;;  %v3425_v14 = vsel %vm3422_vm7, %v3424_v16, %v3420_v54  ;;  %v3430_v20 = vmul.f32 %v6569_v48, %v3429_v4  ;;  %v3444_v52 = vsub.f32 1.0, %v3443_v46 }
 0xd09   : > { %v3490_v41 = vmul.f32 %v3425_v14, %v6484_v61  ;;  %4884 = vrcp.f32 %v3366_v49  ;;  %v3468_v45 = vand.u32 2147483648, %v3365_v33  ;;  %vm3462_vm0 = vweird.f32 %v3365_v33 }
 0xd0a   : > { %3606 = vmatmul.bf16.vlgmr.msrb.gmra.mxu2 %v3495_v43  ;;  %v3431_v28 = vadd.f32 %v6569_v48, %v3430_v20  ;;  %v3445_v50 = vmul.f32 %v4879_v38, %v3444_v52  ;;  %vm3467_vm1 = vcmp.eq.f32.partialorder %v3466_v35, 8.507059e+37  ;;  %v3481_v53 = vand.u32 2147483647, %v3366_v49 }
 0xd0b   : > { %v3496_v6 = vpack.c.bf16 %v3490_v41, %v3488_v0  ;;  %v3469_v13 = vor.u32 1.1754944e-38, %v3468_v45  ;;  %v3483_v62 = vand.u32 2147483648, %v3366_v49  ;;  %vm3477_vm5 = vweird.f32 %v3366_v49 }
 0xd0c   : > { %v3435_v63 = vsel %vm6590_vm10, %v6569_v48, %v3431_v28  ;;  %v3446_v51 = vadd.f32 %v4879_v38, %v3445_v50  ;;  %vm3482_vm7 = vcmp.eq.f32.partialorder %v3481_v53, 8.507059e+37  ;;  %v4609_v53 = vld [vmem:[%s6731_s21 + $0x38] sm:$0xff] }
 0xd0d   : > { %3625 = vmatmul.bf16.vlgmr.msrb.gmra.mxu3 %v3496_v6  ;;  %v4883_v17 = vpop.eup %4882  ;;  %v3440_v9 = vsel %vm6597_vm11, %v3439_v10, %v3435_v63  ;;  %v3484_v15 = vor.u32 1.1754944e-38, %v3483_v62  ;;  %3790 = vmatpush.bf16.msra.mxu0 %v4609_v53 }
 0xd0e   : > { %v3458_v61 = vmul.f32 %v4883_v17, %v3365_v33  ;;  %vm3463_vm13 = vweird.f32 %v4883_v17  ;;  %v3450_v21 = vsel %vm6604_vm15, %v4879_v38, %v3446_v51  ;;  %v3491_v23 = vmul.f32 %v3440_v9, %v6504_v19  ;;  %v4691_v19 = vld [vmem:[%s6730_s20] ss:$0 sm:$0xff] }
 0xd0f   : > { %v4885_v59 = vpop.eup %4884  ;;  %vm3464_vm2 = vmor %vm3462_vm0, %vm3463_vm13  ;;  %v3455_v39 = vsel %vm3452_vm4, %v3454_v36, %v3450_v21 }
 0xd10   : > { %v3459_v44 = vsub.f32 1.0, %v3458_v61  ;;  %v3473_v47 = vmul.f32 %v4885_v59, %v3366_v49  ;;  %vm3478_vm3 = vweird.f32 %v4885_v59  ;;  %v3492_v40 = vmul.f32 %v3455_v39, %v6507_v24 }
 0xd11   : > { %vm3479_vm6 = vmor %vm3477_vm5, %vm3478_vm3  ;;  %vm3803_vm5 = vcmask 24576  }
 0xd12   : > { %v3460_v11 = vmul.f32 %v4883_v17, %v3459_v44  ;;  %v3474_v32 = vsub.f32 1.0, %v3473_v47 }
 0xd14   : > { %v3461_v7 = vadd.f32 %v4883_v17, %v3460_v11  ;;  %v3475_v31 = vmul.f32 %v4885_v59, %v3474_v32 }
 0xd16   : > { %v3465_v48 = vsel %vm3464_vm2, %v4883_v17, %v3461_v7  ;;  %v3476_v42 = vadd.f32 %v4885_v59, %v3475_v31  ;;  %v4607_v31 = vld [vmem:[%s6731_s21 + $0x28] sm:$0xff] }
 0xd17   : > { %v3470_v5 = vsel %vm3467_vm1, %v3469_v13, %v3465_v48  ;;  %v4608_v48 = vld [vmem:[%s6731_s21 + $0x30] sm:$0xff] }
 0xd18   : > { %v3493_v26 = vmul.f32 %v3470_v5, %v6523_v60  ;;  %v3480_v58 = vsel %vm3479_vm6, %v4885_v59, %v3476_v42  ;;  %3791 = vmatpush.bf16.msra.mxu0 %v4608_v48  ;;  %v4606_v42 = vld [vmem:[%s6731_s21 + $0x20] sm:$0xff] }
 0xd19   : > { %v3485_v22 = vsel %vm3482_vm7, %v3484_v15, %v3480_v58 }
 0xd1a   : > { %v3497_v34 = vpack.c.bf16 %v3493_v26, %v3491_v23  ;;  %v3494_v16 = vmul.f32 %v3485_v22, %v6539_v3 }
 0xd1c   : > { %3611 = vmatmul.bf16.gmra.mxu2 %v3497_v34  ;;  %v3498_v54 = vpack.c.bf16 %v3494_v16, %v3492_v40  ;;  %3792 = vmatpush.bf16.msra.mxu0 %v4607_v31  ;;  %v4605_v34 = vld [vmem:[%s6731_s21 + $0x18] sm:$0xff] }
 0xd1e   : > { %3630 = vmatmul.bf16.gmra.mxu3 %v3498_v54 }
 0xd20   : > { %3793 = vmatpush.bf16.msra.mxu0 %v4606_v42 }
 0xd24   : > { %3794 = vmatpush.bf16.msra.mxu0 %v4605_v34 }
 0xd8d   : > { %v3607_v60 = vpop.f32.mrf.mxu2 }
 0xd8e   : > { %v3608_v4 = vadd.f32 %v4691_v19, %v3607_v60 }
 0xd90   : > { %v3626_v33 = vpop.f32.mrf.mxu3 }
 0xd91   : > { %v3627_v38 = vadd.f32 %v3626_v33, %v3608_v4 }
 0xd93   : > { %v3636_v43 = vmul.f32 0.5, %v3627_v38  ;;  %v4603_v38 = vld [vmem:[%s6731_s21 + $0x8] sm:$0xff] }
 0xd95   : > { %v3609_v14 = vpop.f32.mrf.mxu2  ;;  %v3640_v30 = vadd.f32 %v3636_v43, %v6286_v1 }
 0xd96   : > { %v3610_v0 = vadd.f32 %v4691_v19, %v3609_v14 }
 0xd97   : > { %3644 = vadd.xlane.f32.xlu1 %v3640_v30 }
 0xd98   : > { %v3628_v24 = vpop.f32.mrf.mxu3 }
 0xd99   : > { %v3629_v41 = vadd.f32 %v3628_v24, %v3610_v0 }
 0xd9b   : > { %v3637_v3 = vmul.f32 0.5, %v3629_v41 }
 0xd9d   : > { %v3641_v46 = vadd.f32 %v3637_v3, %v6290_v29 }
 0xd9f   : > { %3646 = vadd.xlane.f32.xlu2 %v3641_v46  ;;  %v3612_v6 = vpop.f32.mrf.mxu2 }
 0xda0   : > { %v3613_v20 = vadd.f32 %v4691_v19, %v3612_v6 }
 0xda1   : > { %v3631_v49 = vpop.f32.mrf.mxu3 }
 0xda2   : > { %v3632_v52 = vadd.f32 %v3631_v49, %v3613_v20  ;;  %v4964_v20 = vmov 32.0  }
 0xda4   : > { %v3638_v17 = vmul.f32 0.5, %v3632_v52 }
 0xda6   : > { %v3642_v50 = vadd.f32 %v3638_v17, %v6294_v55 }
 0xda7   : > { %v3614_v28 = vpop.f32.mrf.mxu2 }
 0xda8   : > { %v3615_v12 = vadd.f32 %v4691_v19, %v3614_v28  ;;  %3648 = vadd.xlane.f32.xlu0 %v3642_v50  ;;  %v4604_v19 = vld [vmem:[%s6731_s21 + $0x10] sm:$0xff] }
 0xda9   : > { %v3633_v61 = vpop.f32.mrf.mxu3  ;;  %3795 = vmatpush.bf16.msra.mxu0 %v4604_v19 }
 0xdaa   : > { %v3634_v1 = vadd.f32 %v3633_v61, %v3615_v12 }
 0xdac   : > { %v3639_v57 = vmul.f32 0.5, %v3634_v1 }
 0xdad   : > { %3796 = vmatpush.bf16.msra.mxu0 %v4603_v38 }
 0xdae   : > { %v3643_v56 = vadd.f32 %v3639_v57, %v6298_v37 }
 0xdb0   : > { %3650 = vadd.xlane.f32.xlu1 %v3643_v56 }
 0xe0a   : > { %v3645_v44 = vpop.xlane.xlu1 %3644 }
 0xe0b   : > { %v3652_v29 = vmul.f32 %v3645_v44, %v5177_v25 }
 0xe0d   : > { %v6624_v35 = vsub.f32 %v3640_v30, %v3652_v29 }
 0xe0f   : > { %v3660_v59 = vmul.f32 %v6624_v35, %v6624_v35 }
 0xe11   : > { %3664 = vadd.xlane.f32.xlu2 %v3660_v59 }
 0xe12   : > { %v3647_v63 = vpop.xlane.xlu2 %3646 }
 0xe13   : > { %v3653_v18 = vmul.f32 %v3647_v63, %v5177_v25 }
 0xe15   : > { %v6629_v55 = vsub.f32 %v3641_v46, %v3653_v18 }
 0xe17   : > { %v3661_v45 = vmul.f32 %v6629_v55, %v6629_v55 }
 0xe19   : > { %3666 = vadd.xlane.f32.xlu0 %v3661_v45 }
 0xe1b   : > { %v3649_v37 = vpop.xlane.xlu0 %3648 }
 0xe1c   : > { %v3654_v51 = vmul.f32 %v3649_v37, %v5177_v25 }
 0xe1e   : > { %v6634_v11 = vsub.f32 %v3642_v50, %v3654_v51 }
 0xe20   : > { %v3662_v47 = vmul.f32 %v6634_v11, %v6634_v11 }
 0xe22   : > { %3668 = vadd.xlane.f32.xlu1 %v3662_v47 }
 0xe23   : > { %v3651_v10 = vpop.xlane.xlu1 %3650 }
 0xe24   : > { %v3655_v2 = vmul.f32 %v3651_v10, %v5177_v25 }
 0xe26   : > { %v6639_v27 = vsub.f32 %v3643_v56, %v3655_v2 }
 0xe28   : > { %v3663_v8 = vmul.f32 %v6639_v27, %v6639_v27 }
 0xe2a   : > { %3670 = vadd.xlane.f32.xlu2 %v3663_v8 }
 0xe84   : > { %v3665_v7 = vpop.xlane.xlu2 %3664 }
 0xe85   : > { %v3672_v32 = vmul.f32 %v3665_v7, %v5177_v25 }
 0xe87   : > { %v3676_v21 = vadd.f32 1e-05, %v3672_v32 }
 0xe89   : > { %vm3686_vm12 = vweird.f32 %v3676_v21 }
 0xe8c   : > { %v3667_v9 = vpop.xlane.xlu0 %3666 }
 0xe8d   : > { %v3673_v13 = vmul.f32 %v3667_v9, %v5177_v25 }
 0xe8f   : > { %v3677_v62 = vadd.f32 1e-05, %v3673_v13 }
 0xe91   : > { %4886 = vrsqrt.f32 %v3677_v62  ;;  %vm3696_vm10 = vweird.f32 %v3677_v62 }
 0xe92   : > { %4888 = vrsqrt.f32 %v3676_v21 }
 0xe95   : > { %v3669_v5 = vpop.xlane.xlu1 %3668 }
 0xe96   : > { %v3674_v26 = vmul.f32 %v3669_v5, %v5177_v25 }
 0xe97   : > { %v4887_v36 = vpop.eup %4886 }
 0xe98   : > { %v4889_v23 = vpop.eup %4888  ;;  %v3691_v39 = vmul.f32 %v4887_v36, %v3677_v62  ;;  %v3678_v15 = vadd.f32 1e-05, %v3674_v26  ;;  %vm3697_vm8 = vweird.f32 %v4887_v36 }
 0xe99   : > { %v3681_v58 = vmul.f32 %v4889_v23, %v3676_v21  ;;  %vm3687_vm9 = vweird.f32 %v4889_v23  ;;  %vm3698_vm13 = vmor %vm3696_vm10, %vm3697_vm8 }
 0xe9a   : > { %4890 = vrsqrt.f32 %v3678_v15  ;;  %v3692_v22 = vmul.f32 %v4887_v36, %v3691_v39  ;;  %vm3688_vm14 = vmor %vm3686_vm12, %vm3687_vm9  ;;  %vm3706_vm15 = vweird.f32 %v3678_v15 }
 0xe9b   : > { %v3682_v40 = vmul.f32 %v4889_v23, %v3681_v58 }
 0xe9c   : > { %v3693_v60 = vmul.f32 0.5, %v3692_v22 }
 0xe9d   : > { %v3671_v16 = vpop.xlane.xlu2 %3670  ;;  %v3683_v43 = vmul.f32 0.5, %v3682_v40 }
 0xe9e   : > { %v3675_v54 = vmul.f32 %v3671_v16, %v5177_v25  ;;  %v3694_v30 = vsub.f32 1.5, %v3693_v60  ;;  %v4602_v25 = vld [vmem:[%s6731_s21] sm:$0xff] }
 0xe9f   : > { %v3684_v24 = vsub.f32 1.5, %v3683_v43  ;;  %3797 = vmatpush.bf16.msra.mxu0 %v4602_v25 }
 0xea0   : > { %v4891_v4 = vpop.eup %4890  ;;  %v3679_v33 = vadd.f32 1e-05, %v3675_v54  ;;  %v3695_v3 = vmul.f32 %v4887_v36, %v3694_v30 }
 0xea1   : > { %v3701_v14 = vmul.f32 %v4891_v4, %v3678_v15  ;;  %v3685_v49 = vmul.f32 %v4889_v23, %v3684_v24  ;;  %vm3707_vm11 = vweird.f32 %v4891_v4 }
 0xea2   : > { %4892 = vrsqrt.f32 %v3679_v33  ;;  %v3699_v28 = vsel %vm3698_vm13, %v4887_v36, %v3695_v3  ;;  %vm3708_vm0 = vmor %vm3706_vm15, %vm3707_vm11  ;;  %vm3716_vm2 = vweird.f32 %v3679_v33 }
 0xea3   : > { %v3702_v0 = vmul.f32 %v4891_v4, %v3701_v14  ;;  %4894 = vrcp.f32 %v4964_v20  ;;  %v3689_v50 = vsel %vm3688_vm14, %v4889_v23, %v3685_v49  ;;  %v3721_v56 = vmul.f32 %v3699_v28, %v6629_v55 }
 0xea4   : > { %v3720_v29 = vmul.f32 %v3689_v50, %v6624_v35 }
 0xea5   : > { %v3703_v41 = vmul.f32 0.5, %v3702_v0 }
 0xea6   : > { %v3724_v45 = vadd.f32 %v3721_v56, %v3720_v29 }
 0xea7   : > { %v3704_v46 = vsub.f32 1.5, %v3703_v41 }
 0xea8   : > { %v4893_v6 = vpop.eup %4892 }
 0xea9   : > { %v3705_v52 = vmul.f32 %v4891_v4, %v3704_v46  ;;  %v3711_v17 = vmul.f32 %v4893_v6, %v3679_v33  ;;  %v4895_v57 = vpop.eup %4894  ;;  %vm3717_vm1 = vweird.f32 %v4893_v6 }
 0xeaa   : > { %v3734_v18 = vmul.f32 32.0, %v4895_v57  ;;  %vm3718_vm3 = vmor %vm3716_vm2, %vm3717_vm1  ;;  %vm3738_vm4 = vweird.f32 %v4895_v57 }
 0xeab   : > { %v3712_v12 = vmul.f32 %v4893_v6, %v3711_v17  ;;  %v3709_v61 = vsel %vm3708_vm0, %v4891_v4, %v3705_v52 }
 0xeac   : > { %v3722_v59 = vmul.f32 %v3709_v61, %v6634_v11  ;;  %v3735_v10 = vsub.f32 1.0, %v3734_v18 }
 0xead   : > { %v3713_v1 = vmul.f32 0.5, %v3712_v12 }
 0xeae   : > { %v3725_v51 = vadd.f32 %v3724_v45, %v3722_v59  ;;  %v3736_v8 = vmul.f32 %v4895_v57, %v3735_v10 }
 0xeaf   : > { %v3714_v44 = vsub.f32 1.5, %v3713_v1 }
 0xeb0   : > { %v3737_v35 = vadd.f32 %v4895_v57, %v3736_v8 }
 0xeb1   : > { %v3715_v63 = vmul.f32 %v4893_v6, %v3714_v44 }
 0xeb2   : > { %v3739_v13 = vsel %vm3738_vm4, %v4895_v57, %v3737_v35 }
 0xeb3   : > { %v3719_v37 = vsel %vm3718_vm3, %v4893_v6, %v3715_v63 }
 0xeb4   : > { %v3723_v47 = vmul.f32 %v3719_v37, %v6639_v27  ;;  %v928_v27 = vld [vmem:[%s6809_s0] sm:$0x1] }
 0xeb6   : > { %v3726_v2 = vadd.f32 %v3725_v51, %v3723_v47 }
 0xeb8   : > { %v3727_v55 = vrot.slane %v3726_v2, 4 }
 0xeba   : > { %v3728_v7 = vadd.f32 %v3727_v55, %v3726_v2 }
 0xebc   : > { %v3729_v32 = vrot.slane %v3728_v7, 2 }
 0xebe   : > { %v3730_v9 = vadd.f32 %v3729_v32, %v3728_v7 }
 0xec0   : > { %v3731_v11 = vrot.slane %v3730_v9, 1 }
 0xec2   : > { %v3732_v53 = vadd.f32 %v3731_v11, %v3730_v9 }
 0xec4   : > { %v3740_v62 = vmul.f32 %v3739_v13, %v3732_v53 }
 0xec6   : > { %v3741_v21 = vpack.c.bf16 %v3740_v62, %v3740_v62 }
 0xec8   : > { %3798 = vmatmul.bf16.vlgmr.msra.gmra.mxu0 %v3741_v21 }
 0xf45   : > { %v3799_v48 = vpop.f32.mrf.mxu0 }
 0xf46   : > { %v3800_v31 = vadd.f32 %v3799_v48, %v928_v27 }
 0xf48   : > { %3804 = vst.msk [vmem:[%s702_s24] sm:$0x1] %vm3803_vm5, %v3800_v31 }
 0xf49   : > { %4923 = shalt.err (!%p4920_p3)
}
 0xf4a   : > { %4612 = dma.vmem_to_hbm [thread:$0]  (%p5123_p5), %s3817_s29, 16, %s3819_s3, %s3806_s28  }
 0xf4d   : > { %v3801_v36 = vpop.f32.mrf.mxu0 }
 0xf4e PF: > { %s6811_s1 = sld [smem:[#allocation7_spill]] }
 0xf4f   : > { %s6812_s6 = sld [smem:[#allocation5_spill]] }
 0xf54   : > { %p4618_p4 = scmp.ge.s32.totalorder %s6811_s1, 2 }
 0xf55   : > { %s3830_s24 = sand.u32 1, %s6812_s6  }
 0xf56   : > { %p4615_p7 = pnand %p4618_p4, %p5127_p6  ;;  %s3831_s5 = scalar_lea.sflag [#allocation3], %s3830_s24 }
 0xf58   : > { %p4616_p8 = pneg %p4615_p7 }
 0xf5a   : > { %4941 = dma.done.wait (%p4616_p8), %s3831_s5, 16  }
 0xf5b   : > { %4943 = vsyncadd (%p4616_p8), %s3831_s5, 4294967280  ;;  %s6814_s25 = sld [smem:[#allocation8_spill]]  ;;  %s6817_s4 = smov %s4950_s30 }
 0xf5c   : > { %s6815_s8 = sld [smem:[#allocation6_spill]] }
 0xf5d   : > { %s6816_s24 = sld [smem:[#allocation9_spill]] }
 0xf61   : > { %p33_p9 = scmp.ge.s32.totalorder %s6814_s25, 4  }
 0xf62   : > { %s6818_s30 = smov %s6815_s8 }
 0xf63   :  { %35 = sbr.rel (!%p33_p9) target bundleno = 14 (0xe), region = 147 }
 0xf68   :  { %3836 = vsyncpa [#allocation3], 1 }
 0xf69   :  { %3838 = vsyncpa [#allocation3 + $0x1], 1 }

</bundles_post_ra>
